<compile_context>
chip_gen: v5e
topology: v5e:2x2
jax: 0.10.0
libtpu: 0.0.40
codegen_flags: <defaults>
</compile_context>

<pallas_src>
import functools

import jax
import jax.numpy as jnp
from jax import lax
from jax.experimental import pallas as pl
from jax.experimental.pallas import tpu as pltpu


def _spatial_attention_kernel(w_ref, x_ref, o_ref, sum_ref, max_ref, pad_ref,
                              *, ksize, pad, H, W, n_c_steps):
    """Grid = (batch tiles, channel tiles); channel axis is the reduction axis.

    w_ref  : SMEM (2*K*K,)            f32  -- flattened conv weight [c, kh, kw]
                                             (avg channel pre-scaled by 1/C)
    x_ref  : VMEM (b_tile, c_tile, HW) x.dtype -- lane-dense input block
    o_ref  : VMEM (b_tile, 1, H, W)    out dtype
    sum_ref: VMEM (b_tile, HW)         f32  -- running channel sum
    max_ref: VMEM (b_tile, HW)         f32  -- running channel max
    pad_ref: VMEM (2, H+2p, W+2p)      f32  -- zero-padded [avg, max] conv maps
    """
    c_step = pl.program_id(1)
    b_tile = x_ref.shape[0]
    Hp = H + 2 * pad
    Wp = W + 2 * pad
    K = ksize

    @pl.when(c_step == 0)
    def _init():
        sum_ref[...] = jnp.zeros(sum_ref.shape, jnp.float32)
        max_ref[...] = jnp.full(max_ref.shape, -jnp.inf, jnp.float32)

    # Lane-dense partial channel reduction (per batch element: (c_tile, HW)).
    for b in range(b_tile):
        xb = x_ref[b].astype(jnp.float32)                      # (c_tile, HW)
        sum_ref[b:b + 1, :] = sum_ref[b:b + 1, :] + jnp.sum(xb, axis=0, keepdims=True)
        max_ref[b:b + 1, :] = jnp.maximum(max_ref[b:b + 1, :],
                                          jnp.max(xb, axis=0, keepdims=True))

    @pl.when(c_step == n_c_steps - 1)
    def _finalize():
        # Zero only the pad border; the interior is fully overwritten below.
        pad_ref[:, :pad, :] = jnp.zeros((2, pad, Wp), jnp.float32)
        pad_ref[:, pad + H:, :] = jnp.zeros((2, pad, Wp), jnp.float32)
        pad_ref[:, :, :pad] = jnp.zeros((2, Hp, pad), jnp.float32)
        pad_ref[:, :, pad + W:] = jnp.zeros((2, Hp, pad), jnp.float32)

        for b in range(b_tile):
            # Relayout the (HW,)-lane-dense accumulators into the (H, W) padded
            # conv maps via per-row VMEM copies.
            for r in range(H):
                pad_ref[0, pad + r:pad + r + 1, pad:pad + W] = \
                    sum_ref[b:b + 1, r * W:(r + 1) * W]
                pad_ref[1, pad + r:pad + r + 1, pad:pad + W] = \
                    max_ref[b:b + 1, r * W:(r + 1) * W]

            # 7x7 (or 3x3) conv over 2 channels: one slab load per (c, kh),
            # kw shifts taken as value-level lane slices of the slab.
            acc = jnp.zeros((H, W), jnp.float32)
            for c in range(2):
                for kh in range(K):
                    slab = pad_ref[c, kh:kh + H, :]            # (H, Wp)
                    for kw in range(K):
                        wv = w_ref[c * K * K + kh * K + kw]    # scalar (SMEM)
                        acc = acc + slab[:, kw:kw + W] * wv

            o_ref[b, 0] = jax.nn.sigmoid(acc).astype(o_ref.dtype)


def spatial_attention(x, weight, kernel_size=7):
    """x: (N, C, H, W);  weight: (1, 2, K, K)  -> (N, 1, H, W) in x.dtype."""
    assert kernel_size in (3, 7), "kernel size must be 3 or 7"
    pad = 3 if kernel_size == 7 else 1
    K = kernel_size
    N, C, H, W = x.shape
    HW = H * W
    Hp, Wp = H + 2 * pad, W + 2 * pad
    itemsize = jnp.dtype(x.dtype).itemsize
    out_dtype = x.dtype

    # Fold 1/C into the avg-channel weights; the kernel keeps a channel SUM.
    w = jnp.asarray(weight, jnp.float32).reshape(2, K, K)
    w = w.at[0].multiply(1.0 / C)
    w_flat = w.reshape(-1)                                     # (2*K*K,)

    # ---- batch tile: move ~512 KiB per step, but keep >= 2 parallel steps ----
    bytes_per_image = C * HW * itemsize
    b_tile = max(1, min(N, 8, (512 * 1024) // max(1, bytes_per_image)))
    while b_tile > 1 and (N // b_tile) < 2:      # feed both v7x TensorCores
        b_tile -= 1
    while N % b_tile:
        b_tile -= 1

    # ---- channel tile: keep the double-buffered input block within ~8 MiB ----
    budget = 8 * 1024 * 1024
    max_ct = max(1, budget // max(1, b_tile * HW * itemsize))
    if C <= max_ct:
        c_tile = C
    else:
        c_tile = C  # fallback: no suitable divisor -> keep full C (more VMEM)
        for ct in range(min(C, int(max_ct)), 0, -1):
            if C % ct == 0 and ct % 8 == 0:      # block 2nd-minor dim constraint
                c_tile = ct
                break
    n_c_steps = C // c_tile

    # ---- explicit VMEM budget (covers double-buffered blocks + scratch) ----
    in_block_bytes = b_tile * c_tile * HW * itemsize
    out_block_bytes = b_tile * HW * jnp.dtype(out_dtype).itemsize
    scratch_bytes = (2 * b_tile * HW + 2 * Hp * Wp) * 4
    vmem_limit = int(min(64 * 1024 * 1024,
                         max(32 * 1024 * 1024,
                             2 * (in_block_bytes + out_block_bytes)
                             + scratch_bytes + (2 << 20))))

    # Free XLA reshape: lane-dense (N, C, H*W) layout on the wire, native dtype.
    x_flat = x.reshape(N, C, HW)

    kernel = functools.partial(_spatial_attention_kernel,
                               ksize=K, pad=pad, H=H, W=W, n_c_steps=n_c_steps)

    return pl.pallas_call(
        kernel,
        out_shape=jax.ShapeDtypeStruct((N, 1, H, W), out_dtype),
        grid=(N // b_tile, n_c_steps),
        in_specs=[
            pl.BlockSpec(memory_space=pltpu.MemorySpace.SMEM),           # weights
            pl.BlockSpec((b_tile, c_tile, HW), lambda n, c: (n, c, 0)),  # input
        ],
        out_specs=pl.BlockSpec((b_tile, 1, H, W), lambda n, c: (n, 0, 0, 0)),
        scratch_shapes=[
            pltpu.VMEM((b_tile, HW), jnp.float32),     # running channel sum
            pltpu.VMEM((b_tile, HW), jnp.float32),     # running channel max
            pltpu.VMEM((2, Hp, Wp), jnp.float32),      # padded [avg, max] maps
        ],
        compiler_params=pltpu.CompilerParams(
            dimension_semantics=("parallel", "arbitrary"),
            vmem_limit_bytes=vmem_limit),
    )(w_flat, x_flat)


def _reference(x, weight, kernel_size=7):
    pad = 3 if kernel_size == 7 else 1
    avg = jnp.mean(x, axis=1, keepdims=True)
    mx = jnp.max(x, axis=1, keepdims=True)
    cat = jnp.concatenate([avg, mx], axis=1)
    y = lax.conv_general_dilated(
        cat, weight, window_strides=(1, 1),
        padding=[(pad, pad), (pad, pad)],
        dimension_numbers=("NCHW", "OIHW", "NCHW"))
    return jax.nn.sigmoid(y)


if __name__ == "__main__":
    key = jax.random.PRNGKey(0)
    kx, kw = jax.random.split(key)

    N, C, H, W = 2, 4, 16, 16
    kernel_size = 7

    x = jax.random.normal(kx, (N, C, H, W), dtype=jnp.float32)
    # Deterministic synthetic conv weight (matches nn.Conv2d(2, 1, 7, bias=False)).
    weight = 0.05 * jax.random.normal(kw, (1, 2, kernel_size, kernel_size),
                                      dtype=jnp.float32)

    out = spatial_attention(x, weight, kernel_size)
    out = jax.block_until_ready(out)

    ref = _reference(x, weight, kernel_size)
    assert out.shape == (N, 1, H, W)
    assert jnp.allclose(out, ref, atol=1e-5, rtol=1e-5), (
        f"max abs err = {jnp.max(jnp.abs(out - ref))}")

    print("KERNEL_OK")
</pallas_src>

<mosaic_0001>
module attributes {stable_mosaic.version = 11 : i64} {
  func.func @_spatial_attention_kernel(%arg0: i32, %arg1: i32, %arg2: memref<98xf32, #tpu.memory_space<smem>>, %arg3: memref<1x4x256xf32, #tpu.memory_space<vmem>>, %arg4: memref<1x1x16x16xf32, #tpu.memory_space<vmem>>, %arg5: memref<1x256xf32, #tpu.memory_space<vmem>>, %arg6: memref<1x256xf32, #tpu.memory_space<vmem>>, %arg7: memref<2x22x22xf32, #tpu.memory_space<vmem>>) attributes {dimension_semantics = [#tpu.dimension_semantics<parallel>, #tpu.dimension_semantics<arbitrary>], iteration_bounds = array<i64: 2, 1>, scalar_prefetch = 0 : i64, scratch_operands = 3 : i64, tpu.core_type = #tpu.core_type<tc>, window_params = [{transform_indices = @transform_0, window_bounds = array<i64: 98>}, {transform_indices = @transform_1, window_bounds = array<i64: 1, 4, 256>}, {transform_indices = @transform_2, window_bounds = array<i64: 1, 1, 16, 16>}]} {
    %c0_i32 = arith.constant 0 : i32
    %0 = arith.cmpi eq, %arg1, %c0_i32 : i32
    %1 = arith.extui %0 : i1 to i32
    %c0_i32_0 = arith.constant 0 : i32
    %2 = arith.cmpi ne, %1, %c0_i32_0 : i32
    scf.if %2 {
      %cst_14 = arith.constant 0.000000e+00 : f32
      %18 = vector.broadcast %cst_14 : f32 to vector<1x256xf32>
      %c0_15 = arith.constant 0 : index
      %c0_16 = arith.constant 0 : index
      %19 = vector.load %arg5[%c0_15, %c0_16] : memref<1x256xf32, #tpu.memory_space<vmem>>, vector<1x256xf32>
      tpu.vector_store %arg5[%c0_15, %c0_16], %18 {strides = array<i32>} : memref<1x256xf32, #tpu.memory_space<vmem>>, vector<1x256xf32>,
      %cst_17 = arith.constant 0xFF800000 : f32
      %20 = vector.broadcast %cst_17 : f32 to vector<1x256xf32>
      %c0_18 = arith.constant 0 : index
      %c0_19 = arith.constant 0 : index
      %21 = vector.load %arg6[%c0_18, %c0_19] : memref<1x256xf32, #tpu.memory_space<vmem>>, vector<1x256xf32>
      tpu.vector_store %arg6[%c0_18, %c0_19], %20 {strides = array<i32>} : memref<1x256xf32, #tpu.memory_space<vmem>>, vector<1x256xf32>,
    } else {
    }
    %c0 = arith.constant 0 : index
    %c0_1 = arith.constant 0 : index
    %c0_2 = arith.constant 0 : index
    %3 = vector.load %arg3[%c0, %c0_1, %c0_2] : memref<1x4x256xf32, #tpu.memory_space<vmem>>, vector<1x4x256xf32>
    %4 = vector.shape_cast %3 : vector<1x4x256xf32> to vector<4x256xf32>
    %c0_3 = arith.constant 0 : index
    %c0_4 = arith.constant 0 : index
    %5 = vector.load %arg5[%c0_3, %c0_4] : memref<1x256xf32, #tpu.memory_space<vmem>>, vector<1x256xf32>
    %cst = arith.constant dense<0.000000e+00> : vector<256xf32>
    %6 = vector.multi_reduction <add>, %4, %cst [0] : vector<4x256xf32> to vector<256xf32>
    %7 = vector.shape_cast %6 : vector<256xf32> to vector<1x256xf32>
    %8 = arith.addf %5, %7 : vector<1x256xf32>
    %c0_5 = arith.constant 0 : index
    %c0_6 = arith.constant 0 : index
    %9 = vector.load %arg5[%c0_5, %c0_6] : memref<1x256xf32, #tpu.memory_space<vmem>>, vector<1x256xf32>
    tpu.vector_store %arg5[%c0_5, %c0_6], %8 {strides = array<i32>} : memref<1x256xf32, #tpu.memory_space<vmem>>, vector<1x256xf32>,
    %c0_7 = arith.constant 0 : index
    %c0_8 = arith.constant 0 : index
    %10 = vector.load %arg6[%c0_7, %c0_8] : memref<1x256xf32, #tpu.memory_space<vmem>>, vector<1x256xf32>
    %cst_9 = arith.constant dense<0xFF800000> : vector<256xf32>
    %11 = vector.multi_reduction <maximumf>, %4, %cst_9 [0] : vector<4x256xf32> to vector<256xf32>
    %12 = vector.shape_cast %11 : vector<256xf32> to vector<1x256xf32>
    %13 = arith.maximumf %10, %12 : vector<1x256xf32>
    %c0_10 = arith.constant 0 : index
    %c0_11 = arith.constant 0 : index
    %14 = vector.load %arg6[%c0_10, %c0_11] : memref<1x256xf32, #tpu.memory_space<vmem>>, vector<1x256xf32>
    tpu.vector_store %arg6[%c0_10, %c0_11], %13 {strides = array<i32>} : memref<1x256xf32, #tpu.memory_space<vmem>>, vector<1x256xf32>,
    %c0_i32_12 = arith.constant 0 : i32
    %15 = arith.cmpi eq, %arg1, %c0_i32_12 : i32
    %16 = arith.extui %15 : i1 to i32
    %c0_i32_13 = arith.constant 0 : i32
    %17 = arith.cmpi ne, %16, %c0_i32_13 : i32
    scf.if %17 {
      %cst_14 = arith.constant 0.000000e+00 : f32
      %18 = vector.broadcast %cst_14 : f32 to vector<2x3x22xf32>
      %c0_15 = arith.constant 0 : index
      %c0_16 = arith.constant 0 : index
      %c0_17 = arith.constant 0 : index
      %19 = vector.load %arg7[%c0_15, %c0_16, %c0_17] : memref<2x22x22xf32, #tpu.memory_space<vmem>>, vector<2x3x22xf32>
      tpu.vector_store %arg7[%c0_15, %c0_16, %c0_17], %18 {strides = array<i32>} : memref<2x22x22xf32, #tpu.memory_space<vmem>>, vector<2x3x22xf32>,
      %cst_18 = arith.constant 0.000000e+00 : f32
      %20 = vector.broadcast %cst_18 : f32 to vector<2x3x22xf32>
      %c0_19 = arith.constant 0 : index
      %c19 = arith.constant 19 : index
      %c0_20 = arith.constant 0 : index
      %21 = vector.load %arg7[%c0_19, %c19, %c0_20] : memref<2x22x22xf32, #tpu.memory_space<vmem>>, vector<2x3x22xf32>
      tpu.vector_store %arg7[%c0_19, %c19, %c0_20], %20 {strides = array<i32>} : memref<2x22x22xf32, #tpu.memory_space<vmem>>, vector<2x3x22xf32>,
      %cst_21 = arith.constant 0.000000e+00 : f32
      %22 = vector.broadcast %cst_21 : f32 to vector<2x22x3xf32>
      %c0_22 = arith.constant 0 : index
      %c0_23 = arith.constant 0 : index
      %c0_24 = arith.constant 0 : index
      %23 = vector.load %arg7[%c0_22, %c0_23, %c0_24] : memref<2x22x22xf32, #tpu.memory_space<vmem>>, vector<2x22x3xf32>
      tpu.vector_store %arg7[%c0_22, %c0_23, %c0_24], %22 {strides = array<i32>} : memref<2x22x22xf32, #tpu.memory_space<vmem>>, vector<2x22x3xf32>,
      %cst_25 = arith.constant 0.000000e+00 : f32
      %24 = vector.broadcast %cst_25 : f32 to vector<2x22x3xf32>
      %c0_26 = arith.constant 0 : index
      %c0_27 = arith.constant 0 : index
      %c19_28 = arith.constant 19 : index
      %25 = vector.load %arg7[%c0_26, %c0_27, %c19_28] : memref<2x22x22xf32, #tpu.memory_space<vmem>>, vector<2x22x3xf32>
      tpu.vector_store %arg7[%c0_26, %c0_27, %c19_28], %24 {strides = array<i32>} : memref<2x22x22xf32, #tpu.memory_space<vmem>>, vector<2x22x3xf32>,
      %c0_29 = arith.constant 0 : index
      %c0_30 = arith.constant 0 : index
      %26 = vector.load %arg5[%c0_29, %c0_30] : memref<1x256xf32, #tpu.memory_space<vmem>>, vector<1x16xf32>
      %c0_31 = arith.constant 0 : index
      %c3 = arith.constant 3 : index
      %c3_32 = arith.constant 3 : index
      %27 = vector.load %arg7[%c0_31, %c3, %c3_32] : memref<2x22x22xf32, #tpu.memory_space<vmem>>, vector<1x1x16xf32>
      %28 = vector.shape_cast %27 : vector<1x1x16xf32> to vector<1x16xf32>
      %29 = vector.shape_cast %26 : vector<1x16xf32> to vector<1x1x16xf32>
      tpu.vector_store %arg7[%c0_31, %c3, %c3_32], %29 {strides = array<i32>} : memref<2x22x22xf32, #tpu.memory_space<vmem>>, vector<1x1x16xf32>,
      %c0_33 = arith.constant 0 : index
      %c0_34 = arith.constant 0 : index
      %30 = vector.load %arg6[%c0_33, %c0_34] : memref<1x256xf32, #tpu.memory_space<vmem>>, vector<1x16xf32>
      %c1 = arith.constant 1 : index
      %c3_35 = arith.constant 3 : index
      %c3_36 = arith.constant 3 : index
      %31 = vector.load %arg7[%c1, %c3_35, %c3_36] : memref<2x22x22xf32, #tpu.memory_space<vmem>>, vector<1x1x16xf32>
      %32 = vector.shape_cast %31 : vector<1x1x16xf32> to vector<1x16xf32>
      %33 = vector.shape_cast %30 : vector<1x16xf32> to vector<1x1x16xf32>
      tpu.vector_store %arg7[%c1, %c3_35, %c3_36], %33 {strides = array<i32>} : memref<2x22x22xf32, #tpu.memory_space<vmem>>, vector<1x1x16xf32>,
      %c0_37 = arith.constant 0 : index
      %c16 = arith.constant 16 : index
      %34 = vector.load %arg5[%c0_37, %c16] : memref<1x256xf32, #tpu.memory_space<vmem>>, vector<1x16xf32>
      %c0_38 = arith.constant 0 : index
      %c4 = arith.constant 4 : index
      %c3_39 = arith.constant 3 : index
      %35 = vector.load %arg7[%c0_38, %c4, %c3_39] : memref<2x22x22xf32, #tpu.memory_space<vmem>>, vector<1x1x16xf32>
      %36 = vector.shape_cast %35 : vector<1x1x16xf32> to vector<1x16xf32>
      %37 = vector.shape_cast %34 : vector<1x16xf32> to vector<1x1x16xf32>
      tpu.vector_store %arg7[%c0_38, %c4, %c3_39], %37 {strides = array<i32>} : memref<2x22x22xf32, #tpu.memory_space<vmem>>, vector<1x1x16xf32>,
      %c0_40 = arith.constant 0 : index
      %c16_41 = arith.constant 16 : index
      %38 = vector.load %arg6[%c0_40, %c16_41] : memref<1x256xf32, #tpu.memory_space<vmem>>, vector<1x16xf32>
      %c1_42 = arith.constant 1 : index
      %c4_43 = arith.constant 4 : index
      %c3_44 = arith.constant 3 : index
      %39 = vector.load %arg7[%c1_42, %c4_43, %c3_44] : memref<2x22x22xf32, #tpu.memory_space<vmem>>, vector<1x1x16xf32>
      %40 = vector.shape_cast %39 : vector<1x1x16xf32> to vector<1x16xf32>
      %41 = vector.shape_cast %38 : vector<1x16xf32> to vector<1x1x16xf32>
      tpu.vector_store %arg7[%c1_42, %c4_43, %c3_44], %41 {strides = array<i32>} : memref<2x22x22xf32, #tpu.memory_space<vmem>>, vector<1x1x16xf32>,
      %c0_45 = arith.constant 0 : index
      %c32 = arith.constant 32 : index
      %42 = vector.load %arg5[%c0_45, %c32] : memref<1x256xf32, #tpu.memory_space<vmem>>, vector<1x16xf32>
      %c0_46 = arith.constant 0 : index
      %c5 = arith.constant 5 : index
      %c3_47 = arith.constant 3 : index
      %43 = vector.load %arg7[%c0_46, %c5, %c3_47] : memref<2x22x22xf32, #tpu.memory_space<vmem>>, vector<1x1x16xf32>
      %44 = vector.shape_cast %43 : vector<1x1x16xf32> to vector<1x16xf32>
      %45 = vector.shape_cast %42 : vector<1x16xf32> to vector<1x1x16xf32>
      tpu.vector_store %arg7[%c0_46, %c5, %c3_47], %45 {strides = array<i32>} : memref<2x22x22xf32, #tpu.memory_space<vmem>>, vector<1x1x16xf32>,
      %c0_48 = arith.constant 0 : index
      %c32_49 = arith.constant 32 : index
      %46 = vector.load %arg6[%c0_48, %c32_49] : memref<1x256xf32, #tpu.memory_space<vmem>>, vector<1x16xf32>
      %c1_50 = arith.constant 1 : index
      %c5_51 = arith.constant 5 : index
      %c3_52 = arith.constant 3 : index
      %47 = vector.load %arg7[%c1_50, %c5_51, %c3_52] : memref<2x22x22xf32, #tpu.memory_space<vmem>>, vector<1x1x16xf32>
      %48 = vector.shape_cast %47 : vector<1x1x16xf32> to vector<1x16xf32>
      %49 = vector.shape_cast %46 : vector<1x16xf32> to vector<1x1x16xf32>
      tpu.vector_store %arg7[%c1_50, %c5_51, %c3_52], %49 {strides = array<i32>} : memref<2x22x22xf32, #tpu.memory_space<vmem>>, vector<1x1x16xf32>,
      %c0_53 = arith.constant 0 : index
      %c48 = arith.constant 48 : index
      %50 = vector.load %arg5[%c0_53, %c48] : memref<1x256xf32, #tpu.memory_space<vmem>>, vector<1x16xf32>
      %c0_54 = arith.constant 0 : index
      %c6 = arith.constant 6 : index
      %c3_55 = arith.constant 3 : index
      %51 = vector.load %arg7[%c0_54, %c6, %c3_55] : memref<2x22x22xf32, #tpu.memory_space<vmem>>, vector<1x1x16xf32>
      %52 = vector.shape_cast %51 : vector<1x1x16xf32> to vector<1x16xf32>
      %53 = vector.shape_cast %50 : vector<1x16xf32> to vector<1x1x16xf32>
      tpu.vector_store %arg7[%c0_54, %c6, %c3_55], %53 {strides = array<i32>} : memref<2x22x22xf32, #tpu.memory_space<vmem>>, vector<1x1x16xf32>,
      %c0_56 = arith.constant 0 : index
      %c48_57 = arith.constant 48 : index
      %54 = vector.load %arg6[%c0_56, %c48_57] : memref<1x256xf32, #tpu.memory_space<vmem>>, vector<1x16xf32>
      %c1_58 = arith.constant 1 : index
      %c6_59 = arith.constant 6 : index
      %c3_60 = arith.constant 3 : index
      %55 = vector.load %arg7[%c1_58, %c6_59, %c3_60] : memref<2x22x22xf32, #tpu.memory_space<vmem>>, vector<1x1x16xf32>
      %56 = vector.shape_cast %55 : vector<1x1x16xf32> to vector<1x16xf32>
      %57 = vector.shape_cast %54 : vector<1x16xf32> to vector<1x1x16xf32>
      tpu.vector_store %arg7[%c1_58, %c6_59, %c3_60], %57 {strides = array<i32>} : memref<2x22x22xf32, #tpu.memory_space<vmem>>, vector<1x1x16xf32>,
      %c0_61 = arith.constant 0 : index
      %c64 = arith.constant 64 : index
      %58 = vector.load %arg5[%c0_61, %c64] : memref<1x256xf32, #tpu.memory_space<vmem>>, vector<1x16xf32>
      %c0_62 = arith.constant 0 : index
      %c7 = arith.constant 7 : index
      %c3_63 = arith.constant 3 : index
      %59 = vector.load %arg7[%c0_62, %c7, %c3_63] : memref<2x22x22xf32, #tpu.memory_space<vmem>>, vector<1x1x16xf32>
      %60 = vector.shape_cast %59 : vector<1x1x16xf32> to vector<1x16xf32>
      %61 = vector.shape_cast %58 : vector<1x16xf32> to vector<1x1x16xf32>
      tpu.vector_store %arg7[%c0_62, %c7, %c3_63], %61 {strides = array<i32>} : memref<2x22x22xf32, #tpu.memory_space<vmem>>, vector<1x1x16xf32>,
      %c0_64 = arith.constant 0 : index
      %c64_65 = arith.constant 64 : index
      %62 = vector.load %arg6[%c0_64, %c64_65] : memref<1x256xf32, #tpu.memory_space<vmem>>, vector<1x16xf32>
      %c1_66 = arith.constant 1 : index
      %c7_67 = arith.constant 7 : index
      %c3_68 = arith.constant 3 : index
      %63 = vector.load %arg7[%c1_66, %c7_67, %c3_68] : memref<2x22x22xf32, #tpu.memory_space<vmem>>, vector<1x1x16xf32>
      %64 = vector.shape_cast %63 : vector<1x1x16xf32> to vector<1x16xf32>
      %65 = vector.shape_cast %62 : vector<1x16xf32> to vector<1x1x16xf32>
      tpu.vector_store %arg7[%c1_66, %c7_67, %c3_68], %65 {strides = array<i32>} : memref<2x22x22xf32, #tpu.memory_space<vmem>>, vector<1x1x16xf32>,
      %c0_69 = arith.constant 0 : index
      %c80 = arith.constant 80 : index
      %66 = vector.load %arg5[%c0_69, %c80] : memref<1x256xf32, #tpu.memory_space<vmem>>, vector<1x16xf32>
      %c0_70 = arith.constant 0 : index
      %c8 = arith.constant 8 : index
      %c3_71 = arith.constant 3 : index
      %67 = vector.load %arg7[%c0_70, %c8, %c3_71] : memref<2x22x22xf32, #tpu.memory_space<vmem>>, vector<1x1x16xf32>
      %68 = vector.shape_cast %67 : vector<1x1x16xf32> to vector<1x16xf32>
      %69 = vector.shape_cast %66 : vector<1x16xf32> to vector<1x1x16xf32>
      tpu.vector_store %arg7[%c0_70, %c8, %c3_71], %69 {strides = array<i32>} : memref<2x22x22xf32, #tpu.memory_space<vmem>>, vector<1x1x16xf32>,
      %c0_72 = arith.constant 0 : index
      %c80_73 = arith.constant 80 : index
      %70 = vector.load %arg6[%c0_72, %c80_73] : memref<1x256xf32, #tpu.memory_space<vmem>>, vector<1x16xf32>
      %c1_74 = arith.constant 1 : index
      %c8_75 = arith.constant 8 : index
      %c3_76 = arith.constant 3 : index
      %71 = vector.load %arg7[%c1_74, %c8_75, %c3_76] : memref<2x22x22xf32, #tpu.memory_space<vmem>>, vector<1x1x16xf32>
      %72 = vector.shape_cast %71 : vector<1x1x16xf32> to vector<1x16xf32>
      %73 = vector.shape_cast %70 : vector<1x16xf32> to vector<1x1x16xf32>
      tpu.vector_store %arg7[%c1_74, %c8_75, %c3_76], %73 {strides = array<i32>} : memref<2x22x22xf32, #tpu.memory_space<vmem>>, vector<1x1x16xf32>,
      %c0_77 = arith.constant 0 : index
      %c96 = arith.constant 96 : index
      %74 = vector.load %arg5[%c0_77, %c96] : memref<1x256xf32, #tpu.memory_space<vmem>>, vector<1x16xf32>
      %c0_78 = arith.constant 0 : index
      %c9 = arith.constant 9 : index
      %c3_79 = arith.constant 3 : index
      %75 = vector.load %arg7[%c0_78, %c9, %c3_79] : memref<2x22x22xf32, #tpu.memory_space<vmem>>, vector<1x1x16xf32>
      %76 = vector.shape_cast %75 : vector<1x1x16xf32> to vector<1x16xf32>
      %77 = vector.shape_cast %74 : vector<1x16xf32> to vector<1x1x16xf32>
      tpu.vector_store %arg7[%c0_78, %c9, %c3_79], %77 {strides = array<i32>} : memref<2x22x22xf32, #tpu.memory_space<vmem>>, vector<1x1x16xf32>,
      %c0_80 = arith.constant 0 : index
      %c96_81 = arith.constant 96 : index
      %78 = vector.load %arg6[%c0_80, %c96_81] : memref<1x256xf32, #tpu.memory_space<vmem>>, vector<1x16xf32>
      %c1_82 = arith.constant 1 : index
      %c9_83 = arith.constant 9 : index
      %c3_84 = arith.constant 3 : index
      %79 = vector.load %arg7[%c1_82, %c9_83, %c3_84] : memref<2x22x22xf32, #tpu.memory_space<vmem>>, vector<1x1x16xf32>
      %80 = vector.shape_cast %79 : vector<1x1x16xf32> to vector<1x16xf32>
      %81 = vector.shape_cast %78 : vector<1x16xf32> to vector<1x1x16xf32>
      tpu.vector_store %arg7[%c1_82, %c9_83, %c3_84], %81 {strides = array<i32>} : memref<2x22x22xf32, #tpu.memory_space<vmem>>, vector<1x1x16xf32>,
      %c0_85 = arith.constant 0 : index
      %c112 = arith.constant 112 : index
      %82 = vector.load %arg5[%c0_85, %c112] : memref<1x256xf32, #tpu.memory_space<vmem>>, vector<1x16xf32>
      %c0_86 = arith.constant 0 : index
      %c10 = arith.constant 10 : index
      %c3_87 = arith.constant 3 : index
      %83 = vector.load %arg7[%c0_86, %c10, %c3_87] : memref<2x22x22xf32, #tpu.memory_space<vmem>>, vector<1x1x16xf32>
      %84 = vector.shape_cast %83 : vector<1x1x16xf32> to vector<1x16xf32>
      %85 = vector.shape_cast %82 : vector<1x16xf32> to vector<1x1x16xf32>
      tpu.vector_store %arg7[%c0_86, %c10, %c3_87], %85 {strides = array<i32>} : memref<2x22x22xf32, #tpu.memory_space<vmem>>, vector<1x1x16xf32>,
      %c0_88 = arith.constant 0 : index
      %c112_89 = arith.constant 112 : index
      %86 = vector.load %arg6[%c0_88, %c112_89] : memref<1x256xf32, #tpu.memory_space<vmem>>, vector<1x16xf32>
      %c1_90 = arith.constant 1 : index
      %c10_91 = arith.constant 10 : index
      %c3_92 = arith.constant 3 : index
      %87 = vector.load %arg7[%c1_90, %c10_91, %c3_92] : memref<2x22x22xf32, #tpu.memory_space<vmem>>, vector<1x1x16xf32>
      %88 = vector.shape_cast %87 : vector<1x1x16xf32> to vector<1x16xf32>
      %89 = vector.shape_cast %86 : vector<1x16xf32> to vector<1x1x16xf32>
      tpu.vector_store %arg7[%c1_90, %c10_91, %c3_92], %89 {strides = array<i32>} : memref<2x22x22xf32, #tpu.memory_space<vmem>>, vector<1x1x16xf32>,
      %c0_93 = arith.constant 0 : index
      %c128 = arith.constant 128 : index
      %90 = vector.load %arg5[%c0_93, %c128] : memref<1x256xf32, #tpu.memory_space<vmem>>, vector<1x16xf32>
      %c0_94 = arith.constant 0 : index
      %c11 = arith.constant 11 : index
      %c3_95 = arith.constant 3 : index
      %91 = vector.load %arg7[%c0_94, %c11, %c3_95] : memref<2x22x22xf32, #tpu.memory_space<vmem>>, vector<1x1x16xf32>
      %92 = vector.shape_cast %91 : vector<1x1x16xf32> to vector<1x16xf32>
      %93 = vector.shape_cast %90 : vector<1x16xf32> to vector<1x1x16xf32>
      tpu.vector_store %arg7[%c0_94, %c11, %c3_95], %93 {strides = array<i32>} : memref<2x22x22xf32, #tpu.memory_space<vmem>>, vector<1x1x16xf32>,
      %c0_96 = arith.constant 0 : index
      %c128_97 = arith.constant 128 : index
      %94 = vector.load %arg6[%c0_96, %c128_97] : memref<1x256xf32, #tpu.memory_space<vmem>>, vector<1x16xf32>
      %c1_98 = arith.constant 1 : index
      %c11_99 = arith.constant 11 : index
      %c3_100 = arith.constant 3 : index
      %95 = vector.load %arg7[%c1_98, %c11_99, %c3_100] : memref<2x22x22xf32, #tpu.memory_space<vmem>>, vector<1x1x16xf32>
      %96 = vector.shape_cast %95 : vector<1x1x16xf32> to vector<1x16xf32>
      %97 = vector.shape_cast %94 : vector<1x16xf32> to vector<1x1x16xf32>
      tpu.vector_store %arg7[%c1_98, %c11_99, %c3_100], %97 {strides = array<i32>} : memref<2x22x22xf32, #tpu.memory_space<vmem>>, vector<1x1x16xf32>,
      %c0_101 = arith.constant 0 : index
      %c144 = arith.constant 144 : index
      %98 = vector.load %arg5[%c0_101, %c144] : memref<1x256xf32, #tpu.memory_space<vmem>>, vector<1x16xf32>
      %c0_102 = arith.constant 0 : index
      %c12 = arith.constant 12 : index
      %c3_103 = arith.constant 3 : index
      %99 = vector.load %arg7[%c0_102, %c12, %c3_103] : memref<2x22x22xf32, #tpu.memory_space<vmem>>, vector<1x1x16xf32>
      %100 = vector.shape_cast %99 : vector<1x1x16xf32> to vector<1x16xf32>
      %101 = vector.shape_cast %98 : vector<1x16xf32> to vector<1x1x16xf32>
      tpu.vector_store %arg7[%c0_102, %c12, %c3_103], %101 {strides = array<i32>} : memref<2x22x22xf32, #tpu.memory_space<vmem>>, vector<1x1x16xf32>,
      %c0_104 = arith.constant 0 : index
      %c144_105 = arith.constant 144 : index
      %102 = vector.load %arg6[%c0_104, %c144_105] : memref<1x256xf32, #tpu.memory_space<vmem>>, vector<1x16xf32>
      %c1_106 = arith.constant 1 : index
      %c12_107 = arith.constant 12 : index
      %c3_108 = arith.constant 3 : index
      %103 = vector.load %arg7[%c1_106, %c12_107, %c3_108] : memref<2x22x22xf32, #tpu.memory_space<vmem>>, vector<1x1x16xf32>
      %104 = vector.shape_cast %103 : vector<1x1x16xf32> to vector<1x16xf32>
      %105 = vector.shape_cast %102 : vector<1x16xf32> to vector<1x1x16xf32>
      tpu.vector_store %arg7[%c1_106, %c12_107, %c3_108], %105 {strides = array<i32>} : memref<2x22x22xf32, #tpu.memory_space<vmem>>, vector<1x1x16xf32>,
      %c0_109 = arith.constant 0 : index
      %c160 = arith.constant 160 : index
      %106 = vector.load %arg5[%c0_109, %c160] : memref<1x256xf32, #tpu.memory_space<vmem>>, vector<1x16xf32>
      %c0_110 = arith.constant 0 : index
      %c13 = arith.constant 13 : index
      %c3_111 = arith.constant 3 : index
      %107 = vector.load %arg7[%c0_110, %c13, %c3_111] : memref<2x22x22xf32, #tpu.memory_space<vmem>>, vector<1x1x16xf32>
      %108 = vector.shape_cast %107 : vector<1x1x16xf32> to vector<1x16xf32>
      %109 = vector.shape_cast %106 : vector<1x16xf32> to vector<1x1x16xf32>
      tpu.vector_store %arg7[%c0_110, %c13, %c3_111], %109 {strides = array<i32>} : memref<2x22x22xf32, #tpu.memory_space<vmem>>, vector<1x1x16xf32>,
      %c0_112 = arith.constant 0 : index
      %c160_113 = arith.constant 160 : index
      %110 = vector.load %arg6[%c0_112, %c160_113] : memref<1x256xf32, #tpu.memory_space<vmem>>, vector<1x16xf32>
      %c1_114 = arith.constant 1 : index
      %c13_115 = arith.constant 13 : index
      %c3_116 = arith.constant 3 : index
      %111 = vector.load %arg7[%c1_114, %c13_115, %c3_116] : memref<2x22x22xf32, #tpu.memory_space<vmem>>, vector<1x1x16xf32>
      %112 = vector.shape_cast %111 : vector<1x1x16xf32> to vector<1x16xf32>
      %113 = vector.shape_cast %110 : vector<1x16xf32> to vector<1x1x16xf32>
      tpu.vector_store %arg7[%c1_114, %c13_115, %c3_116], %113 {strides = array<i32>} : memref<2x22x22xf32, #tpu.memory_space<vmem>>, vector<1x1x16xf32>,
      %c0_117 = arith.constant 0 : index
      %c176 = arith.constant 176 : index
      %114 = vector.load %arg5[%c0_117, %c176] : memref<1x256xf32, #tpu.memory_space<vmem>>, vector<1x16xf32>
      %c0_118 = arith.constant 0 : index
      %c14 = arith.constant 14 : index
      %c3_119 = arith.constant 3 : index
      %115 = vector.load %arg7[%c0_118, %c14, %c3_119] : memref<2x22x22xf32, #tpu.memory_space<vmem>>, vector<1x1x16xf32>
      %116 = vector.shape_cast %115 : vector<1x1x16xf32> to vector<1x16xf32>
      %117 = vector.shape_cast %114 : vector<1x16xf32> to vector<1x1x16xf32>
      tpu.vector_store %arg7[%c0_118, %c14, %c3_119], %117 {strides = array<i32>} : memref<2x22x22xf32, #tpu.memory_space<vmem>>, vector<1x1x16xf32>,
      %c0_120 = arith.constant 0 : index
      %c176_121 = arith.constant 176 : index
      %118 = vector.load %arg6[%c0_120, %c176_121] : memref<1x256xf32, #tpu.memory_space<vmem>>, vector<1x16xf32>
      %c1_122 = arith.constant 1 : index
      %c14_123 = arith.constant 14 : index
      %c3_124 = arith.constant 3 : index
      %119 = vector.load %arg7[%c1_122, %c14_123, %c3_124] : memref<2x22x22xf32, #tpu.memory_space<vmem>>, vector<1x1x16xf32>
      %120 = vector.shape_cast %119 : vector<1x1x16xf32> to vector<1x16xf32>
      %121 = vector.shape_cast %118 : vector<1x16xf32> to vector<1x1x16xf32>
      tpu.vector_store %arg7[%c1_122, %c14_123, %c3_124], %121 {strides = array<i32>} : memref<2x22x22xf32, #tpu.memory_space<vmem>>, vector<1x1x16xf32>,
      %c0_125 = arith.constant 0 : index
      %c192 = arith.constant 192 : index
      %122 = vector.load %arg5[%c0_125, %c192] : memref<1x256xf32, #tpu.memory_space<vmem>>, vector<1x16xf32>
      %c0_126 = arith.constant 0 : index
      %c15 = arith.constant 15 : index
      %c3_127 = arith.constant 3 : index
      %123 = vector.load %arg7[%c0_126, %c15, %c3_127] : memref<2x22x22xf32, #tpu.memory_space<vmem>>, vector<1x1x16xf32>
      %124 = vector.shape_cast %123 : vector<1x1x16xf32> to vector<1x16xf32>
      %125 = vector.shape_cast %122 : vector<1x16xf32> to vector<1x1x16xf32>
      tpu.vector_store %arg7[%c0_126, %c15, %c3_127], %125 {strides = array<i32>} : memref<2x22x22xf32, #tpu.memory_space<vmem>>, vector<1x1x16xf32>,
      %c0_128 = arith.constant 0 : index
      %c192_129 = arith.constant 192 : index
      %126 = vector.load %arg6[%c0_128, %c192_129] : memref<1x256xf32, #tpu.memory_space<vmem>>, vector<1x16xf32>
      %c1_130 = arith.constant 1 : index
      %c15_131 = arith.constant 15 : index
      %c3_132 = arith.constant 3 : index
      %127 = vector.load %arg7[%c1_130, %c15_131, %c3_132] : memref<2x22x22xf32, #tpu.memory_space<vmem>>, vector<1x1x16xf32>
      %128 = vector.shape_cast %127 : vector<1x1x16xf32> to vector<1x16xf32>
      %129 = vector.shape_cast %126 : vector<1x16xf32> to vector<1x1x16xf32>
      tpu.vector_store %arg7[%c1_130, %c15_131, %c3_132], %129 {strides = array<i32>} : memref<2x22x22xf32, #tpu.memory_space<vmem>>, vector<1x1x16xf32>,
      %c0_133 = arith.constant 0 : index
      %c208 = arith.constant 208 : index
      %130 = vector.load %arg5[%c0_133, %c208] : memref<1x256xf32, #tpu.memory_space<vmem>>, vector<1x16xf32>
      %c0_134 = arith.constant 0 : index
      %c16_135 = arith.constant 16 : index
      %c3_136 = arith.constant 3 : index
      %131 = vector.load %arg7[%c0_134, %c16_135, %c3_136] : memref<2x22x22xf32, #tpu.memory_space<vmem>>, vector<1x1x16xf32>
      %132 = vector.shape_cast %131 : vector<1x1x16xf32> to vector<1x16xf32>
      %133 = vector.shape_cast %130 : vector<1x16xf32> to vector<1x1x16xf32>
      tpu.vector_store %arg7[%c0_134, %c16_135, %c3_136], %133 {strides = array<i32>} : memref<2x22x22xf32, #tpu.memory_space<vmem>>, vector<1x1x16xf32>,
      %c0_137 = arith.constant 0 : index
      %c208_138 = arith.constant 208 : index
      %134 = vector.load %arg6[%c0_137, %c208_138] : memref<1x256xf32, #tpu.memory_space<vmem>>, vector<1x16xf32>
      %c1_139 = arith.constant 1 : index
      %c16_140 = arith.constant 16 : index
      %c3_141 = arith.constant 3 : index
      %135 = vector.load %arg7[%c1_139, %c16_140, %c3_141] : memref<2x22x22xf32, #tpu.memory_space<vmem>>, vector<1x1x16xf32>
      %136 = vector.shape_cast %135 : vector<1x1x16xf32> to vector<1x16xf32>
      %137 = vector.shape_cast %134 : vector<1x16xf32> to vector<1x1x16xf32>
      tpu.vector_store %arg7[%c1_139, %c16_140, %c3_141], %137 {strides = array<i32>} : memref<2x22x22xf32, #tpu.memory_space<vmem>>, vector<1x1x16xf32>,
      %c0_142 = arith.constant 0 : index
      %c224 = arith.constant 224 : index
      %138 = vector.load %arg5[%c0_142, %c224] : memref<1x256xf32, #tpu.memory_space<vmem>>, vector<1x16xf32>
      %c0_143 = arith.constant 0 : index
      %c17 = arith.constant 17 : index
      %c3_144 = arith.constant 3 : index
      %139 = vector.load %arg7[%c0_143, %c17, %c3_144] : memref<2x22x22xf32, #tpu.memory_space<vmem>>, vector<1x1x16xf32>
      %140 = vector.shape_cast %139 : vector<1x1x16xf32> to vector<1x16xf32>
      %141 = vector.shape_cast %138 : vector<1x16xf32> to vector<1x1x16xf32>
      tpu.vector_store %arg7[%c0_143, %c17, %c3_144], %141 {strides = array<i32>} : memref<2x22x22xf32, #tpu.memory_space<vmem>>, vector<1x1x16xf32>,
      %c0_145 = arith.constant 0 : index
      %c224_146 = arith.constant 224 : index
      %142 = vector.load %arg6[%c0_145, %c224_146] : memref<1x256xf32, #tpu.memory_space<vmem>>, vector<1x16xf32>
      %c1_147 = arith.constant 1 : index
      %c17_148 = arith.constant 17 : index
      %c3_149 = arith.constant 3 : index
      %143 = vector.load %arg7[%c1_147, %c17_148, %c3_149] : memref<2x22x22xf32, #tpu.memory_space<vmem>>, vector<1x1x16xf32>
      %144 = vector.shape_cast %143 : vector<1x1x16xf32> to vector<1x16xf32>
      %145 = vector.shape_cast %142 : vector<1x16xf32> to vector<1x1x16xf32>
      tpu.vector_store %arg7[%c1_147, %c17_148, %c3_149], %145 {strides = array<i32>} : memref<2x22x22xf32, #tpu.memory_space<vmem>>, vector<1x1x16xf32>,
      %c0_150 = arith.constant 0 : index
      %c240 = arith.constant 240 : index
      %146 = vector.load %arg5[%c0_150, %c240] : memref<1x256xf32, #tpu.memory_space<vmem>>, vector<1x16xf32>
      %c0_151 = arith.constant 0 : index
      %c18 = arith.constant 18 : index
      %c3_152 = arith.constant 3 : index
      %147 = vector.load %arg7[%c0_151, %c18, %c3_152] : memref<2x22x22xf32, #tpu.memory_space<vmem>>, vector<1x1x16xf32>
      %148 = vector.shape_cast %147 : vector<1x1x16xf32> to vector<1x16xf32>
      %149 = vector.shape_cast %146 : vector<1x16xf32> to vector<1x1x16xf32>
      tpu.vector_store %arg7[%c0_151, %c18, %c3_152], %149 {strides = array<i32>} : memref<2x22x22xf32, #tpu.memory_space<vmem>>, vector<1x1x16xf32>,
      %c0_153 = arith.constant 0 : index
      %c240_154 = arith.constant 240 : index
      %150 = vector.load %arg6[%c0_153, %c240_154] : memref<1x256xf32, #tpu.memory_space<vmem>>, vector<1x16xf32>
      %c1_155 = arith.constant 1 : index
      %c18_156 = arith.constant 18 : index
      %c3_157 = arith.constant 3 : index
      %151 = vector.load %arg7[%c1_155, %c18_156, %c3_157] : memref<2x22x22xf32, #tpu.memory_space<vmem>>, vector<1x1x16xf32>
      %152 = vector.shape_cast %151 : vector<1x1x16xf32> to vector<1x16xf32>
      %153 = vector.shape_cast %150 : vector<1x16xf32> to vector<1x1x16xf32>
      tpu.vector_store %arg7[%c1_155, %c18_156, %c3_157], %153 {strides = array<i32>} : memref<2x22x22xf32, #tpu.memory_space<vmem>>, vector<1x1x16xf32>,
      %cst_158 = arith.constant 0.000000e+00 : f32
      %154 = vector.broadcast %cst_158 : f32 to vector<16x16xf32>
      %c0_159 = arith.constant 0 : index
      %c0_160 = arith.constant 0 : index
      %c0_161 = arith.constant 0 : index
      %155 = vector.load %arg7[%c0_159, %c0_160, %c0_161] : memref<2x22x22xf32, #tpu.memory_space<vmem>>, vector<1x16x22xf32>
      %156 = vector.shape_cast %155 : vector<1x16x22xf32> to vector<16x22xf32>
      %c0_162 = arith.constant 0 : index
      %157 = memref.load %arg2[%c0_162] : memref<98xf32, #tpu.memory_space<smem>>
      %158 = vector.extract_strided_slice %156 {offsets = [0, 0], sizes = [16, 16], strides = [1, 1]} : vector<16x22xf32> to vector<16x16xf32>
      %159 = vector.broadcast %157 : f32 to vector<16x16xf32>
      %160 = arith.mulf %158, %159 : vector<16x16xf32>
      %161 = arith.addf %154, %160 : vector<16x16xf32>
      %c1_163 = arith.constant 1 : index
      %162 = memref.load %arg2[%c1_163] : memref<98xf32, #tpu.memory_space<smem>>
      %163 = vector.extract_strided_slice %156 {offsets = [0, 1], sizes = [16, 16], strides = [1, 1]} : vector<16x22xf32> to vector<16x16xf32>
      %164 = vector.broadcast %162 : f32 to vector<16x16xf32>
      %165 = arith.mulf %163, %164 : vector<16x16xf32>
      %166 = arith.addf %161, %165 : vector<16x16xf32>
      %c2 = arith.constant 2 : index
      %167 = memref.load %arg2[%c2] : memref<98xf32, #tpu.memory_space<smem>>
      %168 = vector.extract_strided_slice %156 {offsets = [0, 2], sizes = [16, 16], strides = [1, 1]} : vector<16x22xf32> to vector<16x16xf32>
      %169 = vector.broadcast %167 : f32 to vector<16x16xf32>
      %170 = arith.mulf %168, %169 : vector<16x16xf32>
      %171 = arith.addf %166, %170 : vector<16x16xf32>
      %c3_164 = arith.constant 3 : index
      %172 = memref.load %arg2[%c3_164] : memref<98xf32, #tpu.memory_space<smem>>
      %173 = vector.extract_strided_slice %156 {offsets = [0, 3], sizes = [16, 16], strides = [1, 1]} : vector<16x22xf32> to vector<16x16xf32>
      %174 = vector.broadcast %172 : f32 to vector<16x16xf32>
      %175 = arith.mulf %173, %174 : vector<16x16xf32>
      %176 = arith.addf %171, %175 : vector<16x16xf32>
      %c4_165 = arith.constant 4 : index
      %177 = memref.load %arg2[%c4_165] : memref<98xf32, #tpu.memory_space<smem>>
      %178 = vector.extract_strided_slice %156 {offsets = [0, 4], sizes = [16, 16], strides = [1, 1]} : vector<16x22xf32> to vector<16x16xf32>
      %179 = vector.broadcast %177 : f32 to vector<16x16xf32>
      %180 = arith.mulf %178, %179 : vector<16x16xf32>
      %181 = arith.addf %176, %180 : vector<16x16xf32>
      %c5_166 = arith.constant 5 : index
      %182 = memref.load %arg2[%c5_166] : memref<98xf32, #tpu.memory_space<smem>>
      %183 = vector.extract_strided_slice %156 {offsets = [0, 5], sizes = [16, 16], strides = [1, 1]} : vector<16x22xf32> to vector<16x16xf32>
      %184 = vector.broadcast %182 : f32 to vector<16x16xf32>
      %185 = arith.mulf %183, %184 : vector<16x16xf32>
      %186 = arith.addf %181, %185 : vector<16x16xf32>
      %c6_167 = arith.constant 6 : index
      %187 = memref.load %arg2[%c6_167] : memref<98xf32, #tpu.memory_space<smem>>
      %188 = vector.extract_strided_slice %156 {offsets = [0, 6], sizes = [16, 16], strides = [1, 1]} : vector<16x22xf32> to vector<16x16xf32>
      %189 = vector.broadcast %187 : f32 to vector<16x16xf32>
      %190 = arith.mulf %188, %189 : vector<16x16xf32>
      %191 = arith.addf %186, %190 : vector<16x16xf32>
      %c0_168 = arith.constant 0 : index
      %c1_169 = arith.constant 1 : index
      %c0_170 = arith.constant 0 : index
      %192 = vector.load %arg7[%c0_168, %c1_169, %c0_170] : memref<2x22x22xf32, #tpu.memory_space<vmem>>, vector<1x16x22xf32>
      %193 = vector.shape_cast %192 : vector<1x16x22xf32> to vector<16x22xf32>
      %c7_171 = arith.constant 7 : index
      %194 = memref.load %arg2[%c7_171] : memref<98xf32, #tpu.memory_space<smem>>
      %195 = vector.extract_strided_slice %193 {offsets = [0, 0], sizes = [16, 16], strides = [1, 1]} : vector<16x22xf32> to vector<16x16xf32>
      %196 = vector.broadcast %194 : f32 to vector<16x16xf32>
      %197 = arith.mulf %195, %196 : vector<16x16xf32>
      %198 = arith.addf %191, %197 : vector<16x16xf32>
      %c8_172 = arith.constant 8 : index
      %199 = memref.load %arg2[%c8_172] : memref<98xf32, #tpu.memory_space<smem>>
      %200 = vector.extract_strided_slice %193 {offsets = [0, 1], sizes = [16, 16], strides = [1, 1]} : vector<16x22xf32> to vector<16x16xf32>
      %201 = vector.broadcast %199 : f32 to vector<16x16xf32>
      %202 = arith.mulf %200, %201 : vector<16x16xf32>
      %203 = arith.addf %198, %202 : vector<16x16xf32>
      %c9_173 = arith.constant 9 : index
      %204 = memref.load %arg2[%c9_173] : memref<98xf32, #tpu.memory_space<smem>>
      %205 = vector.extract_strided_slice %193 {offsets = [0, 2], sizes = [16, 16], strides = [1, 1]} : vector<16x22xf32> to vector<16x16xf32>
      %206 = vector.broadcast %204 : f32 to vector<16x16xf32>
      %207 = arith.mulf %205, %206 : vector<16x16xf32>
      %208 = arith.addf %203, %207 : vector<16x16xf32>
      %c10_174 = arith.constant 10 : index
      %209 = memref.load %arg2[%c10_174] : memref<98xf32, #tpu.memory_space<smem>>
      %210 = vector.extract_strided_slice %193 {offsets = [0, 3], sizes = [16, 16], strides = [1, 1]} : vector<16x22xf32> to vector<16x16xf32>
      %211 = vector.broadcast %209 : f32 to vector<16x16xf32>
      %212 = arith.mulf %210, %211 : vector<16x16xf32>
      %213 = arith.addf %208, %212 : vector<16x16xf32>
      %c11_175 = arith.constant 11 : index
      %214 = memref.load %arg2[%c11_175] : memref<98xf32, #tpu.memory_space<smem>>
      %215 = vector.extract_strided_slice %193 {offsets = [0, 4], sizes = [16, 16], strides = [1, 1]} : vector<16x22xf32> to vector<16x16xf32>
      %216 = vector.broadcast %214 : f32 to vector<16x16xf32>
      %217 = arith.mulf %215, %216 : vector<16x16xf32>
      %218 = arith.addf %213, %217 : vector<16x16xf32>
      %c12_176 = arith.constant 12 : index
      %219 = memref.load %arg2[%c12_176] : memref<98xf32, #tpu.memory_space<smem>>
      %220 = vector.extract_strided_slice %193 {offsets = [0, 5], sizes = [16, 16], strides = [1, 1]} : vector<16x22xf32> to vector<16x16xf32>
      %221 = vector.broadcast %219 : f32 to vector<16x16xf32>
      %222 = arith.mulf %220, %221 : vector<16x16xf32>
      %223 = arith.addf %218, %222 : vector<16x16xf32>
      %c13_177 = arith.constant 13 : index
      %224 = memref.load %arg2[%c13_177] : memref<98xf32, #tpu.memory_space<smem>>
      %225 = vector.extract_strided_slice %193 {offsets = [0, 6], sizes = [16, 16], strides = [1, 1]} : vector<16x22xf32> to vector<16x16xf32>
      %226 = vector.broadcast %224 : f32 to vector<16x16xf32>
      %227 = arith.mulf %225, %226 : vector<16x16xf32>
      %228 = arith.addf %223, %227 : vector<16x16xf32>
      %c0_178 = arith.constant 0 : index
      %c2_179 = arith.constant 2 : index
      %c0_180 = arith.constant 0 : index
      %229 = vector.load %arg7[%c0_178, %c2_179, %c0_180] : memref<2x22x22xf32, #tpu.memory_space<vmem>>, vector<1x16x22xf32>
      %230 = vector.shape_cast %229 : vector<1x16x22xf32> to vector<16x22xf32>
      %c14_181 = arith.constant 14 : index
      %231 = memref.load %arg2[%c14_181] : memref<98xf32, #tpu.memory_space<smem>>
      %232 = vector.extract_strided_slice %230 {offsets = [0, 0], sizes = [16, 16], strides = [1, 1]} : vector<16x22xf32> to vector<16x16xf32>
      %233 = vector.broadcast %231 : f32 to vector<16x16xf32>
      %234 = arith.mulf %232, %233 : vector<16x16xf32>
      %235 = arith.addf %228, %234 : vector<16x16xf32>
      %c15_182 = arith.constant 15 : index
      %236 = memref.load %arg2[%c15_182] : memref<98xf32, #tpu.memory_space<smem>>
      %237 = vector.extract_strided_slice %230 {offsets = [0, 1], sizes = [16, 16], strides = [1, 1]} : vector<16x22xf32> to vector<16x16xf32>
      %238 = vector.broadcast %236 : f32 to vector<16x16xf32>
      %239 = arith.mulf %237, %238 : vector<16x16xf32>
      %240 = arith.addf %235, %239 : vector<16x16xf32>
      %c16_183 = arith.constant 16 : index
      %241 = memref.load %arg2[%c16_183] : memref<98xf32, #tpu.memory_space<smem>>
      %242 = vector.extract_strided_slice %230 {offsets = [0, 2], sizes = [16, 16], strides = [1, 1]} : vector<16x22xf32> to vector<16x16xf32>
      %243 = vector.broadcast %241 : f32 to vector<16x16xf32>
      %244 = arith.mulf %242, %243 : vector<16x16xf32>
      %245 = arith.addf %240, %244 : vector<16x16xf32>
      %c17_184 = arith.constant 17 : index
      %246 = memref.load %arg2[%c17_184] : memref<98xf32, #tpu.memory_space<smem>>
      %247 = vector.extract_strided_slice %230 {offsets = [0, 3], sizes = [16, 16], strides = [1, 1]} : vector<16x22xf32> to vector<16x16xf32>
      %248 = vector.broadcast %246 : f32 to vector<16x16xf32>
      %249 = arith.mulf %247, %248 : vector<16x16xf32>
      %250 = arith.addf %245, %249 : vector<16x16xf32>
      %c18_185 = arith.constant 18 : index
      %251 = memref.load %arg2[%c18_185] : memref<98xf32, #tpu.memory_space<smem>>
      %252 = vector.extract_strided_slice %230 {offsets = [0, 4], sizes = [16, 16], strides = [1, 1]} : vector<16x22xf32> to vector<16x16xf32>
      %253 = vector.broadcast %251 : f32 to vector<16x16xf32>
      %254 = arith.mulf %252, %253 : vector<16x16xf32>
      %255 = arith.addf %250, %254 : vector<16x16xf32>
      %c19_186 = arith.constant 19 : index
      %256 = memref.load %arg2[%c19_186] : memref<98xf32, #tpu.memory_space<smem>>
      %257 = vector.extract_strided_slice %230 {offsets = [0, 5], sizes = [16, 16], strides = [1, 1]} : vector<16x22xf32> to vector<16x16xf32>
      %258 = vector.broadcast %256 : f32 to vector<16x16xf32>
      %259 = arith.mulf %257, %258 : vector<16x16xf32>
      %260 = arith.addf %255, %259 : vector<16x16xf32>
      %c20 = arith.constant 20 : index
      %261 = memref.load %arg2[%c20] : memref<98xf32, #tpu.memory_space<smem>>
      %262 = vector.extract_strided_slice %230 {offsets = [0, 6], sizes = [16, 16], strides = [1, 1]} : vector<16x22xf32> to vector<16x16xf32>
      %263 = vector.broadcast %261 : f32 to vector<16x16xf32>
      %264 = arith.mulf %262, %263 : vector<16x16xf32>
      %265 = arith.addf %260, %264 : vector<16x16xf32>
      %c0_187 = arith.constant 0 : index
      %c3_188 = arith.constant 3 : index
      %c0_189 = arith.constant 0 : index
      %266 = vector.load %arg7[%c0_187, %c3_188, %c0_189] : memref<2x22x22xf32, #tpu.memory_space<vmem>>, vector<1x16x22xf32>
      %267 = vector.shape_cast %266 : vector<1x16x22xf32> to vector<16x22xf32>
      %c21 = arith.constant 21 : index
      %268 = memref.load %arg2[%c21] : memref<98xf32, #tpu.memory_space<smem>>
      %269 = vector.extract_strided_slice %267 {offsets = [0, 0], sizes = [16, 16], strides = [1, 1]} : vector<16x22xf32> to vector<16x16xf32>
      %270 = vector.broadcast %268 : f32 to vector<16x16xf32>
      %271 = arith.mulf %269, %270 : vector<16x16xf32>
      %272 = arith.addf %265, %271 : vector<16x16xf32>
      %c22 = arith.constant 22 : index
      %273 = memref.load %arg2[%c22] : memref<98xf32, #tpu.memory_space<smem>>
      %274 = vector.extract_strided_slice %267 {offsets = [0, 1], sizes = [16, 16], strides = [1, 1]} : vector<16x22xf32> to vector<16x16xf32>
      %275 = vector.broadcast %273 : f32 to vector<16x16xf32>
      %276 = arith.mulf %274, %275 : vector<16x16xf32>
      %277 = arith.addf %272, %276 : vector<16x16xf32>
      %c23 = arith.constant 23 : index
      %278 = memref.load %arg2[%c23] : memref<98xf32, #tpu.memory_space<smem>>
      %279 = vector.extract_strided_slice %267 {offsets = [0, 2], sizes = [16, 16], strides = [1, 1]} : vector<16x22xf32> to vector<16x16xf32>
      %280 = vector.broadcast %278 : f32 to vector<16x16xf32>
      %281 = arith.mulf %279, %280 : vector<16x16xf32>
      %282 = arith.addf %277, %281 : vector<16x16xf32>
      %c24 = arith.constant 24 : index
      %283 = memref.load %arg2[%c24] : memref<98xf32, #tpu.memory_space<smem>>
      %284 = vector.extract_strided_slice %267 {offsets = [0, 3], sizes = [16, 16], strides = [1, 1]} : vector<16x22xf32> to vector<16x16xf32>
      %285 = vector.broadcast %283 : f32 to vector<16x16xf32>
      %286 = arith.mulf %284, %285 : vector<16x16xf32>
      %287 = arith.addf %282, %286 : vector<16x16xf32>
      %c25 = arith.constant 25 : index
      %288 = memref.load %arg2[%c25] : memref<98xf32, #tpu.memory_space<smem>>
      %289 = vector.extract_strided_slice %267 {offsets = [0, 4], sizes = [16, 16], strides = [1, 1]} : vector<16x22xf32> to vector<16x16xf32>
      %290 = vector.broadcast %288 : f32 to vector<16x16xf32>
      %291 = arith.mulf %289, %290 : vector<16x16xf32>
      %292 = arith.addf %287, %291 : vector<16x16xf32>
      %c26 = arith.constant 26 : index
      %293 = memref.load %arg2[%c26] : memref<98xf32, #tpu.memory_space<smem>>
      %294 = vector.extract_strided_slice %267 {offsets = [0, 5], sizes = [16, 16], strides = [1, 1]} : vector<16x22xf32> to vector<16x16xf32>
      %295 = vector.broadcast %293 : f32 to vector<16x16xf32>
      %296 = arith.mulf %294, %295 : vector<16x16xf32>
      %297 = arith.addf %292, %296 : vector<16x16xf32>
      %c27 = arith.constant 27 : index
      %298 = memref.load %arg2[%c27] : memref<98xf32, #tpu.memory_space<smem>>
      %299 = vector.extract_strided_slice %267 {offsets = [0, 6], sizes = [16, 16], strides = [1, 1]} : vector<16x22xf32> to vector<16x16xf32>
      %300 = vector.broadcast %298 : f32 to vector<16x16xf32>
      %301 = arith.mulf %299, %300 : vector<16x16xf32>
      %302 = arith.addf %297, %301 : vector<16x16xf32>
      %c0_190 = arith.constant 0 : index
      %c4_191 = arith.constant 4 : index
      %c0_192 = arith.constant 0 : index
      %303 = vector.load %arg7[%c0_190, %c4_191, %c0_192] : memref<2x22x22xf32, #tpu.memory_space<vmem>>, vector<1x16x22xf32>
      %304 = vector.shape_cast %303 : vector<1x16x22xf32> to vector<16x22xf32>
      %c28 = arith.constant 28 : index
      %305 = memref.load %arg2[%c28] : memref<98xf32, #tpu.memory_space<smem>>
      %306 = vector.extract_strided_slice %304 {offsets = [0, 0], sizes = [16, 16], strides = [1, 1]} : vector<16x22xf32> to vector<16x16xf32>
      %307 = vector.broadcast %305 : f32 to vector<16x16xf32>
      %308 = arith.mulf %306, %307 : vector<16x16xf32>
      %309 = arith.addf %302, %308 : vector<16x16xf32>
      %c29 = arith.constant 29 : index
      %310 = memref.load %arg2[%c29] : memref<98xf32, #tpu.memory_space<smem>>
      %311 = vector.extract_strided_slice %304 {offsets = [0, 1], sizes = [16, 16], strides = [1, 1]} : vector<16x22xf32> to vector<16x16xf32>
      %312 = vector.broadcast %310 : f32 to vector<16x16xf32>
      %313 = arith.mulf %311, %312 : vector<16x16xf32>
      %314 = arith.addf %309, %313 : vector<16x16xf32>
      %c30 = arith.constant 30 : index
      %315 = memref.load %arg2[%c30] : memref<98xf32, #tpu.memory_space<smem>>
      %316 = vector.extract_strided_slice %304 {offsets = [0, 2], sizes = [16, 16], strides = [1, 1]} : vector<16x22xf32> to vector<16x16xf32>
      %317 = vector.broadcast %315 : f32 to vector<16x16xf32>
      %318 = arith.mulf %316, %317 : vector<16x16xf32>
      %319 = arith.addf %314, %318 : vector<16x16xf32>
      %c31 = arith.constant 31 : index
      %320 = memref.load %arg2[%c31] : memref<98xf32, #tpu.memory_space<smem>>
      %321 = vector.extract_strided_slice %304 {offsets = [0, 3], sizes = [16, 16], strides = [1, 1]} : vector<16x22xf32> to vector<16x16xf32>
      %322 = vector.broadcast %320 : f32 to vector<16x16xf32>
      %323 = arith.mulf %321, %322 : vector<16x16xf32>
      %324 = arith.addf %319, %323 : vector<16x16xf32>
      %c32_193 = arith.constant 32 : index
      %325 = memref.load %arg2[%c32_193] : memref<98xf32, #tpu.memory_space<smem>>
      %326 = vector.extract_strided_slice %304 {offsets = [0, 4], sizes = [16, 16], strides = [1, 1]} : vector<16x22xf32> to vector<16x16xf32>
      %327 = vector.broadcast %325 : f32 to vector<16x16xf32>
      %328 = arith.mulf %326, %327 : vector<16x16xf32>
      %329 = arith.addf %324, %328 : vector<16x16xf32>
      %c33 = arith.constant 33 : index
      %330 = memref.load %arg2[%c33] : memref<98xf32, #tpu.memory_space<smem>>
      %331 = vector.extract_strided_slice %304 {offsets = [0, 5], sizes = [16, 16], strides = [1, 1]} : vector<16x22xf32> to vector<16x16xf32>
      %332 = vector.broadcast %330 : f32 to vector<16x16xf32>
      %333 = arith.mulf %331, %332 : vector<16x16xf32>
      %334 = arith.addf %329, %333 : vector<16x16xf32>
      %c34 = arith.constant 34 : index
      %335 = memref.load %arg2[%c34] : memref<98xf32, #tpu.memory_space<smem>>
      %336 = vector.extract_strided_slice %304 {offsets = [0, 6], sizes = [16, 16], strides = [1, 1]} : vector<16x22xf32> to vector<16x16xf32>
      %337 = vector.broadcast %335 : f32 to vector<16x16xf32>
      %338 = arith.mulf %336, %337 : vector<16x16xf32>
      %339 = arith.addf %334, %338 : vector<16x16xf32>
      %c0_194 = arith.constant 0 : index
      %c5_195 = arith.constant 5 : index
      %c0_196 = arith.constant 0 : index
      %340 = vector.load %arg7[%c0_194, %c5_195, %c0_196] : memref<2x22x22xf32, #tpu.memory_space<vmem>>, vector<1x16x22xf32>
      %341 = vector.shape_cast %340 : vector<1x16x22xf32> to vector<16x22xf32>
      %c35 = arith.constant 35 : index
      %342 = memref.load %arg2[%c35] : memref<98xf32, #tpu.memory_space<smem>>
      %343 = vector.extract_strided_slice %341 {offsets = [0, 0], sizes = [16, 16], strides = [1, 1]} : vector<16x22xf32> to vector<16x16xf32>
      %344 = vector.broadcast %342 : f32 to vector<16x16xf32>
      %345 = arith.mulf %343, %344 : vector<16x16xf32>
      %346 = arith.addf %339, %345 : vector<16x16xf32>
      %c36 = arith.constant 36 : index
      %347 = memref.load %arg2[%c36] : memref<98xf32, #tpu.memory_space<smem>>
      %348 = vector.extract_strided_slice %341 {offsets = [0, 1], sizes = [16, 16], strides = [1, 1]} : vector<16x22xf32> to vector<16x16xf32>
      %349 = vector.broadcast %347 : f32 to vector<16x16xf32>
      %350 = arith.mulf %348, %349 : vector<16x16xf32>
      %351 = arith.addf %346, %350 : vector<16x16xf32>
      %c37 = arith.constant 37 : index
      %352 = memref.load %arg2[%c37] : memref<98xf32, #tpu.memory_space<smem>>
      %353 = vector.extract_strided_slice %341 {offsets = [0, 2], sizes = [16, 16], strides = [1, 1]} : vector<16x22xf32> to vector<16x16xf32>
      %354 = vector.broadcast %352 : f32 to vector<16x16xf32>
      %355 = arith.mulf %353, %354 : vector<16x16xf32>
      %356 = arith.addf %351, %355 : vector<16x16xf32>
      %c38 = arith.constant 38 : index
      %357 = memref.load %arg2[%c38] : memref<98xf32, #tpu.memory_space<smem>>
      %358 = vector.extract_strided_slice %341 {offsets = [0, 3], sizes = [16, 16], strides = [1, 1]} : vector<16x22xf32> to vector<16x16xf32>
      %359 = vector.broadcast %357 : f32 to vector<16x16xf32>
      %360 = arith.mulf %358, %359 : vector<16x16xf32>
      %361 = arith.addf %356, %360 : vector<16x16xf32>
      %c39 = arith.constant 39 : index
      %362 = memref.load %arg2[%c39] : memref<98xf32, #tpu.memory_space<smem>>
      %363 = vector.extract_strided_slice %341 {offsets = [0, 4], sizes = [16, 16], strides = [1, 1]} : vector<16x22xf32> to vector<16x16xf32>
      %364 = vector.broadcast %362 : f32 to vector<16x16xf32>
      %365 = arith.mulf %363, %364 : vector<16x16xf32>
      %366 = arith.addf %361, %365 : vector<16x16xf32>
      %c40 = arith.constant 40 : index
      %367 = memref.load %arg2[%c40] : memref<98xf32, #tpu.memory_space<smem>>
      %368 = vector.extract_strided_slice %341 {offsets = [0, 5], sizes = [16, 16], strides = [1, 1]} : vector<16x22xf32> to vector<16x16xf32>
      %369 = vector.broadcast %367 : f32 to vector<16x16xf32>
      %370 = arith.mulf %368, %369 : vector<16x16xf32>
      %371 = arith.addf %366, %370 : vector<16x16xf32>
      %c41 = arith.constant 41 : index
      %372 = memref.load %arg2[%c41] : memref<98xf32, #tpu.memory_space<smem>>
      %373 = vector.extract_strided_slice %341 {offsets = [0, 6], sizes = [16, 16], strides = [1, 1]} : vector<16x22xf32> to vector<16x16xf32>
      %374 = vector.broadcast %372 : f32 to vector<16x16xf32>
      %375 = arith.mulf %373, %374 : vector<16x16xf32>
      %376 = arith.addf %371, %375 : vector<16x16xf32>
      %c0_197 = arith.constant 0 : index
      %c6_198 = arith.constant 6 : index
      %c0_199 = arith.constant 0 : index
      %377 = vector.load %arg7[%c0_197, %c6_198, %c0_199] : memref<2x22x22xf32, #tpu.memory_space<vmem>>, vector<1x16x22xf32>
      %378 = vector.shape_cast %377 : vector<1x16x22xf32> to vector<16x22xf32>
      %c42 = arith.constant 42 : index
      %379 = memref.load %arg2[%c42] : memref<98xf32, #tpu.memory_space<smem>>
      %380 = vector.extract_strided_slice %378 {offsets = [0, 0], sizes = [16, 16], strides = [1, 1]} : vector<16x22xf32> to vector<16x16xf32>
      %381 = vector.broadcast %379 : f32 to vector<16x16xf32>
      %382 = arith.mulf %380, %381 : vector<16x16xf32>
      %383 = arith.addf %376, %382 : vector<16x16xf32>
      %c43 = arith.constant 43 : index
      %384 = memref.load %arg2[%c43] : memref<98xf32, #tpu.memory_space<smem>>
      %385 = vector.extract_strided_slice %378 {offsets = [0, 1], sizes = [16, 16], strides = [1, 1]} : vector<16x22xf32> to vector<16x16xf32>
      %386 = vector.broadcast %384 : f32 to vector<16x16xf32>
      %387 = arith.mulf %385, %386 : vector<16x16xf32>
      %388 = arith.addf %383, %387 : vector<16x16xf32>
      %c44 = arith.constant 44 : index
      %389 = memref.load %arg2[%c44] : memref<98xf32, #tpu.memory_space<smem>>
      %390 = vector.extract_strided_slice %378 {offsets = [0, 2], sizes = [16, 16], strides = [1, 1]} : vector<16x22xf32> to vector<16x16xf32>
      %391 = vector.broadcast %389 : f32 to vector<16x16xf32>
      %392 = arith.mulf %390, %391 : vector<16x16xf32>
      %393 = arith.addf %388, %392 : vector<16x16xf32>
      %c45 = arith.constant 45 : index
      %394 = memref.load %arg2[%c45] : memref<98xf32, #tpu.memory_space<smem>>
      %395 = vector.extract_strided_slice %378 {offsets = [0, 3], sizes = [16, 16], strides = [1, 1]} : vector<16x22xf32> to vector<16x16xf32>
      %396 = vector.broadcast %394 : f32 to vector<16x16xf32>
      %397 = arith.mulf %395, %396 : vector<16x16xf32>
      %398 = arith.addf %393, %397 : vector<16x16xf32>
      %c46 = arith.constant 46 : index
      %399 = memref.load %arg2[%c46] : memref<98xf32, #tpu.memory_space<smem>>
      %400 = vector.extract_strided_slice %378 {offsets = [0, 4], sizes = [16, 16], strides = [1, 1]} : vector<16x22xf32> to vector<16x16xf32>
      %401 = vector.broadcast %399 : f32 to vector<16x16xf32>
      %402 = arith.mulf %400, %401 : vector<16x16xf32>
      %403 = arith.addf %398, %402 : vector<16x16xf32>
      %c47 = arith.constant 47 : index
      %404 = memref.load %arg2[%c47] : memref<98xf32, #tpu.memory_space<smem>>
      %405 = vector.extract_strided_slice %378 {offsets = [0, 5], sizes = [16, 16], strides = [1, 1]} : vector<16x22xf32> to vector<16x16xf32>
      %406 = vector.broadcast %404 : f32 to vector<16x16xf32>
      %407 = arith.mulf %405, %406 : vector<16x16xf32>
      %408 = arith.addf %403, %407 : vector<16x16xf32>
      %c48_200 = arith.constant 48 : index
      %409 = memref.load %arg2[%c48_200] : memref<98xf32, #tpu.memory_space<smem>>
      %410 = vector.extract_strided_slice %378 {offsets = [0, 6], sizes = [16, 16], strides = [1, 1]} : vector<16x22xf32> to vector<16x16xf32>
      %411 = vector.broadcast %409 : f32 to vector<16x16xf32>
      %412 = arith.mulf %410, %411 : vector<16x16xf32>
      %413 = arith.addf %408, %412 : vector<16x16xf32>
      %c1_201 = arith.constant 1 : index
      %c0_202 = arith.constant 0 : index
      %c0_203 = arith.constant 0 : index
      %414 = vector.load %arg7[%c1_201, %c0_202, %c0_203] : memref<2x22x22xf32, #tpu.memory_space<vmem>>, vector<1x16x22xf32>
      %415 = vector.shape_cast %414 : vector<1x16x22xf32> to vector<16x22xf32>
      %c49 = arith.constant 49 : index
      %416 = memref.load %arg2[%c49] : memref<98xf32, #tpu.memory_space<smem>>
      %417 = vector.extract_strided_slice %415 {offsets = [0, 0], sizes = [16, 16], strides = [1, 1]} : vector<16x22xf32> to vector<16x16xf32>
      %418 = vector.broadcast %416 : f32 to vector<16x16xf32>
      %419 = arith.mulf %417, %418 : vector<16x16xf32>
      %420 = arith.addf %413, %419 : vector<16x16xf32>
      %c50 = arith.constant 50 : index
      %421 = memref.load %arg2[%c50] : memref<98xf32, #tpu.memory_space<smem>>
      %422 = vector.extract_strided_slice %415 {offsets = [0, 1], sizes = [16, 16], strides = [1, 1]} : vector<16x22xf32> to vector<16x16xf32>
      %423 = vector.broadcast %421 : f32 to vector<16x16xf32>
      %424 = arith.mulf %422, %423 : vector<16x16xf32>
      %425 = arith.addf %420, %424 : vector<16x16xf32>
      %c51 = arith.constant 51 : index
      %426 = memref.load %arg2[%c51] : memref<98xf32, #tpu.memory_space<smem>>
      %427 = vector.extract_strided_slice %415 {offsets = [0, 2], sizes = [16, 16], strides = [1, 1]} : vector<16x22xf32> to vector<16x16xf32>
      %428 = vector.broadcast %426 : f32 to vector<16x16xf32>
      %429 = arith.mulf %427, %428 : vector<16x16xf32>
      %430 = arith.addf %425, %429 : vector<16x16xf32>
      %c52 = arith.constant 52 : index
      %431 = memref.load %arg2[%c52] : memref<98xf32, #tpu.memory_space<smem>>
      %432 = vector.extract_strided_slice %415 {offsets = [0, 3], sizes = [16, 16], strides = [1, 1]} : vector<16x22xf32> to vector<16x16xf32>
      %433 = vector.broadcast %431 : f32 to vector<16x16xf32>
      %434 = arith.mulf %432, %433 : vector<16x16xf32>
      %435 = arith.addf %430, %434 : vector<16x16xf32>
      %c53 = arith.constant 53 : index
      %436 = memref.load %arg2[%c53] : memref<98xf32, #tpu.memory_space<smem>>
      %437 = vector.extract_strided_slice %415 {offsets = [0, 4], sizes = [16, 16], strides = [1, 1]} : vector<16x22xf32> to vector<16x16xf32>
      %438 = vector.broadcast %436 : f32 to vector<16x16xf32>
      %439 = arith.mulf %437, %438 : vector<16x16xf32>
      %440 = arith.addf %435, %439 : vector<16x16xf32>
      %c54 = arith.constant 54 : index
      %441 = memref.load %arg2[%c54] : memref<98xf32, #tpu.memory_space<smem>>
      %442 = vector.extract_strided_slice %415 {offsets = [0, 5], sizes = [16, 16], strides = [1, 1]} : vector<16x22xf32> to vector<16x16xf32>
      %443 = vector.broadcast %441 : f32 to vector<16x16xf32>
      %444 = arith.mulf %442, %443 : vector<16x16xf32>
      %445 = arith.addf %440, %444 : vector<16x16xf32>
      %c55 = arith.constant 55 : index
      %446 = memref.load %arg2[%c55] : memref<98xf32, #tpu.memory_space<smem>>
      %447 = vector.extract_strided_slice %415 {offsets = [0, 6], sizes = [16, 16], strides = [1, 1]} : vector<16x22xf32> to vector<16x16xf32>
      %448 = vector.broadcast %446 : f32 to vector<16x16xf32>
      %449 = arith.mulf %447, %448 : vector<16x16xf32>
      %450 = arith.addf %445, %449 : vector<16x16xf32>
      %c1_204 = arith.constant 1 : index
      %c1_205 = arith.constant 1 : index
      %c0_206 = arith.constant 0 : index
      %451 = vector.load %arg7[%c1_204, %c1_205, %c0_206] : memref<2x22x22xf32, #tpu.memory_space<vmem>>, vector<1x16x22xf32>
      %452 = vector.shape_cast %451 : vector<1x16x22xf32> to vector<16x22xf32>
      %c56 = arith.constant 56 : index
      %453 = memref.load %arg2[%c56] : memref<98xf32, #tpu.memory_space<smem>>
      %454 = vector.extract_strided_slice %452 {offsets = [0, 0], sizes = [16, 16], strides = [1, 1]} : vector<16x22xf32> to vector<16x16xf32>
      %455 = vector.broadcast %453 : f32 to vector<16x16xf32>
      %456 = arith.mulf %454, %455 : vector<16x16xf32>
      %457 = arith.addf %450, %456 : vector<16x16xf32>
      %c57 = arith.constant 57 : index
      %458 = memref.load %arg2[%c57] : memref<98xf32, #tpu.memory_space<smem>>
      %459 = vector.extract_strided_slice %452 {offsets = [0, 1], sizes = [16, 16], strides = [1, 1]} : vector<16x22xf32> to vector<16x16xf32>
      %460 = vector.broadcast %458 : f32 to vector<16x16xf32>
      %461 = arith.mulf %459, %460 : vector<16x16xf32>
      %462 = arith.addf %457, %461 : vector<16x16xf32>
      %c58 = arith.constant 58 : index
      %463 = memref.load %arg2[%c58] : memref<98xf32, #tpu.memory_space<smem>>
      %464 = vector.extract_strided_slice %452 {offsets = [0, 2], sizes = [16, 16], strides = [1, 1]} : vector<16x22xf32> to vector<16x16xf32>
      %465 = vector.broadcast %463 : f32 to vector<16x16xf32>
      %466 = arith.mulf %464, %465 : vector<16x16xf32>
      %467 = arith.addf %462, %466 : vector<16x16xf32>
      %c59 = arith.constant 59 : index
      %468 = memref.load %arg2[%c59] : memref<98xf32, #tpu.memory_space<smem>>
      %469 = vector.extract_strided_slice %452 {offsets = [0, 3], sizes = [16, 16], strides = [1, 1]} : vector<16x22xf32> to vector<16x16xf32>
      %470 = vector.broadcast %468 : f32 to vector<16x16xf32>
      %471 = arith.mulf %469, %470 : vector<16x16xf32>
      %472 = arith.addf %467, %471 : vector<16x16xf32>
      %c60 = arith.constant 60 : index
      %473 = memref.load %arg2[%c60] : memref<98xf32, #tpu.memory_space<smem>>
      %474 = vector.extract_strided_slice %452 {offsets = [0, 4], sizes = [16, 16], strides = [1, 1]} : vector<16x22xf32> to vector<16x16xf32>
      %475 = vector.broadcast %473 : f32 to vector<16x16xf32>
      %476 = arith.mulf %474, %475 : vector<16x16xf32>
      %477 = arith.addf %472, %476 : vector<16x16xf32>
      %c61 = arith.constant 61 : index
      %478 = memref.load %arg2[%c61] : memref<98xf32, #tpu.memory_space<smem>>
      %479 = vector.extract_strided_slice %452 {offsets = [0, 5], sizes = [16, 16], strides = [1, 1]} : vector<16x22xf32> to vector<16x16xf32>
      %480 = vector.broadcast %478 : f32 to vector<16x16xf32>
      %481 = arith.mulf %479, %480 : vector<16x16xf32>
      %482 = arith.addf %477, %481 : vector<16x16xf32>
      %c62 = arith.constant 62 : index
      %483 = memref.load %arg2[%c62] : memref<98xf32, #tpu.memory_space<smem>>
      %484 = vector.extract_strided_slice %452 {offsets = [0, 6], sizes = [16, 16], strides = [1, 1]} : vector<16x22xf32> to vector<16x16xf32>
      %485 = vector.broadcast %483 : f32 to vector<16x16xf32>
      %486 = arith.mulf %484, %485 : vector<16x16xf32>
      %487 = arith.addf %482, %486 : vector<16x16xf32>
      %c1_207 = arith.constant 1 : index
      %c2_208 = arith.constant 2 : index
      %c0_209 = arith.constant 0 : index
      %488 = vector.load %arg7[%c1_207, %c2_208, %c0_209] : memref<2x22x22xf32, #tpu.memory_space<vmem>>, vector<1x16x22xf32>
      %489 = vector.shape_cast %488 : vector<1x16x22xf32> to vector<16x22xf32>
      %c63 = arith.constant 63 : index
      %490 = memref.load %arg2[%c63] : memref<98xf32, #tpu.memory_space<smem>>
      %491 = vector.extract_strided_slice %489 {offsets = [0, 0], sizes = [16, 16], strides = [1, 1]} : vector<16x22xf32> to vector<16x16xf32>
      %492 = vector.broadcast %490 : f32 to vector<16x16xf32>
      %493 = arith.mulf %491, %492 : vector<16x16xf32>
      %494 = arith.addf %487, %493 : vector<16x16xf32>
      %c64_210 = arith.constant 64 : index
      %495 = memref.load %arg2[%c64_210] : memref<98xf32, #tpu.memory_space<smem>>
      %496 = vector.extract_strided_slice %489 {offsets = [0, 1], sizes = [16, 16], strides = [1, 1]} : vector<16x22xf32> to vector<16x16xf32>
      %497 = vector.broadcast %495 : f32 to vector<16x16xf32>
      %498 = arith.mulf %496, %497 : vector<16x16xf32>
      %499 = arith.addf %494, %498 : vector<16x16xf32>
      %c65 = arith.constant 65 : index
      %500 = memref.load %arg2[%c65] : memref<98xf32, #tpu.memory_space<smem>>
      %501 = vector.extract_strided_slice %489 {offsets = [0, 2], sizes = [16, 16], strides = [1, 1]} : vector<16x22xf32> to vector<16x16xf32>
      %502 = vector.broadcast %500 : f32 to vector<16x16xf32>
      %503 = arith.mulf %501, %502 : vector<16x16xf32>
      %504 = arith.addf %499, %503 : vector<16x16xf32>
      %c66 = arith.constant 66 : index
      %505 = memref.load %arg2[%c66] : memref<98xf32, #tpu.memory_space<smem>>
      %506 = vector.extract_strided_slice %489 {offsets = [0, 3], sizes = [16, 16], strides = [1, 1]} : vector<16x22xf32> to vector<16x16xf32>
      %507 = vector.broadcast %505 : f32 to vector<16x16xf32>
      %508 = arith.mulf %506, %507 : vector<16x16xf32>
      %509 = arith.addf %504, %508 : vector<16x16xf32>
      %c67 = arith.constant 67 : index
      %510 = memref.load %arg2[%c67] : memref<98xf32, #tpu.memory_space<smem>>
      %511 = vector.extract_strided_slice %489 {offsets = [0, 4], sizes = [16, 16], strides = [1, 1]} : vector<16x22xf32> to vector<16x16xf32>
      %512 = vector.broadcast %510 : f32 to vector<16x16xf32>
      %513 = arith.mulf %511, %512 : vector<16x16xf32>
      %514 = arith.addf %509, %513 : vector<16x16xf32>
      %c68 = arith.constant 68 : index
      %515 = memref.load %arg2[%c68] : memref<98xf32, #tpu.memory_space<smem>>
      %516 = vector.extract_strided_slice %489 {offsets = [0, 5], sizes = [16, 16], strides = [1, 1]} : vector<16x22xf32> to vector<16x16xf32>
      %517 = vector.broadcast %515 : f32 to vector<16x16xf32>
      %518 = arith.mulf %516, %517 : vector<16x16xf32>
      %519 = arith.addf %514, %518 : vector<16x16xf32>
      %c69 = arith.constant 69 : index
      %520 = memref.load %arg2[%c69] : memref<98xf32, #tpu.memory_space<smem>>
      %521 = vector.extract_strided_slice %489 {offsets = [0, 6], sizes = [16, 16], strides = [1, 1]} : vector<16x22xf32> to vector<16x16xf32>
      %522 = vector.broadcast %520 : f32 to vector<16x16xf32>
      %523 = arith.mulf %521, %522 : vector<16x16xf32>
      %524 = arith.addf %519, %523 : vector<16x16xf32>
      %c1_211 = arith.constant 1 : index
      %c3_212 = arith.constant 3 : index
      %c0_213 = arith.constant 0 : index
      %525 = vector.load %arg7[%c1_211, %c3_212, %c0_213] : memref<2x22x22xf32, #tpu.memory_space<vmem>>, vector<1x16x22xf32>
      %526 = vector.shape_cast %525 : vector<1x16x22xf32> to vector<16x22xf32>
      %c70 = arith.constant 70 : index
      %527 = memref.load %arg2[%c70] : memref<98xf32, #tpu.memory_space<smem>>
      %528 = vector.extract_strided_slice %526 {offsets = [0, 0], sizes = [16, 16], strides = [1, 1]} : vector<16x22xf32> to vector<16x16xf32>
      %529 = vector.broadcast %527 : f32 to vector<16x16xf32>
      %530 = arith.mulf %528, %529 : vector<16x16xf32>
      %531 = arith.addf %524, %530 : vector<16x16xf32>
      %c71 = arith.constant 71 : index
      %532 = memref.load %arg2[%c71] : memref<98xf32, #tpu.memory_space<smem>>
      %533 = vector.extract_strided_slice %526 {offsets = [0, 1], sizes = [16, 16], strides = [1, 1]} : vector<16x22xf32> to vector<16x16xf32>
      %534 = vector.broadcast %532 : f32 to vector<16x16xf32>
      %535 = arith.mulf %533, %534 : vector<16x16xf32>
      %536 = arith.addf %531, %535 : vector<16x16xf32>
      %c72 = arith.constant 72 : index
      %537 = memref.load %arg2[%c72] : memref<98xf32, #tpu.memory_space<smem>>
      %538 = vector.extract_strided_slice %526 {offsets = [0, 2], sizes = [16, 16], strides = [1, 1]} : vector<16x22xf32> to vector<16x16xf32>
      %539 = vector.broadcast %537 : f32 to vector<16x16xf32>
      %540 = arith.mulf %538, %539 : vector<16x16xf32>
      %541 = arith.addf %536, %540 : vector<16x16xf32>
      %c73 = arith.constant 73 : index
      %542 = memref.load %arg2[%c73] : memref<98xf32, #tpu.memory_space<smem>>
      %543 = vector.extract_strided_slice %526 {offsets = [0, 3], sizes = [16, 16], strides = [1, 1]} : vector<16x22xf32> to vector<16x16xf32>
      %544 = vector.broadcast %542 : f32 to vector<16x16xf32>
      %545 = arith.mulf %543, %544 : vector<16x16xf32>
      %546 = arith.addf %541, %545 : vector<16x16xf32>
      %c74 = arith.constant 74 : index
      %547 = memref.load %arg2[%c74] : memref<98xf32, #tpu.memory_space<smem>>
      %548 = vector.extract_strided_slice %526 {offsets = [0, 4], sizes = [16, 16], strides = [1, 1]} : vector<16x22xf32> to vector<16x16xf32>
      %549 = vector.broadcast %547 : f32 to vector<16x16xf32>
      %550 = arith.mulf %548, %549 : vector<16x16xf32>
      %551 = arith.addf %546, %550 : vector<16x16xf32>
      %c75 = arith.constant 75 : index
      %552 = memref.load %arg2[%c75] : memref<98xf32, #tpu.memory_space<smem>>
      %553 = vector.extract_strided_slice %526 {offsets = [0, 5], sizes = [16, 16], strides = [1, 1]} : vector<16x22xf32> to vector<16x16xf32>
      %554 = vector.broadcast %552 : f32 to vector<16x16xf32>
      %555 = arith.mulf %553, %554 : vector<16x16xf32>
      %556 = arith.addf %551, %555 : vector<16x16xf32>
      %c76 = arith.constant 76 : index
      %557 = memref.load %arg2[%c76] : memref<98xf32, #tpu.memory_space<smem>>
      %558 = vector.extract_strided_slice %526 {offsets = [0, 6], sizes = [16, 16], strides = [1, 1]} : vector<16x22xf32> to vector<16x16xf32>
      %559 = vector.broadcast %557 : f32 to vector<16x16xf32>
      %560 = arith.mulf %558, %559 : vector<16x16xf32>
      %561 = arith.addf %556, %560 : vector<16x16xf32>
      %c1_214 = arith.constant 1 : index
      %c4_215 = arith.constant 4 : index
      %c0_216 = arith.constant 0 : index
      %562 = vector.load %arg7[%c1_214, %c4_215, %c0_216] : memref<2x22x22xf32, #tpu.memory_space<vmem>>, vector<1x16x22xf32>
      %563 = vector.shape_cast %562 : vector<1x16x22xf32> to vector<16x22xf32>
      %c77 = arith.constant 77 : index
      %564 = memref.load %arg2[%c77] : memref<98xf32, #tpu.memory_space<smem>>
      %565 = vector.extract_strided_slice %563 {offsets = [0, 0], sizes = [16, 16], strides = [1, 1]} : vector<16x22xf32> to vector<16x16xf32>
      %566 = vector.broadcast %564 : f32 to vector<16x16xf32>
      %567 = arith.mulf %565, %566 : vector<16x16xf32>
      %568 = arith.addf %561, %567 : vector<16x16xf32>
      %c78 = arith.constant 78 : index
      %569 = memref.load %arg2[%c78] : memref<98xf32, #tpu.memory_space<smem>>
      %570 = vector.extract_strided_slice %563 {offsets = [0, 1], sizes = [16, 16], strides = [1, 1]} : vector<16x22xf32> to vector<16x16xf32>
      %571 = vector.broadcast %569 : f32 to vector<16x16xf32>
      %572 = arith.mulf %570, %571 : vector<16x16xf32>
      %573 = arith.addf %568, %572 : vector<16x16xf32>
      %c79 = arith.constant 79 : index
      %574 = memref.load %arg2[%c79] : memref<98xf32, #tpu.memory_space<smem>>
      %575 = vector.extract_strided_slice %563 {offsets = [0, 2], sizes = [16, 16], strides = [1, 1]} : vector<16x22xf32> to vector<16x16xf32>
      %576 = vector.broadcast %574 : f32 to vector<16x16xf32>
      %577 = arith.mulf %575, %576 : vector<16x16xf32>
      %578 = arith.addf %573, %577 : vector<16x16xf32>
      %c80_217 = arith.constant 80 : index
      %579 = memref.load %arg2[%c80_217] : memref<98xf32, #tpu.memory_space<smem>>
      %580 = vector.extract_strided_slice %563 {offsets = [0, 3], sizes = [16, 16], strides = [1, 1]} : vector<16x22xf32> to vector<16x16xf32>
      %581 = vector.broadcast %579 : f32 to vector<16x16xf32>
      %582 = arith.mulf %580, %581 : vector<16x16xf32>
      %583 = arith.addf %578, %582 : vector<16x16xf32>
      %c81 = arith.constant 81 : index
      %584 = memref.load %arg2[%c81] : memref<98xf32, #tpu.memory_space<smem>>
      %585 = vector.extract_strided_slice %563 {offsets = [0, 4], sizes = [16, 16], strides = [1, 1]} : vector<16x22xf32> to vector<16x16xf32>
      %586 = vector.broadcast %584 : f32 to vector<16x16xf32>
      %587 = arith.mulf %585, %586 : vector<16x16xf32>
      %588 = arith.addf %583, %587 : vector<16x16xf32>
      %c82 = arith.constant 82 : index
      %589 = memref.load %arg2[%c82] : memref<98xf32, #tpu.memory_space<smem>>
      %590 = vector.extract_strided_slice %563 {offsets = [0, 5], sizes = [16, 16], strides = [1, 1]} : vector<16x22xf32> to vector<16x16xf32>
      %591 = vector.broadcast %589 : f32 to vector<16x16xf32>
      %592 = arith.mulf %590, %591 : vector<16x16xf32>
      %593 = arith.addf %588, %592 : vector<16x16xf32>
      %c83 = arith.constant 83 : index
      %594 = memref.load %arg2[%c83] : memref<98xf32, #tpu.memory_space<smem>>
      %595 = vector.extract_strided_slice %563 {offsets = [0, 6], sizes = [16, 16], strides = [1, 1]} : vector<16x22xf32> to vector<16x16xf32>
      %596 = vector.broadcast %594 : f32 to vector<16x16xf32>
      %597 = arith.mulf %595, %596 : vector<16x16xf32>
      %598 = arith.addf %593, %597 : vector<16x16xf32>
      %c1_218 = arith.constant 1 : index
      %c5_219 = arith.constant 5 : index
      %c0_220 = arith.constant 0 : index
      %599 = vector.load %arg7[%c1_218, %c5_219, %c0_220] : memref<2x22x22xf32, #tpu.memory_space<vmem>>, vector<1x16x22xf32>
      %600 = vector.shape_cast %599 : vector<1x16x22xf32> to vector<16x22xf32>
      %c84 = arith.constant 84 : index
      %601 = memref.load %arg2[%c84] : memref<98xf32, #tpu.memory_space<smem>>
      %602 = vector.extract_strided_slice %600 {offsets = [0, 0], sizes = [16, 16], strides = [1, 1]} : vector<16x22xf32> to vector<16x16xf32>
      %603 = vector.broadcast %601 : f32 to vector<16x16xf32>
      %604 = arith.mulf %602, %603 : vector<16x16xf32>
      %605 = arith.addf %598, %604 : vector<16x16xf32>
      %c85 = arith.constant 85 : index
      %606 = memref.load %arg2[%c85] : memref<98xf32, #tpu.memory_space<smem>>
      %607 = vector.extract_strided_slice %600 {offsets = [0, 1], sizes = [16, 16], strides = [1, 1]} : vector<16x22xf32> to vector<16x16xf32>
      %608 = vector.broadcast %606 : f32 to vector<16x16xf32>
      %609 = arith.mulf %607, %608 : vector<16x16xf32>
      %610 = arith.addf %605, %609 : vector<16x16xf32>
      %c86 = arith.constant 86 : index
      %611 = memref.load %arg2[%c86] : memref<98xf32, #tpu.memory_space<smem>>
      %612 = vector.extract_strided_slice %600 {offsets = [0, 2], sizes = [16, 16], strides = [1, 1]} : vector<16x22xf32> to vector<16x16xf32>
      %613 = vector.broadcast %611 : f32 to vector<16x16xf32>
      %614 = arith.mulf %612, %613 : vector<16x16xf32>
      %615 = arith.addf %610, %614 : vector<16x16xf32>
      %c87 = arith.constant 87 : index
      %616 = memref.load %arg2[%c87] : memref<98xf32, #tpu.memory_space<smem>>
      %617 = vector.extract_strided_slice %600 {offsets = [0, 3], sizes = [16, 16], strides = [1, 1]} : vector<16x22xf32> to vector<16x16xf32>
      %618 = vector.broadcast %616 : f32 to vector<16x16xf32>
      %619 = arith.mulf %617, %618 : vector<16x16xf32>
      %620 = arith.addf %615, %619 : vector<16x16xf32>
      %c88 = arith.constant 88 : index
      %621 = memref.load %arg2[%c88] : memref<98xf32, #tpu.memory_space<smem>>
      %622 = vector.extract_strided_slice %600 {offsets = [0, 4], sizes = [16, 16], strides = [1, 1]} : vector<16x22xf32> to vector<16x16xf32>
      %623 = vector.broadcast %621 : f32 to vector<16x16xf32>
      %624 = arith.mulf %622, %623 : vector<16x16xf32>
      %625 = arith.addf %620, %624 : vector<16x16xf32>
      %c89 = arith.constant 89 : index
      %626 = memref.load %arg2[%c89] : memref<98xf32, #tpu.memory_space<smem>>
      %627 = vector.extract_strided_slice %600 {offsets = [0, 5], sizes = [16, 16], strides = [1, 1]} : vector<16x22xf32> to vector<16x16xf32>
      %628 = vector.broadcast %626 : f32 to vector<16x16xf32>
      %629 = arith.mulf %627, %628 : vector<16x16xf32>
      %630 = arith.addf %625, %629 : vector<16x16xf32>
      %c90 = arith.constant 90 : index
      %631 = memref.load %arg2[%c90] : memref<98xf32, #tpu.memory_space<smem>>
      %632 = vector.extract_strided_slice %600 {offsets = [0, 6], sizes = [16, 16], strides = [1, 1]} : vector<16x22xf32> to vector<16x16xf32>
      %633 = vector.broadcast %631 : f32 to vector<16x16xf32>
      %634 = arith.mulf %632, %633 : vector<16x16xf32>
      %635 = arith.addf %630, %634 : vector<16x16xf32>
      %c1_221 = arith.constant 1 : index
      %c6_222 = arith.constant 6 : index
      %c0_223 = arith.constant 0 : index
      %636 = vector.load %arg7[%c1_221, %c6_222, %c0_223] : memref<2x22x22xf32, #tpu.memory_space<vmem>>, vector<1x16x22xf32>
      %637 = vector.shape_cast %636 : vector<1x16x22xf32> to vector<16x22xf32>
      %c91 = arith.constant 91 : index
      %638 = memref.load %arg2[%c91] : memref<98xf32, #tpu.memory_space<smem>>
      %639 = vector.extract_strided_slice %637 {offsets = [0, 0], sizes = [16, 16], strides = [1, 1]} : vector<16x22xf32> to vector<16x16xf32>
      %640 = vector.broadcast %638 : f32 to vector<16x16xf32>
      %641 = arith.mulf %639, %640 : vector<16x16xf32>
      %642 = arith.addf %635, %641 : vector<16x16xf32>
      %c92 = arith.constant 92 : index
      %643 = memref.load %arg2[%c92] : memref<98xf32, #tpu.memory_space<smem>>
      %644 = vector.extract_strided_slice %637 {offsets = [0, 1], sizes = [16, 16], strides = [1, 1]} : vector<16x22xf32> to vector<16x16xf32>
      %645 = vector.broadcast %643 : f32 to vector<16x16xf32>
      %646 = arith.mulf %644, %645 : vector<16x16xf32>
      %647 = arith.addf %642, %646 : vector<16x16xf32>
      %c93 = arith.constant 93 : index
      %648 = memref.load %arg2[%c93] : memref<98xf32, #tpu.memory_space<smem>>
      %649 = vector.extract_strided_slice %637 {offsets = [0, 2], sizes = [16, 16], strides = [1, 1]} : vector<16x22xf32> to vector<16x16xf32>
      %650 = vector.broadcast %648 : f32 to vector<16x16xf32>
      %651 = arith.mulf %649, %650 : vector<16x16xf32>
      %652 = arith.addf %647, %651 : vector<16x16xf32>
      %c94 = arith.constant 94 : index
      %653 = memref.load %arg2[%c94] : memref<98xf32, #tpu.memory_space<smem>>
      %654 = vector.extract_strided_slice %637 {offsets = [0, 3], sizes = [16, 16], strides = [1, 1]} : vector<16x22xf32> to vector<16x16xf32>
      %655 = vector.broadcast %653 : f32 to vector<16x16xf32>
      %656 = arith.mulf %654, %655 : vector<16x16xf32>
      %657 = arith.addf %652, %656 : vector<16x16xf32>
      %c95 = arith.constant 95 : index
      %658 = memref.load %arg2[%c95] : memref<98xf32, #tpu.memory_space<smem>>
      %659 = vector.extract_strided_slice %637 {offsets = [0, 4], sizes = [16, 16], strides = [1, 1]} : vector<16x22xf32> to vector<16x16xf32>
      %660 = vector.broadcast %658 : f32 to vector<16x16xf32>
      %661 = arith.mulf %659, %660 : vector<16x16xf32>
      %662 = arith.addf %657, %661 : vector<16x16xf32>
      %c96_224 = arith.constant 96 : index
      %663 = memref.load %arg2[%c96_224] : memref<98xf32, #tpu.memory_space<smem>>
      %664 = vector.extract_strided_slice %637 {offsets = [0, 5], sizes = [16, 16], strides = [1, 1]} : vector<16x22xf32> to vector<16x16xf32>
      %665 = vector.broadcast %663 : f32 to vector<16x16xf32>
      %666 = arith.mulf %664, %665 : vector<16x16xf32>
      %667 = arith.addf %662, %666 : vector<16x16xf32>
      %c97 = arith.constant 97 : index
      %668 = memref.load %arg2[%c97] : memref<98xf32, #tpu.memory_space<smem>>
      %669 = vector.extract_strided_slice %637 {offsets = [0, 6], sizes = [16, 16], strides = [1, 1]} : vector<16x22xf32> to vector<16x16xf32>
      %670 = vector.broadcast %668 : f32 to vector<16x16xf32>
      %671 = arith.mulf %669, %670 : vector<16x16xf32>
      %672 = arith.addf %667, %671 : vector<16x16xf32>
      %673 = arith.negf %672 : vector<16x16xf32>
      %674 = math.exp %673 : vector<16x16xf32>
      %cst_225 = arith.constant 1.000000e+00 : f32
      %675 = vector.broadcast %cst_225 : f32 to vector<16x16xf32>
      %676 = arith.addf %675, %674 : vector<16x16xf32>
      %677 = arith.divf %675, %676 : vector<16x16xf32>
      %c0_226 = arith.constant 0 : index
      %c0_227 = arith.constant 0 : index
      %c0_228 = arith.constant 0 : index
      %c0_229 = arith.constant 0 : index
      %678 = vector.load %arg4[%c0_226, %c0_227, %c0_228, %c0_229] : memref<1x1x16x16xf32, #tpu.memory_space<vmem>>, vector<1x1x16x16xf32>
      %679 = vector.shape_cast %678 : vector<1x1x16x16xf32> to vector<16x16xf32>
      %680 = vector.shape_cast %677 : vector<16x16xf32> to vector<1x1x16x16xf32>
      tpu.vector_store %arg4[%c0_226, %c0_227, %c0_228, %c0_229], %680 {strides = array<i32>} : memref<1x1x16x16xf32, #tpu.memory_space<vmem>>, vector<1x1x16x16xf32>,
    } else {
    }
    return
  }
  func.func @transform_0(%arg0: i32, %arg1: i32) -> i32 {
    %c0_i32 = arith.constant 0 : i32
    %c0_i32_0 = arith.constant 0 : i32
    return %c0_i32 : i32
  }
  func.func @transform_1(%arg0: i32, %arg1: i32) -> (i32, i32, i32) {
    %c0_i32 = arith.constant 0 : i32
    %c0_i32_0 = arith.constant 0 : i32
    return %arg0, %arg1, %c0_i32 : i32, i32, i32
  }
  func.func @transform_2(%arg0: i32, %arg1: i32) -> (i32, i32, i32, i32) {
    %c0_i32 = arith.constant 0 : i32
    %c0_i32_0 = arith.constant 0 : i32
    %c0_i32_1 = arith.constant 0 : i32
    %c0_i32_2 = arith.constant 0 : i32
    return %arg0, %c0_i32, %c0_i32_0, %c0_i32_1 : i32, i32, i32, i32
  }
}

</mosaic_0001>

<bundles_post_ra>
// kernel: tpu_custom_call.1
= control target key start
LH: loop header
LB: loop body
LE: loop exit
PB: predicated region body
PF: predicated region fallthrough
CT: control target
= control target key end

     0   :  { %7 = vsyncpa [#allocation8], 0  ;;  %s3297_s0 = inlined_call_operand.hbm [shape: f32[98], index: 0, kind: input, shape index: {}]   ;;  %s3298_s1 = inlined_call_operand.hbm [shape: f32[2,4,256], index: 1, kind: input, shape index: {}]   ;;  %s3299_s2 = inlined_call_operand.hbm [shape: f32[2,1,16,16], index: 2, kind: output, shape index: {}]  }
   0x1   :  { %8 = vsyncpa [#allocation6], 0 }
   0x2   :  { %10 = vsyncpa [#allocation6 + $0x1], 0 }
   0x3   :  { %11 = vsyncpa [#allocation7], 0 }
   0x4   :  { %13 = vsyncpa [#allocation7 + $0x1], 0  ;;  %s2371_s9 = smov 0   ;;  %s2373_s10 = smov 0  }
   0x5   :  { %s2375_s11 = smov 0   ;;  %s2377_s12 = smov 0  }
   0x6   :  { %s2379_s13 = smov 0   ;;  %s2381_s14 = smov 0  }
   0x7 LB: > { %s1955_s15 = sadd.s32 4294967295, %s2335_s14   ;;  %s1956_s16 = sadd.s32 4294967294, %s2335_s14   ;;  %s2335_s14 = sphi %s2381_s14, %s19_s14   ;;  %s2331_s13 = sphi %s2379_s13, %s3313_s13   ;;  %s2327_s12 = sphi %s2377_s12, %s3312_s12   ;;  %s2323_s11 = sphi %s2375_s11, %s3311_s11   ;;  %s2319_s10 = sphi %s2373_s10, %s3310_s10   ;;  %s2315_s9 = sphi %s2371_s9, %s3309_s9  }
   0x8   : > { %p74_p0 = scmp.ne.s32.totalorder %s2319_s10, %s2315_s9  ;;  %p2405_p1 = scmp.eq.s32.totalorder %s1955_s15, 0 }
   0x9   : > { %p2409_p2 = scmp.eq.s32.totalorder %s1955_s15, 1  ;;  %p104_p3 = scmp.eq.s32.totalorder %s1956_s16, 1 }
   0xa   : > { %p2415_p4 = por %p2405_p1, %p74_p0  ;;  %p1957_p5 = scmp.ge.s32.totalorder %s2335_s14, 1 }
   0xb   : > { %p2420_p6 = por %p104_p3, %p74_p0  ;;  %p111_p7 = scmp.lt.s32.totalorder %s2335_s14, 3 }
   0xc   : > { %s123_s23 = sshll.u32 %s3297_s0, 4  ;;  %s31_s25 = sadd.s32 1, %s2331_s13  ;;  %s124_s23 = int_to_ptr.hbm [resolvable:$true] %s123_s23 }
   0xd   : > { %p2428_p8 = pnand %p1957_p5, %p111_p7  ;;  %s61_s26 = sadd.s32 1, %s2323_s11 }
   0xe   : > { %p33_p12 = scmp.ge.s32.totalorder %s31_s25, 2  ;;  %s2337_s27 = smov [#allocation5]  }
   0xf   : > { %p2081_p10 = pneg %p2428_p8  ;;  %p68_p13 = scmp.ne.s32.totalorder %s2323_s11, %s2319_s10 }
  0x10   : > { %s3315_s25 = smov (%p33_p12, %s31_s25), 0  ;;  %p69_p0 = scmp.eq.s32.totalorder %s2335_s14, 0 }
  0x11   : > { %p2082_p11 = pnand %p2081_p10, %p2405_p1  ;;  %s56_s28 = ssub.s32 %s2331_s13, %s3315_s25 }
  0x12   : > { %p2094_p3 = scmp.lt.s32.totalorder %s2335_s14, 2  ;;  %p59_p5 = scmp.eq.s32.totalorder %s56_s28, 0 }
  0x13   : > { %2084 = dma.hbm_to_smem (!%p2082_p11), %s124_s23, 16, %s2337_s27, [#allocation8]  }
  0x14   : > { %p70_p7 = por %p69_p0, %p68_p13  ;;  %p2449_p9 = por %p2409_p2, %p68_p13 }
  0x15   : > { %s134_s30 = sand.u32 1, %s2323_s11   ;;  %s2071_s5 = sshll.u32 %s2331_s13, 3 }
  0x16   : > { %s2455_s3 = scalar_select %p59_p5, %s2323_s11, %s61_s26  }
  0x17   : > { %s1960_s4 = sshll.u32 %s134_s30, 3  ;;  %s145_s8 = scalar_lea.hbm %s3298_s1, %s2071_s5 }
  0x18   : > { %s138_s15 = scalar_lea.vmem [#allocation9], %s1960_s4  ;;  %s147_s21 = sshll.u32 %s145_s8, 4  ;;  %s148_s21 = int_to_ptr.hbm [resolvable:$true] %s147_s21 }
  0x19   : > { %s149_s16 = sshll.u32 %s138_s15, 4  ;;  %p2086_p10 = pnand %p2094_p3, %p70_p7  ;;  %s150_s16 = int_to_ptr.vmem [resolvable:$true] %s149_s16 }
  0x1a   : > { %s135_s18 = scalar_lea.sflag [#allocation6], %s134_s30  ;;  %158 = sbr.rel (%p2428_p8) target bundleno = 853 (0x355), region = 28 }
  0x1b   : > { %2088 = dma.hbm_to_vmem [thread:$0]  (!%p2086_p10), %s148_s21, 128, %s150_s16, %s135_s18  }
  0x1f   : > { %2302 = dma.done.wait (%p2405_p1), [#allocation8], 16  }
  0x20   : > { %2304 = vsyncadd (%p2405_p1), [#allocation8], 4294967280  ;;  %s2470_s22 = sand.u32 1, %s2319_s10  }
  0x21   : > { %s1965_s23 = sshll.u32 %s2470_s22, 3  ;;  %s166_s26 = scalar_lea.sflag [#allocation6], %s2470_s22 }
  0x22   : > { %s169_s27 = scalar_lea.vmem [#allocation9], %s1965_s23 }
  0x23   : > { %2306 = dma.done.wait (%p2415_p4), %s166_s26, 128  }
  0x24   : > { %2308 = vsyncadd (%p2415_p4), %s166_s26, 4294967168 }
  0x25   : > { %175 = sfence }
  0x26   : > { %v196_v0 = vlaneseq  ;;  %v202_v1 = vld [vmem:[%s169_s27] sm:$0xff]  ;;  %v2338_v3 = vmov 0.0   ;;  %vm210_vm1 = vcmask 1043456   ;;  %v2339_v10 = vmov -inf   ;;  %s2340_s17 = smov 115   ;;  %s2341_s19 = smov 3  }
  0x27   : > { %205 = vst [vmem:[#allocation1] ss:$2 sm:$0xff] %v202_v1  ;;  %vm228_vm2 = vcmask 1040384   ;;  %s2342_s24 = smov 99   ;;  %s2343_s28 = smov 51   ;;  %vm267_vm3 = vcmask 174080  }
  0x28   : > { %vm2478_vm0 = vcmp.lt.s32.totalorder %v196_v0, 256  ;;  %s2344_s30 = smov 83   ;;  %s2345_s4 = smov 67   ;;  %vm272_vm4 = vcmask 23552   ;;  %268 = vst.msk [vmem:[#allocation4] sm:$0x7] %vm267_vm3, %v2338_v3 }
  0x29   : > { %200 = vst.msk [vmem:[#allocation2] sm:$0x3] %vm2478_vm0, %v2338_v3  ;;  %s2346_s5 = smov 35   ;;  %s2347_s6 = smov 19   ;;  %vm280_vm5 = vcmask 179352   ;;  %vm294_vm6 = vcmask 147480  }
  0x2a   : > { %201 = vst.msk [vmem:[#allocation3] sm:$0x3] %vm2478_vm0, %v2339_v10  ;;  %s2555_s7 = sld [smem:[#allocation5 + $0x2]]  ;;  %s2348_s15 = smov 126   ;;  %vm275_vm7 = vcmask 21504   ;;  %vm283_vm8 = vcmask 177304  }
  0x2b   : > { %273 = vst.msk [vmem:[#allocation4] sm:$0xff] %vm272_vm4, %v2338_v3  ;;  %s2557_s8 = sld [smem:[#allocation5 + $0x1]]  ;;  %s2349_s16 = smov 127   ;;  %vm1840_vm13 = vcmask 130048  }
  0x2c   : > { %281 = vst.msk [vmem:[#allocation4] sm:$0xff] %vm280_vm5, %v2338_v3  ;;  %s1969_s21 = sld [smem:[#allocation5 + $0x3]]  ;;  %s2350_s26 = smov 125  }
  0x2d   : > { %269 = vst.msk [vmem:[#allocation4 + $0x18] sm:$0x7] %vm267_vm3, %v2338_v3  ;;  %s2597_s18 = sld [smem:[#allocation5 + $0x5]] }
  0x2e   : > { %v206_v4 = vld.sshfl [vmem:[#allocation1] sm:$0xff pattern:$0x75316420]  ;;  %v207_v5 = vld.sshfl [vmem:[#allocation1 + $0x8] sm:$0xff pattern:$0x75316420] }
  0x2f   : > { %v211_v6 = vsel %vm210_vm1, %v206_v4, 0.0  ;;  %v218_v7 = vsel %vm210_vm1, %v207_v5, 0.0  ;;  %238 = vst [vmem:[#allocation1] ss:$2 sm:$0xff] %v202_v1  ;;  %s2599_s23 = sld [smem:[#allocation5 + $0x4]] }
  0x30   : > { %v212_v8 = vrot.slane %v211_v6, 4  ;;  %v219_v9 = vrot.slane %v218_v7, 4  ;;  %v203_v29 = vld [vmem:[#allocation2] sm:$0x3]  ;;  %270 = vst.msk [vmem:[#allocation4 + $0x13] sm:$0x7] %vm267_vm3, %v2338_v3 }
  0x31   : > { %v237_v42 = vld [vmem:[#allocation3] sm:$0x3]  ;;  %271 = vst.msk [vmem:[#allocation4 + $0x2b] sm:$0x7] %vm267_vm3, %v2338_v3  ;;  %s1972_s27 = sld [smem:[#allocation5 + $0x6]] }
  0x32   : > { %v213_v11 = vadd.f32 %v212_v8, %v211_v6  ;;  %v220_v12 = vadd.f32 %v219_v9, %v218_v7  ;;  %274 = vst.msk [vmem:[#allocation4 + $0x8] sm:$0xff] %vm272_vm4, %v2338_v3 }
  0x33   : > { %278 = vst.msk [vmem:[#allocation4 + $0x20] sm:$0xff] %vm272_vm4, %v2338_v3 }
  0x34   : > { %v214_v13 = vrot.slane %v213_v11, 2  ;;  %v221_v14 = vrot.slane %v220_v12, 2  ;;  %277 = vst.msk [vmem:[#allocation4 + $0x18] sm:$0xff] %vm272_vm4, %v2338_v3 }
  0x35   : > { %282 = vst.msk [vmem:[#allocation4 + $0x8] sm:$0xff] %vm280_vm5, %v2338_v3 }
  0x36   : > { %v215_v15 = vadd.f32 %v214_v13, %v213_v11  ;;  %v222_v16 = vadd.f32 %v221_v14, %v220_v12  ;;  %v239_v17 = vld.sshfl [vmem:[#allocation1] sm:$0xff pattern:$0x75316420]  ;;  %v240_v18 = vld.sshfl [vmem:[#allocation1 + $0x8] sm:$0xff pattern:$0x75316420] }
  0x37   : > { %v243_v19 = vsel %vm210_vm1, %v239_v17, -inf  ;;  %v250_v20 = vsel %vm210_vm1, %v240_v18, -inf  ;;  %286 = vst.msk [vmem:[#allocation4 + $0x20] sm:$0xff] %vm280_vm5, %v2338_v3 }
  0x38   : > { %v216_v21 = vrot.slane %v215_v15, 1  ;;  %v223_v22 = vrot.slane %v222_v16, 1  ;;  %v244_v23 = vrot.slane %v243_v19, 4  ;;  %v251_v24 = vrot.slane %v250_v20, 4  ;;  %285 = vst.msk [vmem:[#allocation4 + $0x18] sm:$0xff] %vm280_vm5, %v2338_v3 }
  0x39   : > { %276 = vst.msk [vmem:[#allocation4 + $0x10] sm:$0x3f] %vm275_vm7, %v2338_v3 }
  0x3a   : > { %v217_v25 = vadd.f32 %v216_v21, %v215_v15  ;;  %v224_v26 = vadd.f32 %v223_v22, %v222_v16  ;;  %v245_v27 = vmax.f32 %v243_v19, %v244_v23  ;;  %v252_v28 = vmax.f32 %v250_v20, %v251_v24  ;;  %284 = vst.msk [vmem:[#allocation4 + $0x10] sm:$0x3f] %vm283_vm8, %v2338_v3 }
  0x3b   : > { %v537_v23 = vstv %s2555_s7  ;;  %v523_v24 = vstv %s2557_s8  ;;  %279 = vst.msk [vmem:[#allocation4 + $0x28] sm:$0x3f] %vm275_vm7, %v2338_v3  ;;  %s1979_s7 = sld [smem:[#allocation5 + $0xd]] }
  0x3c   : > { %v227_v30 = vrot.slane %v224_v26, 7  ;;  %v246_v31 = vrot.slane %v245_v27, 2  ;;  %v253_v32 = vrot.slane %v252_v28, 2  ;;  %287 = vst.msk [vmem:[#allocation4 + $0x28] sm:$0x3f] %vm283_vm8, %v2338_v3  ;;  %s1982_s8 = sld [smem:[#allocation5 + $0x10]] }
  0x3e   : > { %v229_v33 = vsel %vm228_vm2, %v217_v25, %v227_v30  ;;  %v247_v34 = vmax.f32 %v245_v27, %v246_v31  ;;  %v254_v35 = vmax.f32 %v252_v28, %v253_v32 }
  0x3f   : > { %v231_v36 = vadd.f32 %v229_v33, %v203_v29 }
  0x40   : > { %v248_v37 = vrot.slane %v247_v34, 1  ;;  %v255_v38 = vrot.slane %v254_v35, 1 }
  0x41   : > { %236 = vst.msk [vmem:[#allocation2] sm:$0x3] %vm2478_vm0, %v231_v36 }
  0x42   : > { %v249_v39 = vmax.f32 %v247_v34, %v248_v37  ;;  %v256_v40 = vmax.f32 %v254_v35, %v255_v38 }
  0x44   : > { %v259_v41 = vrot.slane %v256_v40, 7 }
  0x46   : > { %v260_v43 = vsel %vm228_vm2, %v249_v39, %v259_v41 }
  0x47   : > { %v262_v45 = vmax.f32 %v237_v42, %v260_v43 }
  0x48   : > { %v2164_v44 = vld [vmem:[#allocation2] ss:$0 sm:$0xff]  ;;  %v2168_v51 = vld [vmem:[#allocation2 + $0x1] ss:$0 sm:$0xff] }
  0x49   : > { %v2165_v46 = vld [vmem:[#allocation2] ss:$0 sm:$0xff]  ;;  %307 = vrot.lane.b32.xlu1 %v2164_v44, %s2340_s17  ;;  %263 = vst.msk [vmem:[#allocation3] sm:$0x3] %vm2478_vm0, %v262_v45  ;;  %v2181_v0 = vld [vmem:[#allocation2 + $0x1] ss:$0 sm:$0xff] }
  0x4a   : > { %291 = vrot.lane.b32.xlu0 %v2165_v46, %s2341_s19  ;;  %v2170_v47 = vld [vmem:[#allocation2] ss:$0 sm:$0xff]  ;;  %v2188_v1 = vld [vmem:[#allocation2 + $0x1] ss:$0 sm:$0xff] }
  0x4b   : > { %v2166_v48 = vld [vmem:[#allocation2] ss:$0 sm:$0xff]  ;;  %321 = vrot.lane.b32.xlu2 %v2170_v47, %s2342_s24  ;;  %v2183_v2 = vld [vmem:[#allocation2 + $0x1] ss:$0 sm:$0xff] }
  0x4c   : > { %v2167_v49 = vld [vmem:[#allocation2] ss:$0 sm:$0xff]  ;;  %v2187_v7 = vld [vmem:[#allocation2 + $0x1] ss:$0 sm:$0xff] }
  0x4d   : > { %v2173_v50 = vld [vmem:[#allocation2] ss:$0 sm:$0xff]  ;;  %v2194_v8 = vld [vmem:[#allocation2 + $0x1] ss:$0 sm:$0xff] }
  0x4e   : > { %v2169_v52 = vld [vmem:[#allocation2] ss:$0 sm:$0xff]  ;;  %v2189_v9 = vld [vmem:[#allocation2 + $0x1] ss:$0 sm:$0xff] }
  0x4f   : > { %v2176_v53 = vld [vmem:[#allocation2] ss:$0 sm:$0xff]  ;;  %v2193_v13 = vld [vmem:[#allocation2 + $0x1] ss:$0 sm:$0xff] }
  0x50   : > { %v2171_v54 = vld [vmem:[#allocation3] ss:$0 sm:$0xff]  ;;  %v2185_v62 = vld [vmem:[#allocation3 + $0x1] ss:$0 sm:$0xff] }
  0x51   : > { %363 = vrot.lane.b32.xlu1 %v2166_v48, %s2343_s28  ;;  %v2172_v55 = vld [vmem:[#allocation3] ss:$0 sm:$0xff]  ;;  %v2180_v63 = vld [vmem:[#allocation3 + $0x1] ss:$0 sm:$0xff] }
  0x52   : > { %335 = vrot.lane.b32.xlu0 %v2167_v49, %s2344_s30  ;;  %v2179_v56 = vld [vmem:[#allocation3] ss:$0 sm:$0xff]  ;;  %v2184_v4 = vld [vmem:[#allocation3 + $0x1] ss:$0 sm:$0xff]  ;;  %v551_v49 = vstv %s1969_s21  ;;  %s1981_s21 = sld [smem:[#allocation5 + $0xf]] }
  0x53   : > { %349 = vrot.lane.b32.xlu2 %v2173_v50, %s2345_s4  ;;  %v2174_v57 = vld [vmem:[#allocation3] ss:$0 sm:$0xff]  ;;  %v2191_v5 = vld [vmem:[#allocation3 + $0x1] ss:$0 sm:$0xff] }
  0x54   : > { %v2175_v58 = vld [vmem:[#allocation3] ss:$0 sm:$0xff]  ;;  %v2186_v6 = vld [vmem:[#allocation3 + $0x1] ss:$0 sm:$0xff] }
  0x55   : > { %v2182_v59 = vld [vmem:[#allocation3] ss:$0 sm:$0xff]  ;;  %v2190_v10 = vld [vmem:[#allocation3 + $0x1] ss:$0 sm:$0xff] }
  0x56   : > { %v2177_v60 = vld [vmem:[#allocation3] ss:$0 sm:$0xff]  ;;  %v2195_v11 = vld [vmem:[#allocation3 + $0x1] ss:$0 sm:$0xff] }
  0x57   : > { %v2178_v61 = vld [vmem:[#allocation3] ss:$0 sm:$0xff]  ;;  %v2192_v12 = vld [vmem:[#allocation3 + $0x1] ss:$0 sm:$0xff] }
  0x59   : > { %405 = vrot.lane.b32.xlu1 %v2168_v51, %s2341_s19 }
  0x5a   : > { %377 = vrot.lane.b32.xlu0 %v2169_v52, %s2346_s5 }
  0x5b   : > { %391 = vrot.lane.b32.xlu2 %v2176_v53, %s2347_s6  ;;  %v579_v53 = vstv %s2597_s18  ;;  %s1983_s18 = sld [smem:[#allocation5 + $0x11]] }
  0x61   : > { %314 = vrot.lane.b32.xlu1 %v2171_v54, %s2340_s17  ;;  %v565_v54 = vstv %s2599_s23  ;;  %s1985_s23 = sld [smem:[#allocation5 + $0x13]] }
  0x62   : > { %299 = vrot.lane.b32.xlu0 %v2172_v55, %s2341_s19 }
  0x63   : > { %328 = vrot.lane.b32.xlu2 %v2179_v56, %s2342_s24 }
  0x69   : > { %342 = vrot.lane.b32.xlu1 %v2174_v57, %s2344_s30 }
  0x6a   : > { %356 = vrot.lane.b32.xlu0 %v2175_v58, %s2345_s4 }
  0x6b   : > { %370 = vrot.lane.b32.xlu2 %v2182_v59, %s2343_s28 }
  0x71   : > { %384 = vrot.lane.b32.xlu1 %v2177_v60, %s2346_s5  ;;  %v593_v60 = vstv %s1972_s27  ;;  %s1984_s27 = sld [smem:[#allocation5 + $0x12]] }
  0x72   : > { %398 = vrot.lane.b32.xlu0 %v2178_v61, %s2347_s6 }
  0x73   : > { %412 = vrot.lane.b32.xlu2 %v2185_v62, %s2341_s19  ;;  %s2352_s19 = smov 124  }
  0x79   : > { %426 = vrot.lane.b32.xlu1 %v2180_v63, %s2340_s17 }
  0x7a   : > { %419 = vrot.lane.b32.xlu0 %v2181_v0, %s2340_s17  ;;  %s2351_s17 = smov 123  }
  0x7b   : > { %433 = vrot.lane.b32.xlu2 %v2188_v1, %s2342_s24 }
  0x81   : > { %447 = vrot.lane.b32.xlu1 %v2183_v2, %s2344_s30 }
  0x82   : > { %440 = vrot.lane.b32.xlu0 %v2184_v4, %s2342_s24  ;;  %s1975_s24 = sld [smem:[#allocation5 + $0x9]] }
  0x83   : > { %454 = vrot.lane.b32.xlu2 %v2191_v5, %s2344_s30  ;;  %s2353_s30 = smov 122  }
  0x88   : > { %v629_v1 = vstv %s1975_s24  ;;  %s1986_s24 = sld [smem:[#allocation5 + $0x14]] }
  0x89   : > { %468 = vrot.lane.b32.xlu1 %v2186_v6, %s2345_s4 }
  0x8a   : > { %461 = vrot.lane.b32.xlu0 %v2187_v7, %s2345_s4  ;;  %s1976_s4 = sld [smem:[#allocation5 + $0xa]] }
  0x8b   : > { %475 = vrot.lane.b32.xlu2 %v2194_v8, %s2343_s28 }
  0x90   : > { %v643_v8 = vstv %s1976_s4  ;;  %s1988_s4 = sld [smem:[#allocation5 + $0x16]] }
  0x91   : > { %489 = vrot.lane.b32.xlu1 %v2189_v9, %s2346_s5 }
  0x92   : > { %482 = vrot.lane.b32.xlu0 %v2190_v10, %s2343_s28  ;;  %s1974_s28 = sld [smem:[#allocation5 + $0x8]] }
  0x93   : > { %496 = vrot.lane.b32.xlu2 %v2195_v11, %s2346_s5  ;;  %s1978_s5 = sld [smem:[#allocation5 + $0xc]] }
  0x98   : > { %v615_v2 = vstv %s1974_s28  ;;  %s1989_s28 = sld [smem:[#allocation5 + $0x17]] }
  0x99   : > { %510 = vrot.lane.b32.xlu1 %v2192_v12, %s2347_s6  ;;  %v671_v12 = vstv %s1978_s5  ;;  %s1990_s5 = sld [smem:[#allocation5 + $0x18]] }
  0x9a   : > { %503 = vrot.lane.b32.xlu0 %v2193_v13, %s2347_s6  ;;  %s1977_s6 = sld [smem:[#allocation5 + $0xb]] }
  0xa0   : > { %v657_v13 = vstv %s1977_s6  ;;  %s1992_s6 = sld [smem:[#allocation5 + $0x1a]] }
  0xa5   : > { %v322_v14 = vpop.permute.xlu2 %321 }
  0xa6   : > { %324 = vst.msk [vmem:[#allocation4 + $0x5] sm:$0x1] %vm294_vm6, %v322_v14 }
  0xad   : > { %v350_v15 = vpop.permute.xlu2 %349 }
  0xae   : > { %352 = vst.msk [vmem:[#allocation4 + $0x7] sm:$0x1] %vm294_vm6, %v350_v15 }
  0xb5   : > { %v392_v16 = vpop.permute.xlu2 %391 }
  0xb6   : > { %394 = vst.msk [vmem:[#allocation4 + $0xa] sm:$0x1] %vm294_vm6, %v392_v16 }
  0xbb   : > { %v308_v17 = vpop.permute.xlu1 %307 }
  0xbc   : > { %310 = vst.msk [vmem:[#allocation4 + $0x4] sm:$0x1] %vm294_vm6, %v308_v17  ;;  %v292_v18 = vpop.permute.xlu0 %291  ;;  %v685_v17 = vstv %s1979_s7  ;;  %s1991_s7 = sld [smem:[#allocation5 + $0x19]] }
  0xbd   : > { %295 = vst.msk [vmem:[#allocation4 + $0x3] sm:$0x1] %vm294_vm6, %v292_v18  ;;  %v329_v19 = vpop.permute.xlu2 %328 }
  0xbe   : > { %331 = vst.msk [vmem:[#allocation4 + $0x1d] sm:$0x1] %vm294_vm6, %v329_v19 }
  0xc3   : > { %v364_v20 = vpop.permute.xlu1 %363 }
  0xc4   : > { %366 = vst.msk [vmem:[#allocation4 + $0x8] sm:$0x1] %vm294_vm6, %v364_v20  ;;  %v336_v21 = vpop.permute.xlu0 %335 }
  0xc5   : > { %338 = vst.msk [vmem:[#allocation4 + $0x6] sm:$0x1] %vm294_vm6, %v336_v21  ;;  %v371_v22 = vpop.permute.xlu2 %370 }
  0xc6   : > { %373 = vst.msk [vmem:[#allocation4 + $0x20] sm:$0x1] %vm294_vm6, %v371_v22  ;;  %v721_v22 = vstv %s1982_s8  ;;  %s1993_s8 = sld [smem:[#allocation5 + $0x1b]] }
  0xcb   : > { %v406_v25 = vpop.permute.xlu1 %405 }
  0xcc   : > { %408 = vst.msk [vmem:[#allocation4 + $0xb] sm:$0x1] %vm294_vm6, %v406_v25  ;;  %v378_v26 = vpop.permute.xlu0 %377  ;;  %v2565_v27 = vld [vmem:[#allocation4] sm:$0xff] }
  0xcd   : > { %380 = vst.msk [vmem:[#allocation4 + $0x9] sm:$0x1] %vm294_vm6, %v378_v26  ;;  %v538_v28 = vmul.f32 %v537_v23, %v2565_v27  ;;  %v524_v29 = vmul.f32 %v523_v24, %v2565_v27  ;;  %v413_v30 = vpop.permute.xlu2 %412  ;;  %v580_v57 = vmul.f32 %v579_v53, %v2565_v27  ;;  %v566_v58 = vmul.f32 %v565_v54, %v2565_v27  ;;  %v2631_v0 = vld [vmem:[#allocation4 + $0x1] sm:$0xff] }
  0xce   : > { %415 = vst.msk [vmem:[#allocation4 + $0x23] sm:$0x1] %vm294_vm6, %v413_v30  ;;  %v552_v59 = vmul.f32 %v551_v49, %v2565_v27  ;;  %v630_v4 = vmul.f32 %v629_v1, %v2631_v0  ;;  %v616_v5 = vmul.f32 %v615_v2, %v2631_v0  ;;  %v594_v6 = vmul.f32 %v593_v60, %v2565_v27 }
  0xcf   : > { %542 = vrot.lane.b32.xlu1 %v538_v28, %s2348_s15  ;;  %528 = vrot.lane.b32.xlu2 %v524_v29, %s2349_s16  ;;  %v672_v14 = vmul.f32 %v671_v12, %v2631_v0  ;;  %v658_v15 = vmul.f32 %v657_v13, %v2631_v0  ;;  %v644_v16 = vmul.f32 %v643_v8, %v2631_v0  ;;  %v735_v29 = vstv %s1983_s18  ;;  %s2715_s18 = sld [smem:[#allocation5 + $0x1d]] }
  0xd0   : > { %v686_v26 = vmul.f32 %v685_v17, %v2631_v0 }
  0xd3   : > { %v315_v31 = vpop.permute.xlu1 %314 }
  0xd4   : > { %317 = vst.msk [vmem:[#allocation4 + $0x1c] sm:$0x1] %vm294_vm6, %v315_v31  ;;  %v300_v32 = vpop.permute.xlu0 %299  ;;  %v2659_v21 = vld [vmem:[#allocation4 + $0x2] sm:$0xff] }
  0xd5   : > { %303 = vst.msk [vmem:[#allocation4 + $0x1b] sm:$0x1] %vm294_vm6, %v300_v32  ;;  %v434_v33 = vpop.permute.xlu2 %433 }
  0xd6   : > { %436 = vst.msk [vmem:[#allocation4 + $0xd] sm:$0x1] %vm294_vm6, %v434_v33  ;;  %v763_v33 = vstv %s1985_s23  ;;  %s516_s23 = sld [smem:[#allocation5]] }
  0xdb   : > { %v343_v34 = vpop.permute.xlu1 %342 }
  0xdc   : > { %345 = vst.msk [vmem:[#allocation4 + $0x1e] sm:$0x1] %vm294_vm6, %v343_v34  ;;  %v357_v35 = vpop.permute.xlu0 %356  ;;  %v749_v34 = vstv %s1984_s27  ;;  %s2729_s27 = sld [smem:[#allocation5 + $0x1f]] }
  0xdd   : > { %359 = vst.msk [vmem:[#allocation4 + $0x1f] sm:$0x1] %vm294_vm6, %v357_v35  ;;  %v455_v36 = vpop.permute.xlu2 %454  ;;  %v764_v35 = vmul.f32 %v763_v33, %v2659_v21 }
  0xde   : > { %457 = vst.msk [vmem:[#allocation4 + $0x26] sm:$0x1] %vm294_vm6, %v455_v36  ;;  %v750_v36 = vmul.f32 %v749_v34, %v2659_v21 }
  0xe3   : > { %v385_v37 = vpop.permute.xlu1 %384 }
  0xe4   : > { %387 = vst.msk [vmem:[#allocation4 + $0x21] sm:$0x1] %vm294_vm6, %v385_v37  ;;  %v399_v38 = vpop.permute.xlu0 %398  ;;  %v736_v37 = vmul.f32 %v735_v29, %v2659_v21 }
  0xe5   : > { %401 = vst.msk [vmem:[#allocation4 + $0x22] sm:$0x1] %vm294_vm6, %v399_v38  ;;  %v476_v39 = vpop.permute.xlu2 %475  ;;  %v777_v38 = vstv %s1986_s24  ;;  %s2740_s24 = sld [smem:[#allocation5 + $0x21]] }
  0xe6   : > { %478 = vst.msk [vmem:[#allocation4 + $0x10] sm:$0x1] %vm294_vm6, %v476_v39 }
  0xeb   : > { %v427_v40 = vpop.permute.xlu1 %426 }
  0xec   : > { %429 = vst.msk [vmem:[#allocation4 + $0x24] sm:$0x1] %vm294_vm6, %v427_v40  ;;  %v420_v3 = vpop.permute.xlu0 %419 }
  0xed   : > { %422 = vst.msk [vmem:[#allocation4 + $0xc] sm:$0x1] %vm294_vm6, %v420_v3  ;;  %v497_v41 = vpop.permute.xlu2 %496 }
  0xee   : > { %499 = vst.msk [vmem:[#allocation4 + $0x29] sm:$0x1] %vm294_vm6, %v497_v41 }
  0xf3   : > { %v448_v42 = vpop.permute.xlu1 %447 }
  0xf4   : > { %450 = vst.msk [vmem:[#allocation4 + $0xe] sm:$0x1] %vm294_vm6, %v448_v42  ;;  %v441_v43 = vpop.permute.xlu0 %440  ;;  %v2689_v42 = vld [vmem:[#allocation4 + $0x3] sm:$0xff] }
  0xf5   : > { %443 = vst.msk [vmem:[#allocation4 + $0x25] sm:$0x1] %vm294_vm6, %v441_v43  ;;  %v813_v43 = vstv %s1989_s28  ;;  %s2744_s28 = sld [smem:[#allocation5 + $0x20]] }
  0xfb   : > { %v469_v44 = vpop.permute.xlu1 %468 }
  0xfc   : > { %471 = vst.msk [vmem:[#allocation4 + $0x27] sm:$0x1] %vm294_vm6, %v469_v44  ;;  %v462_v45 = vpop.permute.xlu0 %461  ;;  %v799_v44 = vstv %s1988_s4  ;;  %s2752_s4 = sld [smem:[#allocation5 + $0x7]] }
  0xfd   : > { %464 = vst.msk [vmem:[#allocation4 + $0xf] sm:$0x1] %vm294_vm6, %v462_v45  ;;  %v814_v45 = vmul.f32 %v813_v43, %v2689_v42 }
 0x103   : > { %v490_v46 = vpop.permute.xlu1 %489 }
 0x104   : > { %492 = vst.msk [vmem:[#allocation4 + $0x11] sm:$0x1] %vm294_vm6, %v490_v46  ;;  %v483_v47 = vpop.permute.xlu0 %482  ;;  %v2602_v48 = vld [vmem:[#allocation4 + $0x8] sm:$0xff]  ;;  %v800_v46 = vmul.f32 %v799_v44, %v2689_v42 }
 0x105   : > { %485 = vst.msk [vmem:[#allocation4 + $0x28] sm:$0x1] %vm294_vm6, %v483_v47  ;;  %v553_v50 = vmul.f32 %v551_v49, %v2602_v48  ;;  %v539_v51 = vmul.f32 %v537_v23, %v2602_v48  ;;  %v525_v52 = vmul.f32 %v523_v24, %v2602_v48  ;;  %v595_v61 = vmul.f32 %v593_v60, %v2602_v48  ;;  %v2639_v7 = vld [vmem:[#allocation4 + $0x9] sm:$0xff] }
 0x106   : > { %v581_v62 = vmul.f32 %v579_v53, %v2602_v48  ;;  %v567_v63 = vmul.f32 %v565_v54, %v2602_v48  ;;  %v645_v9 = vmul.f32 %v643_v8, %v2639_v7  ;;  %v631_v10 = vmul.f32 %v629_v1, %v2639_v7 }
 0x107   : > { %558 = vrot.lane.b32.xlu1 %v553_v50, %s2350_s26  ;;  %544 = vrot.lane.b32.xlu2 %v539_v51, %s2348_s15  ;;  %v617_v11 = vmul.f32 %v615_v2, %v2639_v7  ;;  %v687_v18 = vmul.f32 %v685_v17, %v2639_v7  ;;  %v673_v19 = vmul.f32 %v671_v12, %v2639_v7  ;;  %v707_v23 = vstv %s1981_s21  ;;  %s2713_s21 = sld [smem:[#allocation5 + $0x1e]] }
 0x108   : > { %530 = vrot.lane.b32.xlu0 %v525_v52, %s2349_s16  ;;  %v659_v20 = vmul.f32 %v657_v13, %v2639_v7  ;;  %v722_v24 = vmul.f32 %v721_v22, %v2659_v21  ;;  %v708_v25 = vmul.f32 %v707_v23, %v2659_v21  ;;  %v778_v47 = vmul.f32 %v777_v38, %v2659_v21 }
 0x109   : > { %v827_v51 = vstv %s1990_s5  ;;  %s2761_s5 = sld [smem:[#allocation5 + $0x22]] }
 0x10a   : > { %v828_v60 = vmul.f32 %v827_v51, %v2689_v42 }
 0x10b   : > { %v511_v55 = vpop.permute.xlu1 %510  ;;  %v2667_v28 = vld [vmem:[#allocation4 + $0xa] sm:$0xff] }
 0x10c   : > { %513 = vst.msk [vmem:[#allocation4 + $0x2a] sm:$0x1] %vm294_vm6, %v511_v55  ;;  %v504_v56 = vpop.permute.xlu0 %503  ;;  %v737_v30 = vmul.f32 %v735_v29, %v2667_v28  ;;  %v723_v31 = vmul.f32 %v721_v22, %v2667_v28  ;;  %v709_v32 = vmul.f32 %v707_v23, %v2667_v28  ;;  %v779_v39 = vmul.f32 %v777_v38, %v2667_v28 }
 0x10d   : > { %506 = vst.msk [vmem:[#allocation4 + $0x12] sm:$0x1] %vm294_vm6, %v504_v56  ;;  %v765_v40 = vmul.f32 %v763_v33, %v2667_v28  ;;  %v751_v3 = vmul.f32 %v749_v34, %v2667_v28  ;;  %v855_v56 = vstv %s1992_s6  ;;  %s2772_s6 = sld [smem:[#allocation5 + $0x25]] }
 0x10f   : > { %584 = vrot.lane.b32.xlu1 %v580_v57, %s2351_s17  ;;  %570 = vrot.lane.b32.xlu2 %v566_v58, %s2352_s19  ;;  %v841_v57 = vstv %s1991_s7  ;;  %v856_v58 = vmul.f32 %v855_v56, %v2689_v42  ;;  %s2774_s7 = sld [smem:[#allocation5 + $0x24]] }
 0x110   : > { %556 = vrot.lane.b32.xlu0 %v552_v59, %s2350_s26  ;;  %v842_v59 = vmul.f32 %v841_v57, %v2689_v42 }
 0x114   : > { %v2697_v50 = vld [vmem:[#allocation4 + $0xb] sm:$0xff] }
 0x115   : > { %v829_v52 = vmul.f32 %v827_v51, %v2697_v50  ;;  %v815_v53 = vmul.f32 %v813_v43, %v2697_v50  ;;  %v801_v54 = vmul.f32 %v799_v44, %v2697_v50  ;;  %v857_v2 = vmul.f32 %v855_v56, %v2697_v50  ;;  %v2742_v22 = vld [vmem:[#allocation4 + $0xc] sm:$0xff] }
 0x116   : > { %v609_v44 = vstv %s2752_s4  ;;  %v961_v56 = vstv %s2761_s5  ;;  %s2849_s4 = sld [smem:[#allocation5 + $0x2d]] }
 0x117   : > { %600 = vrot.lane.b32.xlu1 %v595_v61, %s2353_s30  ;;  %586 = vrot.lane.b32.xlu2 %v581_v62, %s2351_s17  ;;  %s2858_s5 = sld [smem:[#allocation5 + $0x2f]] }
 0x118   : > { %572 = vrot.lane.b32.xlu0 %v567_v63, %s2352_s19  ;;  %v869_v63 = vstv %s1993_s8  ;;  %s2790_s8 = sld [smem:[#allocation5 + $0x26]] }
 0x119   : > { %v871_v1 = vmul.f32 %v869_v63, %v2697_v50 }
 0x11f   : > { %634 = vrot.lane.b32.xlu1 %v630_v4, %s2348_s15  ;;  %620 = vrot.lane.b32.xlu2 %v616_v5, %s2349_s16  ;;  %v843_v4 = vmul.f32 %v841_v57, %v2697_v50 }
 0x120   : > { %598 = vrot.lane.b32.xlu0 %v594_v6, %s2353_s30 }
 0x127   : > { %650 = vrot.lane.b32.xlu1 %v645_v9, %s2350_s26  ;;  %636 = vrot.lane.b32.xlu2 %v631_v10, %s2348_s15  ;;  %v2725_v9 = vld [vmem:[#allocation4 + $0x4] sm:$0xff]  ;;  %v905_v10 = vstv %s2713_s21  ;;  %s2800_s21 = sld [smem:[#allocation5 + $0x28]] }
 0x128   : > { %622 = vrot.lane.b32.xlu0 %v617_v11, %s2349_s16  ;;  %v891_v11 = vstv %s2715_s18  ;;  %v906_v12 = vmul.f32 %v905_v10, %v2725_v9  ;;  %v907_v29 = vmul.f32 %v905_v10, %v2742_v22  ;;  %s2804_s18 = sld [smem:[#allocation5 + $0x27]] }
 0x129   : > { %v2687_v41 = vpop.permute.xlu2 %528  ;;  %v892_v13 = vmul.f32 %v891_v11, %v2725_v9 }
 0x12f   : > { %676 = vrot.lane.b32.xlu1 %v672_v14, %s2351_s17  ;;  %662 = vrot.lane.b32.xlu2 %v658_v15, %s2352_s19  ;;  %v517_v14 = vstv %s516_s23  ;;  %v870_v15 = vmul.f32 %v869_v63, %v2689_v42  ;;  %v997_v63 = vstv %s2772_s6  ;;  %s2812_s23 = sld [smem:[#allocation5 + $0xe]] }
 0x130   : > { %648 = vrot.lane.b32.xlu0 %v644_v16, %s2350_s26  ;;  %v519_v16 = vmul.f32 %v517_v14, %v2602_v48  ;;  %v518_v23 = vmul.f32 %v517_v14, %v2565_v27  ;;  %v919_v48 = vstv %s2729_s27  ;;  %s2819_s27 = sld [smem:[#allocation5 + $0x29]] }
 0x131   : > { %v920_v43 = vmul.f32 %v919_v48, %v2725_v9  ;;  %s2862_s6 = sld [smem:[#allocation5 + $0x2e]] }
 0x137   : > { %692 = vrot.lane.b32.xlu1 %v687_v18, %s2353_s30  ;;  %678 = vrot.lane.b32.xlu2 %v673_v19, %s2351_s17 }
 0x138   : > { %664 = vrot.lane.b32.xlu0 %v659_v20, %s2352_s19 }
 0x13f   : > { %726 = vrot.lane.b32.xlu1 %v722_v24, %s2348_s15  ;;  %712 = vrot.lane.b32.xlu2 %v708_v25, %s2349_s16  ;;  %v534_v24 = vadd.f32 %v2687_v41, %v518_v23 }
 0x140   : > { %690 = vrot.lane.b32.xlu0 %v686_v26, %s2353_s30  ;;  %v921_v26 = vmul.f32 %v919_v48, %v2742_v22 }
 0x141   : > { %v543_v61 = vpop.permute.xlu1 %542 }
 0x147   : > { %742 = vrot.lane.b32.xlu1 %v737_v30, %s2350_s26  ;;  %728 = vrot.lane.b32.xlu2 %v723_v31, %s2348_s15  ;;  %v893_v30 = vmul.f32 %v891_v11, %v2742_v22  ;;  %v548_v31 = vadd.f32 %v543_v61, %v534_v24 }
 0x148   : > { %714 = vrot.lane.b32.xlu0 %v709_v32, %s2349_s16 }
 0x14f   : > { %768 = vrot.lane.b32.xlu1 %v764_v35, %s2351_s17  ;;  %754 = vrot.lane.b32.xlu2 %v750_v36, %s2352_s19  ;;  %v947_v36 = vstv %s2740_s24  ;;  %s2830_s24 = sld [smem:[#allocation5 + $0x2c]] }
 0x150   : > { %740 = vrot.lane.b32.xlu0 %v736_v37, %s2350_s26  ;;  %v933_v37 = vstv %s2744_s28  ;;  %s2832_s28 = sld [smem:[#allocation5 + $0x2b]] }
 0x151   : > { %v934_v41 = vmul.f32 %v933_v37, %v2725_v9 }
 0x157   : > { %784 = vrot.lane.b32.xlu1 %v779_v39, %s2353_s30  ;;  %770 = vrot.lane.b32.xlu2 %v765_v40, %s2351_s17 }
 0x158   : > { %756 = vrot.lane.b32.xlu0 %v751_v3, %s2352_s19  ;;  %v948_v3 = vmul.f32 %v947_v36, %v2725_v9 }
 0x15f   : > { %818 = vrot.lane.b32.xlu1 %v814_v45, %s2348_s15  ;;  %804 = vrot.lane.b32.xlu2 %v800_v46, %s2349_s16  ;;  %v611_v46 = vmul.f32 %v609_v44, %v2639_v7  ;;  %v963_v7 = vmul.f32 %v961_v56, %v2742_v22 }
 0x160   : > { %782 = vrot.lane.b32.xlu0 %v778_v47, %s2353_s30 }
 0x161   : > { %v545_v49 = vpop.permute.xlu2 %544 }
 0x167   : > { %834 = vrot.lane.b32.xlu1 %v829_v52, %s2350_s26  ;;  %820 = vrot.lane.b32.xlu2 %v815_v53, %s2348_s15 }
 0x168   : > { %806 = vrot.lane.b32.xlu0 %v801_v54, %s2349_s16  ;;  %v610_v54 = vmul.f32 %v609_v44, %v2631_v0  ;;  %v2786_v0 = vld [vmem:[#allocation4 + $0x5] sm:$0xff] }
 0x169   : > { %v2705_v55 = vpop.permute.xlu2 %570 }
 0x16f   : > { %860 = vrot.lane.b32.xlu1 %v856_v58, %s2351_s17  ;;  %846 = vrot.lane.b32.xlu2 %v842_v59, %s2352_s19  ;;  %v949_v58 = vmul.f32 %v947_v36, %v2742_v22  ;;  %v935_v59 = vmul.f32 %v933_v37, %v2742_v22  ;;  %v701_v36 = vstv %s2812_s23  ;;  %s2901_s23 = sld [smem:[#allocation5 + $0x34]] }
 0x170   : > { %832 = vrot.lane.b32.xlu0 %v828_v60, %s2350_s26 }
 0x171   : > { %v587_v62 = vpop.permute.xlu2 %586 }
 0x177   : > { %876 = vrot.lane.b32.xlu1 %v871_v1, %s2353_s30  ;;  %862 = vrot.lane.b32.xlu2 %v857_v2, %s2351_s17  ;;  %v983_v1 = vstv %s2774_s7  ;;  %v998_v2 = vmul.f32 %v997_v63, %v2786_v0  ;;  %s1987_s7 = sld [smem:[#allocation5 + $0x15]] }
 0x178   : > { %848 = vrot.lane.b32.xlu0 %v843_v4, %s2352_s19  ;;  %v984_v4 = vmul.f32 %v983_v1, %v2786_v0 }
 0x179   : > { %v559_v5 = vpop.permute.xlu1 %558  ;;  %v2723_v6 = vpop.permute.xlu2 %620 }
 0x17a   : > { %v531_v8 = vpop.permute.xlu0 %530 }
 0x17b   : > { %v535_v17 = vadd.f32 %v531_v8, %v519_v16 }
 0x17d   : > { %v549_v25 = vadd.f32 %v545_v49, %v535_v17 }
 0x17f   : > { %910 = vrot.lane.b32.xlu1 %v906_v12, %s2348_s15  ;;  %896 = vrot.lane.b32.xlu2 %v892_v13, %s2349_s16  ;;  %v563_v34 = vadd.f32 %v559_v5, %v549_v25  ;;  %v962_v5 = vmul.f32 %v961_v56, %v2725_v9  ;;  %v2802_v13 = vld [vmem:[#allocation4 + $0xd] sm:$0xff]  ;;  %v1089_v56 = vstv %s2830_s24  ;;  %s2913_s24 = sld [smem:[#allocation5 + $0x35]] }
 0x180   : > { %874 = vrot.lane.b32.xlu0 %v870_v15, %s2353_s30  ;;  %v1011_v15 = vstv %s2790_s8  ;;  %s2873_s8 = sld [smem:[#allocation5 + $0x30]] }
 0x181   : > { %v585_v18 = vpop.permute.xlu1 %584  ;;  %v2738_v19 = vpop.permute.xlu2 %636  ;;  %v1013_v17 = vmul.f32 %v1011_v15, %v2802_v13 }
 0x182   : > { %v557_v20 = vpop.permute.xlu0 %556 }
 0x183   : > { %v562_v27 = vadd.f32 %v557_v20, %v548_v31  ;;  %v985_v20 = vmul.f32 %v983_v1, %v2802_v13 }
 0x185   : > { %v576_v39 = vadd.f32 %v2705_v55, %v562_v27 }
 0x187   : > { %926 = vrot.lane.b32.xlu1 %v921_v26, %s2350_s26  ;;  %912 = vrot.lane.b32.xlu2 %v907_v29, %s2348_s15  ;;  %v590_v51 = vadd.f32 %v585_v18, %v576_v39  ;;  %v999_v18 = vmul.f32 %v997_v63, %v2802_v13  ;;  %v1039_v26 = vstv %s2800_s21  ;;  %v1025_v29 = vstv %s2804_s18  ;;  %s2882_s21 = sld [smem:[#allocation5 + $0x33]] }
 0x188   : > { %898 = vrot.lane.b32.xlu0 %v893_v30, %s2349_s16  ;;  %s2884_s18 = sld [smem:[#allocation5 + $0x32]] }
 0x189   : > { %v601_v32 = vpop.permute.xlu1 %600  ;;  %v2757_v33 = vpop.permute.xlu2 %662 }
 0x18a   : > { %v573_v35 = vpop.permute.xlu0 %572 }
 0x18b   : > { %v577_v38 = vadd.f32 %v573_v35, %v563_v34  ;;  %v1026_v34 = vmul.f32 %v1025_v29, %v2786_v0  ;;  %v1012_v35 = vmul.f32 %v1011_v15, %v2786_v0 }
 0x18d   : > { %v591_v40 = vadd.f32 %v587_v62, %v577_v38  ;;  %v703_v38 = vmul.f32 %v701_v36, %v2667_v28 }
 0x18f   : > { %952 = vrot.lane.b32.xlu1 %v948_v3, %s2351_s17  ;;  %938 = vrot.lane.b32.xlu2 %v934_v41, %s2352_s19  ;;  %v605_v45 = vadd.f32 %v601_v32, %v591_v40  ;;  %v1040_v32 = vmul.f32 %v1039_v26, %v2786_v0 }
 0x190   : > { %924 = vrot.lane.b32.xlu0 %v920_v43, %s2350_s26  ;;  %v702_v43 = vmul.f32 %v701_v36, %v2659_v21 }
 0x191   : > { %v635_v47 = vpop.permute.xlu1 %634  ;;  %v679_v49 = vpop.permute.xlu2 %678  ;;  %v613_v52 = vadd.f32 %v611_v46, %v605_v45  ;;  %v1053_v45 = vstv %s2819_s27  ;;  %s2909_s27 = sld [smem:[#allocation5 + $0x36]] }
 0x192   : > { %v599_v53 = vpop.permute.xlu0 %598  ;;  %v1055_v28 = vmul.f32 %v1053_v45, %v2802_v13 }
 0x193   : > { %v604_v55 = vadd.f32 %v599_v53, %v590_v51 }
 0x195   : > { %v612_v57 = vadd.f32 %v610_v54, %v604_v55  ;;  %v2845_v55 = vld [vmem:[#allocation4 + $0x6] sm:$0xff] }
 0x197   : > { %968 = vrot.lane.b32.xlu1 %v963_v7, %s2353_s30  ;;  %954 = vrot.lane.b32.xlu2 %v949_v58, %s2351_s17  ;;  %v626_v14 = vadd.f32 %v2723_v6, %v612_v57  ;;  %v1075_v57 = vstv %s2832_s28  ;;  %s1994_s28 = sld [smem:[#allocation5 + $0x1c]] }
 0x198   : > { %940 = vrot.lane.b32.xlu0 %v935_v59, %s2352_s19  ;;  %v1090_v59 = vmul.f32 %v1089_v56, %v2845_v55 }
 0x199   : > { %v651_v60 = vpop.permute.xlu1 %650  ;;  %v2784_v61 = vpop.permute.xlu2 %712  ;;  %v640_v23 = vadd.f32 %v635_v47, %v626_v14  ;;  %v1041_v47 = vmul.f32 %v1039_v26, %v2802_v13  ;;  %v793_v26 = vstv %s1987_s7  ;;  %s2952_s7 = sld [smem:[#allocation5 + $0x3b]] }
 0x19a   : > { %v623_v62 = vpop.permute.xlu0 %622 }
 0x19b   : > { %v627_v8 = vadd.f32 %v623_v62, %v613_v52 }
 0x19d   : > { %v641_v16 = vadd.f32 %v2738_v19, %v627_v8  ;;  %v1103_v8 = vstv %s2849_s4  ;;  %s2924_s4 = sld [smem:[#allocation5 + $0x37]] }
 0x19f   : > { %1002 = vrot.lane.b32.xlu1 %v998_v2, %s2348_s15  ;;  %988 = vrot.lane.b32.xlu2 %v984_v4, %s2349_s16  ;;  %v655_v19 = vadd.f32 %v651_v60, %v641_v16  ;;  %v1076_v60 = vmul.f32 %v1075_v57, %v2845_v55  ;;  %v2860_v4 = vld [vmem:[#allocation4 + $0xe] sm:$0xff] }
 0x1a0   : > { %966 = vrot.lane.b32.xlu0 %v962_v5, %s2353_s30  ;;  %v1077_v14 = vmul.f32 %v1075_v57, %v2860_v4  ;;  %v2911_v57 = vld [vmem:[#allocation4 + $0x20] sm:$0xff] }
 0x1a1   : > { %v677_v10 = vpop.permute.xlu1 %676  ;;  %v2798_v11 = vpop.permute.xlu2 %728 }
 0x1a2   : > { %v649_v12 = vpop.permute.xlu0 %648 }
 0x1a3   : > { %v654_v6 = vadd.f32 %v649_v12, %v640_v23  ;;  %v1091_v12 = vmul.f32 %v1089_v56, %v2860_v4  ;;  %v1117_v23 = vstv %s2862_s6  ;;  %s2935_s6 = sld [smem:[#allocation5 + $0x39]] }
 0x1a5   : > { %v668_v31 = vadd.f32 %v2757_v33, %v654_v6 }
 0x1a7   : > { %1018 = vrot.lane.b32.xlu1 %v1013_v17, %s2350_s26  ;;  %1004 = vrot.lane.b32.xlu2 %v999_v18, %s2348_s15  ;;  %v682_v40 = vadd.f32 %v677_v10, %v668_v31 }
 0x1a8   : > { %990 = vrot.lane.b32.xlu0 %v985_v20, %s2349_s16  ;;  %v1131_v20 = vstv %s2858_s5  ;;  %s2933_s5 = sld [smem:[#allocation5 + $0x3a]] }
 0x1a9   : > { %v693_v48 = vpop.permute.xlu1 %692  ;;  %v755_v24 = vpop.permute.xlu2 %754 }
 0x1aa   : > { %v665_v25 = vpop.permute.xlu0 %664 }
 0x1ab   : > { %v669_v30 = vadd.f32 %v665_v25, %v655_v19  ;;  %v1118_v19 = vmul.f32 %v1117_v23, %v2845_v55  ;;  %v1104_v25 = vmul.f32 %v1103_v8, %v2845_v55 }
 0x1ad   : > { %v683_v27 = vadd.f32 %v679_v49, %v669_v30  ;;  %v1027_v49 = vmul.f32 %v1025_v29, %v2802_v13  ;;  %v795_v30 = vmul.f32 %v793_v26, %v2697_v50  ;;  %v1133_v50 = vmul.f32 %v1131_v20, %v2860_v4 }
 0x1af   : > { %1044 = vrot.lane.b32.xlu1 %v1040_v32, %s2351_s17  ;;  %1030 = vrot.lane.b32.xlu2 %v1026_v34, %s2352_s19  ;;  %v697_v37 = vadd.f32 %v693_v48, %v683_v27 }
 0x1b0   : > { %1016 = vrot.lane.b32.xlu0 %v1012_v35, %s2350_s26  ;;  %v794_v35 = vmul.f32 %v793_v26, %v2689_v42  ;;  %v1237_v26 = vstv %s2924_s4  ;;  %s3011_s4 = sld [smem:[#allocation5 + $0x44]] }
 0x1b1   : > { %v727_v39 = vpop.permute.xlu1 %726  ;;  %v771_v33 = vpop.permute.xlu2 %770  ;;  %v705_v3 = vadd.f32 %v703_v38, %v697_v37  ;;  %v1145_v37 = vstv %s2873_s8  ;;  %s2960_s8 = sld [smem:[#allocation5 + $0x3d]] }
 0x1b2   : > { %v691_v41 = vpop.permute.xlu0 %690 }
 0x1b3   : > { %v696_v44 = vadd.f32 %v691_v41, %v682_v40 }
 0x1b5   : > { %v704_v46 = vadd.f32 %v702_v43, %v696_v44  ;;  %v2897_v44 = vld [vmem:[#allocation4 + $0x18] sm:$0xff] }
 0x1b7   : > { %1060 = vrot.lane.b32.xlu1 %v1055_v28, %s2353_s30  ;;  %1046 = vrot.lane.b32.xlu2 %v1041_v47, %s2351_s17  ;;  %v718_v51 = vadd.f32 %v2784_v61, %v704_v46  ;;  %v1054_v61 = vmul.f32 %v1053_v45, %v2786_v0  ;;  %v1181_v45 = vstv %s2882_s21  ;;  %v1167_v46 = vstv %s2884_s18  ;;  %s2964_s21 = sld [smem:[#allocation5 + $0x3c]] }
 0x1b8   : > { %1032 = vrot.lane.b32.xlu0 %v1027_v49, %s2352_s19  ;;  %v1182_v49 = vmul.f32 %v1181_v45, %v2897_v44  ;;  %s2001_s18 = sld [smem:[#allocation5 + $0x23]] }
 0x1b9   : > { %v743_v21 = vpop.permute.xlu1 %742  ;;  %v2843_v52 = vpop.permute.xlu2 %804  ;;  %v732_v53 = vadd.f32 %v727_v39, %v718_v51  ;;  %v1147_v39 = vmul.f32 %v1145_v37, %v2860_v4  ;;  %v1168_v51 = vmul.f32 %v1167_v46, %v2897_v44 }
 0x1ba   : > { %v715_v54 = vpop.permute.xlu0 %714 }
 0x1bb   : > { %v719_v7 = vadd.f32 %v715_v54, %v705_v3 }
 0x1bd   : > { %v733_v58 = vadd.f32 %v2798_v11, %v719_v7  ;;  %v1105_v11 = vmul.f32 %v1103_v8, %v2860_v4  ;;  %v1223_v8 = vstv %s2909_s27  ;;  %s2984_s27 = sld [smem:[#allocation5 + $0x41]] }
 0x1bf   : > { %1094 = vrot.lane.b32.xlu1 %v1090_v59, %s2348_s15  ;;  %1080 = vrot.lane.b32.xlu2 %v1076_v60, %s2349_s16  ;;  %v747_v62 = vadd.f32 %v743_v21, %v733_v58  ;;  %v1146_v21 = vmul.f32 %v1145_v37, %v2845_v55  ;;  %v1195_v58 = vstv %s2901_s23  ;;  %v1273_v37 = vstv %s2933_s5  ;;  %s2975_s23 = sld [smem:[#allocation5 + $0x3e]] }
 0x1c0   : > { %1058 = vrot.lane.b32.xlu0 %v1054_v61, %s2353_s30  ;;  %v1197_v60 = vmul.f32 %v1195_v58, %v2911_v57  ;;  %v1183_v61 = vmul.f32 %v1181_v45, %v2911_v57  ;;  %s3015_s5 = sld [smem:[#allocation5 + $0x43]] }
 0x1c1   : > { %v769_v63 = vpop.permute.xlu1 %768  ;;  %v821_v1 = vpop.permute.xlu2 %820 }
 0x1c2   : > { %v741_v2 = vpop.permute.xlu0 %740 }
 0x1c3   : > { %v746_v5 = vadd.f32 %v741_v2, %v732_v53 }
 0x1c5   : > { %v760_v10 = vadd.f32 %v755_v24, %v746_v5  ;;  %v1132_v24 = vmul.f32 %v1131_v20, %v2845_v55 }
 0x1c7   : > { %1110 = vrot.lane.b32.xlu1 %v1105_v11, %s2350_s26  ;;  %1096 = vrot.lane.b32.xlu2 %v1091_v12, %s2348_s15  ;;  %v774_v15 = vadd.f32 %v769_v63, %v760_v10  ;;  %v1209_v10 = vstv %s2913_s24  ;;  %s2986_s24 = sld [smem:[#allocation5 + $0x40]] }
 0x1c8   : > { %1082 = vrot.lane.b32.xlu0 %v1077_v14, %s2349_s16  ;;  %v1224_v14 = vmul.f32 %v1223_v8, %v2897_v44 }
 0x1c9   : > { %v785_v16 = vpop.permute.xlu1 %784  ;;  %v847_v17 = vpop.permute.xlu2 %846 }
 0x1ca   : > { %v757_v18 = vpop.permute.xlu0 %756 }
 0x1cb   : > { %v761_v6 = vadd.f32 %v757_v18, %v747_v62  ;;  %v1169_v62 = vmul.f32 %v1167_v46, %v2911_v57  ;;  %v2962_v46 = vld [vmem:[#allocation4 + $0x21] sm:$0xff] }
 0x1cd   : > { %v775_v48 = vadd.f32 %v771_v33, %v761_v6  ;;  %v1119_v33 = vmul.f32 %v1117_v23, %v2860_v4 }
 0x1cf   : > { %1136 = vrot.lane.b32.xlu1 %v1132_v24, %s2351_s17  ;;  %1122 = vrot.lane.b32.xlu2 %v1118_v19, %s2352_s19  ;;  %v789_v29 = vadd.f32 %v785_v16, %v775_v48  ;;  %v1196_v16 = vmul.f32 %v1195_v58, %v2897_v44  ;;  %v1315_v58 = vstv %s2960_s8  ;;  %s3035_s8 = sld [smem:[#allocation5 + $0x48]] }
 0x1d0   : > { %1108 = vrot.lane.b32.xlu0 %v1104_v25, %s2350_s26 }
 0x1d1   : > { %v819_v31 = vpop.permute.xlu1 %818  ;;  %v863_v27 = vpop.permute.xlu2 %862  ;;  %v797_v32 = vadd.f32 %v795_v30, %v789_v29  ;;  %v1239_v30 = vmul.f32 %v1237_v26, %v2911_v57 }
 0x1d2   : > { %v783_v34 = vpop.permute.xlu0 %782 }
 0x1d3   : > { %v788_v36 = vadd.f32 %v783_v34, %v774_v15  ;;  %v1210_v15 = vmul.f32 %v1209_v10, %v2897_v44 }
 0x1d5   : > { %v796_v38 = vadd.f32 %v794_v35, %v788_v36  ;;  %v2948_v36 = vld [vmem:[#allocation4 + $0x19] sm:$0xff] }
 0x1d7   : > { %1152 = vrot.lane.b32.xlu1 %v1147_v39, %s2353_s30  ;;  %1138 = vrot.lane.b32.xlu2 %v1133_v50, %s2351_s17  ;;  %v810_v40 = vadd.f32 %v2843_v52, %v796_v38  ;;  %v1259_v38 = vstv %s2935_s6  ;;  %s2008_s6 = sld [smem:[#allocation5 + $0x2a]] }
 0x1d8   : > { %1124 = vrot.lane.b32.xlu0 %v1119_v33, %s2352_s19  ;;  %v1274_v33 = vmul.f32 %v1273_v37, %v2948_v36 }
 0x1d9   : > { %v835_v42 = vpop.permute.xlu1 %834  ;;  %v2895_v3 = vpop.permute.xlu2 %896  ;;  %v824_v41 = vadd.f32 %v819_v31, %v810_v40  ;;  %v1211_v31 = vmul.f32 %v1209_v10, %v2911_v57  ;;  %v1260_v40 = vmul.f32 %v1259_v38, %v2948_v36 }
 0x1da   : > { %v807_v43 = vpop.permute.xlu0 %806 }
 0x1db   : > { %v811_v28 = vadd.f32 %v807_v43, %v797_v32 }
 0x1dd   : > { %v825_v47 = vadd.f32 %v821_v1, %v811_v28 }
 0x1df   : > { %1186 = vrot.lane.b32.xlu1 %v1182_v49, %s2348_s15  ;;  %1172 = vrot.lane.b32.xlu2 %v1168_v51, %s2349_s16  ;;  %v839_v52 = vadd.f32 %v835_v42, %v825_v47  ;;  %v1238_v42 = vmul.f32 %v1237_v26, %v2897_v44  ;;  %v1287_v47 = vstv %s2952_s7  ;;  %v1365_v26 = vstv %s2984_s27  ;;  %s3026_s7 = sld [smem:[#allocation5 + $0x45]] }
 0x1e0   : > { %1150 = vrot.lane.b32.xlu0 %v1146_v21, %s2353_s30  ;;  %v1289_v51 = vmul.f32 %v1287_v47, %v2962_v46  ;;  %v1275_v21 = vmul.f32 %v1273_v37, %v2962_v46  ;;  %s3066_s27 = sld [smem:[#allocation5 + $0x4a]] }
 0x1e1   : > { %v861_v53 = vpop.permute.xlu1 %860  ;;  %v913_v54 = vpop.permute.xlu2 %912 }
 0x1e2   : > { %v833_v56 = vpop.permute.xlu0 %832 }
 0x1e3   : > { %v838_v7 = vadd.f32 %v833_v56, %v824_v41 }
 0x1e5   : > { %v852_v59 = vadd.f32 %v847_v17, %v838_v7  ;;  %v885_v17 = vstv %s1994_s28  ;;  %s3003_s28 = sld [smem:[#allocation5 + $0x42]] }
 0x1e6   : > { %v887_v20 = vmul.f32 %v885_v17, %v2742_v22  ;;  %v886_v19 = vmul.f32 %v885_v17, %v2725_v9  ;;  %v1225_v22 = vmul.f32 %v1223_v8, %v2911_v57  ;;  %v1329_v17 = vstv %s2975_s23  ;;  %s3062_s23 = sld [smem:[#allocation5 + $0x4b]] }
 0x1e7   : > { %1202 = vrot.lane.b32.xlu1 %v1197_v60, %s2350_s26  ;;  %1188 = vrot.lane.b32.xlu2 %v1183_v61, %s2348_s15  ;;  %v866_v63 = vadd.f32 %v861_v53, %v852_v59  ;;  %v1301_v59 = vstv %s2964_s21  ;;  %s3037_s21 = sld [smem:[#allocation5 + $0x47]] }
 0x1e8   : > { %1174 = vrot.lane.b32.xlu0 %v1169_v62, %s2349_s16  ;;  %v1316_v62 = vmul.f32 %v1315_v58, %v2948_v36 }
 0x1e9   : > { %v877_v1 = vpop.permute.xlu1 %876  ;;  %v939_v2 = vpop.permute.xlu2 %938 }
 0x1ea   : > { %v849_v5 = vpop.permute.xlu0 %848 }
 0x1eb   : > { %v853_v11 = vadd.f32 %v849_v5, %v839_v52  ;;  %v1261_v52 = vmul.f32 %v1259_v38, %v2962_v46  ;;  %v3013_v38 = vld [vmem:[#allocation4 + $0x22] sm:$0xff] }
 0x1ed   : > { %v867_v12 = vadd.f32 %v863_v27, %v853_v11 }
 0x1ef   : > { %1228 = vrot.lane.b32.xlu1 %v1224_v14, %s2351_s17  ;;  %1214 = vrot.lane.b32.xlu2 %v1210_v15, %s2352_s19  ;;  %v881_v18 = vadd.f32 %v877_v1, %v867_v12  ;;  %v1288_v1 = vmul.f32 %v1287_v47, %v2948_v36  ;;  %v1407_v47 = vstv %s3011_s4  ;;  %s3086_s4 = sld [smem:[#allocation5 + $0x4f]] }
 0x1f0   : > { %1200 = vrot.lane.b32.xlu0 %v1196_v16, %s2350_s26 }
 0x1f1   : > { %v911_v23 = vpop.permute.xlu1 %910  ;;  %v955_v6 = vpop.permute.xlu2 %954  ;;  %v889_v48 = vadd.f32 %v887_v20, %v881_v18  ;;  %v1331_v20 = vmul.f32 %v1329_v17, %v2962_v46 }
 0x1f2   : > { %v875_v24 = vpop.permute.xlu0 %874 }
 0x1f3   : > { %v880_v25 = vadd.f32 %v875_v24, %v866_v63  ;;  %v1302_v63 = vmul.f32 %v1301_v59, %v2948_v36 }
 0x1f5   : > { %v888_v29 = vadd.f32 %v886_v19, %v880_v25  ;;  %v2999_v25 = vld [vmem:[#allocation4 + $0x1a] sm:$0xff] }
 0x1f7   : > { %1244 = vrot.lane.b32.xlu1 %v1239_v30, %s2353_s30  ;;  %1230 = vrot.lane.b32.xlu2 %v1225_v22, %s2351_s17  ;;  %v902_v27 = vadd.f32 %v2895_v3, %v888_v29  ;;  %v1351_v29 = vstv %s2986_s24  ;;  %s2015_s24 = sld [smem:[#allocation5 + $0x31]] }
 0x1f8   : > { %1216 = vrot.lane.b32.xlu0 %v1211_v31, %s2352_s19  ;;  %v1366_v31 = vmul.f32 %v1365_v26, %v2999_v25 }
 0x1f9   : > { %v927_v9 = vpop.permute.xlu1 %926  ;;  %v2946_v32 = vpop.permute.xlu2 %988  ;;  %v916_v34 = vadd.f32 %v911_v23, %v902_v27  ;;  %v1303_v23 = vmul.f32 %v1301_v59, %v2962_v46  ;;  %v1352_v27 = vmul.f32 %v1351_v29, %v2999_v25 }
 0x1fa   : > { %v899_v35 = vpop.permute.xlu0 %898 }
 0x1fb   : > { %v903_v39 = vadd.f32 %v899_v35, %v889_v48 }
 0x1fd   : > { %v917_v50 = vadd.f32 %v913_v54, %v903_v39 }
 0x1ff   : > { %1278 = vrot.lane.b32.xlu1 %v1274_v33, %s2348_s15  ;;  %1264 = vrot.lane.b32.xlu2 %v1260_v40, %s2349_s16  ;;  %v931_v3 = vadd.f32 %v927_v9, %v917_v50  ;;  %v1330_v9 = vmul.f32 %v1329_v17, %v2948_v36  ;;  %v1379_v50 = vstv %s3003_s28  ;;  %v1457_v17 = vstv %s3035_s8  ;;  %s3077_s28 = sld [smem:[#allocation5 + $0x4c]] }
 0x200   : > { %1242 = vrot.lane.b32.xlu0 %v1238_v42, %s2353_s30  ;;  %v1381_v40 = vmul.f32 %v1379_v50, %v3013_v38  ;;  %v1367_v42 = vmul.f32 %v1365_v26, %v3013_v38  ;;  %s3117_s8 = sld [smem:[#allocation5 + $0x51]] }
 0x201   : > { %v953_v41 = vpop.permute.xlu1 %952  ;;  %v1005_v43 = vpop.permute.xlu2 %1004 }
 0x202   : > { %v925_v45 = vpop.permute.xlu0 %924 }
 0x203   : > { %v930_v28 = vadd.f32 %v925_v45, %v916_v34 }
 0x205   : > { %v944_v49 = vadd.f32 %v939_v2, %v930_v28  ;;  %v977_v2 = vstv %s2001_s18  ;;  %s3054_s18 = sld [smem:[#allocation5 + $0x49]] }
 0x206   : > { %v979_v8 = vmul.f32 %v977_v2, %v2802_v13  ;;  %v978_v15 = vmul.f32 %v977_v2, %v2786_v0  ;;  %v1317_v13 = vmul.f32 %v1315_v58, %v2962_v46  ;;  %v1421_v2 = vstv %s3026_s7  ;;  %s3113_s7 = sld [smem:[#allocation5 + $0x52]] }
 0x207   : > { %1294 = vrot.lane.b32.xlu1 %v1289_v51, %s2350_s26  ;;  %1280 = vrot.lane.b32.xlu2 %v1275_v21, %s2348_s15  ;;  %v958_v53 = vadd.f32 %v953_v41, %v944_v49  ;;  %v1393_v49 = vstv %s3015_s5  ;;  %s3088_s5 = sld [smem:[#allocation5 + $0x4e]] }
 0x208   : > { %1266 = vrot.lane.b32.xlu0 %v1261_v52, %s2349_s16  ;;  %v1408_v52 = vmul.f32 %v1407_v47, %v2999_v25 }
 0x209   : > { %v969_v54 = vpop.permute.xlu1 %968  ;;  %v1031_v56 = vpop.permute.xlu2 %1030 }
 0x20a   : > { %v941_v7 = vpop.permute.xlu0 %940 }
 0x20b   : > { %v945_v60 = vadd.f32 %v941_v7, %v931_v3  ;;  %v1353_v3 = vmul.f32 %v1351_v29, %v3013_v38  ;;  %v3064_v29 = vld [vmem:[#allocation4 + $0x23] sm:$0xff] }
 0x20d   : > { %v959_v61 = vadd.f32 %v955_v6, %v945_v60 }
 0x20f   : > { %1320 = vrot.lane.b32.xlu1 %v1316_v62, %s2351_s17  ;;  %1306 = vrot.lane.b32.xlu2 %v1302_v63, %s2352_s19  ;;  %v973_v5 = vadd.f32 %v969_v54, %v959_v61  ;;  %v1380_v54 = vmul.f32 %v1379_v50, %v2999_v25  ;;  %v1499_v50 = vstv %s3062_s23  ;;  %s3137_s23 = sld [smem:[#allocation5 + $0x56]] }
 0x210   : > { %1292 = vrot.lane.b32.xlu0 %v1288_v1, %s2350_s26 }
 0x211   : > { %v1003_v10 = vpop.permute.xlu1 %1002  ;;  %v1047_v11 = vpop.permute.xlu2 %1046  ;;  %v981_v12 = vadd.f32 %v979_v8, %v973_v5  ;;  %v1423_v8 = vmul.f32 %v1421_v2, %v3013_v38 }
 0x212   : > { %v967_v14 = vpop.permute.xlu0 %966 }
 0x213   : > { %v972_v16 = vadd.f32 %v967_v14, %v958_v53  ;;  %v1394_v53 = vmul.f32 %v1393_v49, %v2999_v25 }
 0x215   : > { %v980_v18 = vadd.f32 %v978_v15, %v972_v16  ;;  %v3050_v16 = vld [vmem:[#allocation4 + $0x1b] sm:$0xff] }
 0x217   : > { %1336 = vrot.lane.b32.xlu1 %v1331_v20, %s2353_s30  ;;  %1322 = vrot.lane.b32.xlu2 %v1317_v13, %s2351_s17  ;;  %v994_v6 = vadd.f32 %v2946_v32, %v980_v18  ;;  %v1443_v18 = vstv %s3037_s21  ;;  %s2022_s21 = sld [smem:[#allocation5 + $0x38]] }
 0x218   : > { %1308 = vrot.lane.b32.xlu0 %v1303_v23, %s2352_s19  ;;  %v1458_v23 = vmul.f32 %v1457_v17, %v3050_v16 }
 0x219   : > { %v1019_v0 = vpop.permute.xlu1 %1018  ;;  %v2997_v48 = vpop.permute.xlu2 %1080  ;;  %v1008_v24 = vadd.f32 %v1003_v10, %v994_v6  ;;  %v1395_v10 = vmul.f32 %v1393_v49, %v3013_v38  ;;  %v1444_v6 = vmul.f32 %v1443_v18, %v3050_v16 }
 0x21a   : > { %v991_v19 = vpop.permute.xlu0 %990 }
 0x21b   : > { %v995_v30 = vadd.f32 %v991_v19, %v981_v12 }
 0x21d   : > { %v1009_v22 = vadd.f32 %v1005_v43, %v995_v30 }
 0x21f   : > { %1370 = vrot.lane.b32.xlu1 %v1366_v31, %s2348_s15  ;;  %1356 = vrot.lane.b32.xlu2 %v1352_v27, %s2349_s16  ;;  %v1023_v32 = vadd.f32 %v1019_v0, %v1009_v22  ;;  %v1422_v0 = vmul.f32 %v1421_v2, %v2999_v25  ;;  %v1471_v22 = vstv %s3054_s18  ;;  %v1549_v2 = vstv %s3086_s4  ;;  %s3128_s18 = sld [smem:[#allocation5 + $0x53]] }
 0x220   : > { %1334 = vrot.lane.b32.xlu0 %v1330_v9, %s2353_s30  ;;  %v1473_v27 = vmul.f32 %v1471_v22, %v3064_v29  ;;  %v1459_v9 = vmul.f32 %v1457_v17, %v3064_v29  ;;  %s3168_s4 = sld [smem:[#allocation5 + $0x58]] }
 0x221   : > { %v1045_v34 = vpop.permute.xlu1 %1044  ;;  %v1097_v35 = vpop.permute.xlu2 %1096 }
 0x222   : > { %v1017_v37 = vpop.permute.xlu0 %1016 }
 0x223   : > { %v1022_v39 = vadd.f32 %v1017_v37, %v1008_v24 }
 0x225   : > { %v1036_v33 = vadd.f32 %v1031_v56, %v1022_v39  ;;  %v1069_v56 = vstv %s2008_s6  ;;  %s3105_s6 = sld [smem:[#allocation5 + $0x50]] }
 0x226   : > { %v1071_v58 = vmul.f32 %v1069_v56, %v2860_v4  ;;  %v1070_v63 = vmul.f32 %v1069_v56, %v2845_v55  ;;  %v1409_v4 = vmul.f32 %v1407_v47, %v3013_v38  ;;  %v1513_v56 = vstv %s3077_s28  ;;  %s3164_s28 = sld [smem:[#allocation5 + $0x59]] }
 0x227   : > { %1386 = vrot.lane.b32.xlu1 %v1381_v40, %s2350_s26  ;;  %1372 = vrot.lane.b32.xlu2 %v1367_v42, %s2348_s15  ;;  %v1050_v41 = vadd.f32 %v1045_v34, %v1036_v33  ;;  %v1485_v33 = vstv %s3066_s27  ;;  %s3139_s27 = sld [smem:[#allocation5 + $0x55]] }
 0x228   : > { %1358 = vrot.lane.b32.xlu0 %v1353_v3, %s2349_s16  ;;  %v1500_v3 = vmul.f32 %v1499_v50, %v3050_v16 }
 0x229   : > { %v1061_v43 = vpop.permute.xlu1 %1060  ;;  %v1123_v45 = vpop.permute.xlu2 %1122 }
 0x22a   : > { %v1033_v28 = vpop.permute.xlu0 %1032 }
 0x22b   : > { %v1037_v51 = vadd.f32 %v1033_v28, %v1023_v32  ;;  %v1445_v32 = vmul.f32 %v1443_v18, %v3064_v29  ;;  %v3115_v18 = vld [vmem:[#allocation4 + $0x24] sm:$0xff] }
 0x22d   : > { %v1051_v21 = vadd.f32 %v1047_v11, %v1037_v51 }
 0x22f   : > { %1412 = vrot.lane.b32.xlu1 %v1408_v52, %s2351_s17  ;;  %1398 = vrot.lane.b32.xlu2 %v1394_v53, %s2352_s19  ;;  %v1065_v7 = vadd.f32 %v1061_v43, %v1051_v21  ;;  %v1472_v43 = vmul.f32 %v1471_v22, %v3050_v16  ;;  %v1591_v22 = vstv %s3113_s7  ;;  %s3188_s7 = sld [smem:[#allocation5 + $0x5d]] }
 0x230   : > { %1384 = vrot.lane.b32.xlu0 %v1380_v54, %s2350_s26 }
 0x231   : > { %v1095_v59 = vpop.permute.xlu1 %1094  ;;  %v1139_v60 = vpop.permute.xlu2 %1138  ;;  %v1073_v61 = vadd.f32 %v1071_v58, %v1065_v7  ;;  %v1515_v58 = vmul.f32 %v1513_v56, %v3064_v29 }
 0x232   : > { %v1059_v62 = vpop.permute.xlu0 %1058 }
 0x233   : > { %v1064_v1 = vadd.f32 %v1059_v62, %v1050_v41  ;;  %v1486_v41 = vmul.f32 %v1485_v33, %v3050_v16 }
 0x235   : > { %v1072_v5 = vadd.f32 %v1070_v63, %v1064_v1  ;;  %v3101_v1 = vld [vmem:[#allocation4 + $0x1c] sm:$0xff] }
 0x237   : > { %1428 = vrot.lane.b32.xlu1 %v1423_v8, %s2353_s30  ;;  %1414 = vrot.lane.b32.xlu2 %v1409_v4, %s2351_s17  ;;  %v1086_v11 = vadd.f32 %v2997_v48, %v1072_v5  ;;  %v1535_v5 = vstv %s3088_s5  ;;  %s2029_s5 = sld [smem:[#allocation5 + $0x3f]] }
 0x238   : > { %1400 = vrot.lane.b32.xlu0 %v1395_v10, %s2352_s19  ;;  %v1550_v10 = vmul.f32 %v1549_v2, %v3101_v1 }
 0x239   : > { %v1111_v55 = vpop.permute.xlu1 %1110  ;;  %v3048_v12 = vpop.permute.xlu2 %1172  ;;  %v1100_v14 = vadd.f32 %v1095_v59, %v1086_v11  ;;  %v1487_v59 = vmul.f32 %v1485_v33, %v3064_v29  ;;  %v1536_v11 = vmul.f32 %v1535_v5, %v3101_v1 }
 0x23a   : > { %v1083_v15 = vpop.permute.xlu0 %1082 }
 0x23b   : > { %v1087_v20 = vadd.f32 %v1083_v15, %v1073_v61 }
 0x23d   : > { %v1101_v13 = vadd.f32 %v1097_v35, %v1087_v20 }
 0x23f   : > { %1462 = vrot.lane.b32.xlu1 %v1458_v23, %s2348_s15  ;;  %1448 = vrot.lane.b32.xlu2 %v1444_v6, %s2349_s16  ;;  %v1115_v48 = vadd.f32 %v1111_v55, %v1101_v13  ;;  %v1514_v55 = vmul.f32 %v1513_v56, %v3050_v16  ;;  %v1563_v13 = vstv %s3105_s6  ;;  %v1641_v56 = vstv %s3137_s23  ;;  %s3179_s6 = sld [smem:[#allocation5 + $0x5a]] }
 0x240   : > { %1426 = vrot.lane.b32.xlu0 %v1422_v0, %s2353_s30  ;;  %v1565_v6 = vmul.f32 %v1563_v13, %v3115_v18  ;;  %v1551_v0 = vmul.f32 %v1549_v2, %v3115_v18  ;;  %s3219_s23 = sld [smem:[#allocation5 + $0x5f]] }
 0x241   : > { %v1137_v24 = vpop.permute.xlu1 %1136  ;;  %v1189_v19 = vpop.permute.xlu2 %1188 }
 0x242   : > { %v1109_v26 = vpop.permute.xlu0 %1108 }
 0x243   : > { %v1114_v30 = vadd.f32 %v1109_v26, %v1100_v14 }
 0x245   : > { %v1128_v31 = vadd.f32 %v1123_v45, %v1114_v30  ;;  %v1161_v45 = vstv %s2015_s24  ;;  %s3156_s24 = sld [smem:[#allocation5 + $0x57]] }
 0x246   : > { %v1163_v47 = vmul.f32 %v1161_v45, %v2911_v57  ;;  %v1162_v53 = vmul.f32 %v1161_v45, %v2897_v44  ;;  %v1501_v57 = vmul.f32 %v1499_v50, %v3064_v29  ;;  %v1605_v45 = vstv %s3128_s18  ;;  %s3215_s18 = sld [smem:[#allocation5 + $0x60]] }
 0x247   : > { %1478 = vrot.lane.b32.xlu1 %v1473_v27, %s2350_s26  ;;  %1464 = vrot.lane.b32.xlu2 %v1459_v9, %s2348_s15  ;;  %v1142_v34 = vadd.f32 %v1137_v24, %v1128_v31  ;;  %v1577_v31 = vstv %s3117_s8  ;;  %s3190_s8 = sld [smem:[#allocation5 + $0x5c]] }
 0x248   : > { %1450 = vrot.lane.b32.xlu0 %v1445_v32, %s2349_s16  ;;  %v1592_v32 = vmul.f32 %v1591_v22, %v3101_v1 }
 0x249   : > { %v1153_v35 = vpop.permute.xlu1 %1152  ;;  %v1215_v37 = vpop.permute.xlu2 %1214 }
 0x24a   : > { %v1125_v39 = vpop.permute.xlu0 %1124 }
 0x24b   : > { %v1129_v40 = vadd.f32 %v1125_v39, %v1115_v48  ;;  %v1537_v48 = vmul.f32 %v1535_v5, %v3115_v18  ;;  %v3166_v5 = vld [vmem:[#allocation4 + $0x25] sm:$0xff] }
 0x24d   : > { %v1143_v42 = vadd.f32 %v1139_v60, %v1129_v40 }
 0x24f   : > { %1504 = vrot.lane.b32.xlu1 %v1500_v3, %s2351_s17  ;;  %1490 = vrot.lane.b32.xlu2 %v1486_v41, %s2352_s19  ;;  %v1157_v28 = vadd.f32 %v1153_v35, %v1143_v42  ;;  %v1564_v35 = vmul.f32 %v1563_v13, %v3101_v1  ;;  %v1683_v13 = vstv %s3164_s28 }
 0x250   : > { %1476 = vrot.lane.b32.xlu0 %v1472_v43, %s2350_s26 }
 0x251   : > { %v1187_v49 = vpop.permute.xlu1 %1186  ;;  %v1231_v51 = vpop.permute.xlu2 %1230  ;;  %v1165_v21 = vadd.f32 %v1163_v47, %v1157_v28  ;;  %v1607_v47 = vmul.f32 %v1605_v45, %v3115_v18 }
 0x252   : > { %v1151_v52 = vpop.permute.xlu0 %1150 }
 0x253   : > { %v1156_v54 = vadd.f32 %v1151_v52, %v1142_v34  ;;  %v1578_v34 = vmul.f32 %v1577_v31, %v3101_v1 }
 0x255   : > { %v1164_v7 = vadd.f32 %v1162_v53, %v1156_v54  ;;  %v3152_v54 = vld [vmem:[#allocation4 + $0x1d] sm:$0xff] }
 0x257   : > { %1520 = vrot.lane.b32.xlu1 %v1515_v58, %s2353_s30  ;;  %1506 = vrot.lane.b32.xlu2 %v1501_v57, %s2351_s17  ;;  %v1178_v60 = vadd.f32 %v3048_v12, %v1164_v7  ;;  %v1627_v7 = vstv %s3139_s27  ;;  %s2036_s27 = sld [smem:[#allocation5 + $0x46]] }
 0x258   : > { %1492 = vrot.lane.b32.xlu0 %v1487_v59, %s2352_s19  ;;  %v1642_v59 = vmul.f32 %v1641_v56, %v3152_v54 }
 0x259   : > { %v1203_v44 = vpop.permute.xlu1 %1202  ;;  %v3099_v61 = vpop.permute.xlu2 %1264  ;;  %v1192_v62 = vadd.f32 %v1187_v49, %v1178_v60  ;;  %v1579_v49 = vmul.f32 %v1577_v31, %v3115_v18  ;;  %v1628_v60 = vmul.f32 %v1627_v7, %v3152_v54 }
 0x25a   : > { %v1175_v63 = vpop.permute.xlu0 %1174 }
 0x25b   : > { %v1179_v8 = vadd.f32 %v1175_v63, %v1165_v21 }
 0x25d   : > { %v1193_v4 = vadd.f32 %v1189_v19, %v1179_v8 }
 0x25f   : > { %1554 = vrot.lane.b32.xlu1 %v1550_v10, %s2348_s15  ;;  %1540 = vrot.lane.b32.xlu2 %v1536_v11, %s2349_s16  ;;  %v1207_v12 = vadd.f32 %v1203_v44, %v1193_v4  ;;  %v1606_v44 = vmul.f32 %v1605_v45, %v3101_v1  ;;  %v1655_v4 = vstv %s3156_s24  ;;  %v1733_v45 = vstv %s3188_s7  ;;  %s3230_s24 = sld [smem:[#allocation5 + $0x61]]  ;;  %s1844_s7 = scalar_lea.sflag [#allocation7], %s2470_s22 }
 0x260   : > { %1518 = vrot.lane.b32.xlu0 %v1514_v55, %s2353_s30  ;;  %v1657_v11 = vmul.f32 %v1655_v4, %v3166_v5  ;;  %v1643_v55 = vmul.f32 %v1641_v56, %v3166_v5 }
 0x261   : > { %v1229_v14 = vpop.permute.xlu1 %1228  ;;  %v1281_v15 = vpop.permute.xlu2 %1280 }
 0x262   : > { %v1201_v17 = vpop.permute.xlu0 %1200 }
 0x263   : > { %v1206_v20 = vadd.f32 %v1201_v17, %v1192_v62 }
 0x265   : > { %v1220_v23 = vadd.f32 %v1215_v37, %v1206_v20  ;;  %v1253_v37 = vstv %s2022_s21  ;;  %s3207_s21 = sld [smem:[#allocation5 + $0x5e]] }
 0x266   : > { %v1255_v50 = vmul.f32 %v1253_v37, %v2962_v46  ;;  %v1254_v41 = vmul.f32 %v1253_v37, %v2948_v36  ;;  %v1593_v46 = vmul.f32 %v1591_v22, %v3115_v18  ;;  %v1697_v37 = vstv %s3179_s6 }
 0x267   : > { %1570 = vrot.lane.b32.xlu1 %v1565_v6, %s2350_s26  ;;  %1556 = vrot.lane.b32.xlu2 %v1551_v0, %s2348_s15  ;;  %v1234_v24 = vadd.f32 %v1229_v14, %v1220_v23  ;;  %v1669_v23 = vstv %s3168_s4 }
 0x268   : > { %1542 = vrot.lane.b32.xlu0 %v1537_v48, %s2349_s16  ;;  %v1684_v48 = vmul.f32 %v1683_v13, %v3152_v54 }
 0x269   : > { %v1245_v19 = vpop.permute.xlu1 %1244  ;;  %v1307_v26 = vpop.permute.xlu2 %1306 }
 0x26a   : > { %v1217_v30 = vpop.permute.xlu0 %1216 }
 0x26b   : > { %v1221_v27 = vadd.f32 %v1217_v30, %v1207_v12  ;;  %v1629_v12 = vmul.f32 %v1627_v7, %v3166_v5  ;;  %v3217_v7 = vld [vmem:[#allocation4 + $0x26] sm:$0xff] }
 0x26d   : > { %v1235_v9 = vadd.f32 %v1231_v51, %v1221_v27 }
 0x26f   : > { %1596 = vrot.lane.b32.xlu1 %v1592_v32, %s2351_s17  ;;  %1582 = vrot.lane.b32.xlu2 %v1578_v34, %s2352_s19  ;;  %v1249_v39 = vadd.f32 %v1245_v19, %v1235_v9  ;;  %v1656_v19 = vmul.f32 %v1655_v4, %v3152_v54  ;;  %v1775_v4 = vstv %s3215_s18 }
 0x270   : > { %1568 = vrot.lane.b32.xlu0 %v1564_v35, %s2350_s26 }
 0x271   : > { %v1279_v33 = vpop.permute.xlu1 %1278  ;;  %v1323_v40 = vpop.permute.xlu2 %1322  ;;  %v1257_v42 = vadd.f32 %v1255_v50, %v1249_v39  ;;  %v1699_v50 = vmul.f32 %v1697_v37, %v3166_v5 }
 0x272   : > { %v1243_v3 = vpop.permute.xlu0 %1242 }
 0x273   : > { %v1248_v43 = vadd.f32 %v1243_v3, %v1234_v24  ;;  %v1670_v24 = vmul.f32 %v1669_v23, %v3152_v54 }
 0x275   : > { %v1256_v28 = vadd.f32 %v1254_v41, %v1248_v43  ;;  %v3203_v43 = vld [vmem:[#allocation4 + $0x1e] sm:$0xff] }
 0x277   : > { %1612 = vrot.lane.b32.xlu1 %v1607_v47, %s2353_s30  ;;  %1598 = vrot.lane.b32.xlu2 %v1593_v46, %s2351_s17  ;;  %v1270_v51 = vadd.f32 %v3099_v61, %v1256_v28  ;;  %v1719_v28 = vstv %s3190_s8 }
 0x278   : > { %1584 = vrot.lane.b32.xlu0 %v1579_v49, %s2352_s19  ;;  %v1734_v49 = vmul.f32 %v1733_v45, %v3203_v43 }
 0x279   : > { %v1295_v36 = vpop.permute.xlu1 %1294  ;;  %v3150_v21 = vpop.permute.xlu2 %1356  ;;  %v1284_v52 = vadd.f32 %v1279_v33, %v1270_v51  ;;  %v1671_v33 = vmul.f32 %v1669_v23, %v3166_v5  ;;  %v1720_v51 = vmul.f32 %v1719_v28, %v3203_v43 }
 0x27a   : > { %v1267_v53 = vpop.permute.xlu0 %1266 }
 0x27b   : > { %v1271_v58 = vadd.f32 %v1267_v53, %v1257_v42 }
 0x27d   : > { %v1285_v57 = vadd.f32 %v1281_v15, %v1271_v58 }
 0x27f   : > { %1646 = vrot.lane.b32.xlu1 %v1642_v59, %s2348_s15  ;;  %1632 = vrot.lane.b32.xlu2 %v1628_v60, %s2349_s16  ;;  %v1299_v61 = vadd.f32 %v1295_v36, %v1285_v57  ;;  %v1698_v36 = vmul.f32 %v1697_v37, %v3152_v54  ;;  %v1747_v57 = vstv %s3207_s21 }
 0x280   : > { %1610 = vrot.lane.b32.xlu0 %v1606_v44, %s2353_s30  ;;  %v1749_v60 = vmul.f32 %v1747_v57, %v3217_v7  ;;  %v1735_v44 = vmul.f32 %v1733_v45, %v3217_v7 }
 0x281   : > { %v1321_v62 = vpop.permute.xlu1 %1320  ;;  %v1373_v63 = vpop.permute.xlu2 %1372 }
 0x282   : > { %v1293_v2 = vpop.permute.xlu0 %1292 }
 0x283   : > { %v1298_v8 = vadd.f32 %v1293_v2, %v1284_v52 }
 0x285   : > { %v1312_v10 = vadd.f32 %v1307_v26, %v1298_v8  ;;  %v1345_v26 = vstv %s2029_s5 }
 0x286   : > { %v1347_v22 = vmul.f32 %v1345_v26, %v3013_v38  ;;  %v1346_v34 = vmul.f32 %v1345_v26, %v2999_v25  ;;  %v1685_v38 = vmul.f32 %v1683_v13, %v3166_v5  ;;  %v1789_v26 = vstv %s3230_s24 }
 0x287   : > { %1662 = vrot.lane.b32.xlu1 %v1657_v11, %s2350_s26  ;;  %1648 = vrot.lane.b32.xlu2 %v1643_v55, %s2348_s15  ;;  %v1326_v14 = vadd.f32 %v1321_v62, %v1312_v10  ;;  %v1761_v10 = vstv %s3219_s23 }
 0x288   : > { %1634 = vrot.lane.b32.xlu0 %v1629_v12, %s2349_s16  ;;  %v1776_v12 = vmul.f32 %v1775_v4, %v3203_v43 }
 0x289   : > { %v1337_v15 = vpop.permute.xlu1 %1336  ;;  %v1399_v17 = vpop.permute.xlu2 %1398 }
 0x28a   : > { %v1309_v20 = vpop.permute.xlu0 %1308 }
 0x28b   : > { %v1313_v6 = vadd.f32 %v1309_v20, %v1299_v61  ;;  %v1721_v61 = vmul.f32 %v1719_v28, %v3217_v7 }
 0x28d   : > { %v1327_v0 = vadd.f32 %v1323_v40, %v1313_v6 }
 0x28f   : > { %1688 = vrot.lane.b32.xlu1 %v1684_v48, %s2351_s17  ;;  %1674 = vrot.lane.b32.xlu2 %v1670_v24, %s2352_s19  ;;  %v1341_v30 = vadd.f32 %v1337_v15, %v1327_v0  ;;  %v1748_v15 = vmul.f32 %v1747_v57, %v3203_v43 }
 0x290   : > { %1660 = vrot.lane.b32.xlu0 %v1656_v19, %s2350_s26 }
 0x291   : > { %v1371_v31 = vpop.permute.xlu1 %1370  ;;  %v1415_v27 = vpop.permute.xlu2 %1414  ;;  %v1349_v9 = vadd.f32 %v1347_v22, %v1341_v30  ;;  %v1791_v22 = vmul.f32 %v1789_v26, %v3217_v7 }
 0x292   : > { %v1335_v32 = vpop.permute.xlu0 %1334 }
 0x293   : > { %v1340_v35 = vadd.f32 %v1335_v32, %v1326_v14  ;;  %v1762_v14 = vmul.f32 %v1761_v10, %v3203_v43 }
 0x295   : > { %v1348_v39 = vadd.f32 %v1346_v34, %v1340_v35 }
 0x297   : > { %1704 = vrot.lane.b32.xlu1 %v1699_v50, %s2353_s30  ;;  %1690 = vrot.lane.b32.xlu2 %v1685_v38, %s2351_s17  ;;  %v1362_v40 = vadd.f32 %v3150_v21, %v1348_v39  ;;  %v1790_v39 = vmul.f32 %v1789_v26, %v3203_v43 }
 0x298   : > { %1676 = vrot.lane.b32.xlu0 %v1671_v33, %s2352_s19 }
 0x299   : > { %v1387_v25 = vpop.permute.xlu1 %1386  ;;  %v3201_v42 = vpop.permute.xlu2 %1448  ;;  %v1376_v3 = vadd.f32 %v1371_v31, %v1362_v40  ;;  %v1777_v31 = vmul.f32 %v1775_v4, %v3217_v7 }
 0x29a   : > { %v1359_v41 = vpop.permute.xlu0 %1358 }
 0x29b   : > { %v1363_v47 = vadd.f32 %v1359_v41, %v1349_v9 }
 0x29d   : > { %v1377_v46 = vadd.f32 %v1373_v63, %v1363_v47 }
 0x29f   : > { %1738 = vrot.lane.b32.xlu1 %v1734_v49, %s2348_s15  ;;  %1724 = vrot.lane.b32.xlu2 %v1720_v51, %s2349_s16  ;;  %v1391_v21 = vadd.f32 %v1387_v25, %v1377_v46 }
 0x2a0   : > { %1702 = vrot.lane.b32.xlu0 %v1698_v36, %s2353_s30 }
 0x2a1   : > { %v1413_v52 = vpop.permute.xlu1 %1412  ;;  %v1465_v53 = vpop.permute.xlu2 %1464 }
 0x2a2   : > { %v1385_v56 = vpop.permute.xlu0 %1384 }
 0x2a3   : > { %v1390_v58 = vadd.f32 %v1385_v56, %v1376_v3 }
 0x2a5   : > { %v1404_v59 = vadd.f32 %v1399_v17, %v1390_v58  ;;  %v1437_v17 = vstv %s2036_s27  ;;  %s2269_s27 = scalar_lea.hbm %s3299_s2, 32 }
 0x2a6   : > { %v1439_v13 = vmul.f32 %v1437_v17, %v3064_v29  ;;  %v1438_v48 = vmul.f32 %v1437_v17, %v3050_v16 }
 0x2a7   : > { %1754 = vrot.lane.b32.xlu1 %v1749_v60, %s2350_s26  ;;  %1740 = vrot.lane.b32.xlu2 %v1735_v44, %s2348_s15  ;;  %v1418_v62 = vadd.f32 %v1413_v52, %v1404_v59  ;;  %s2043_s15 = sld [smem:[#allocation5 + $0x4d]] }
 0x2a8   : > { %1726 = vrot.lane.b32.xlu0 %v1721_v61, %s2349_s16  ;;  %s2050_s16 = sld [smem:[#allocation5 + $0x54]] }
 0x2a9   : > { %v1429_v63 = vpop.permute.xlu1 %1428  ;;  %v1491_v2 = vpop.permute.xlu2 %1490 }
 0x2aa   : > { %v1401_v8 = vpop.permute.xlu0 %1400 }
 0x2ab   : > { %v1405_v11 = vadd.f32 %v1401_v8, %v1391_v21 }
 0x2ad   : > { %v1419_v55 = vadd.f32 %v1415_v27, %v1405_v11  ;;  %v1763_v27 = vmul.f32 %v1761_v10, %v3217_v7  ;;  %v1529_v46 = vstv %s2043_s15 }
 0x2ae   : > { %v1531_v51 = vmul.f32 %v1529_v46, %v3115_v18  ;;  %v1530_v56 = vmul.f32 %v1529_v46, %v3101_v1  ;;  %v1621_v17 = vstv %s2050_s16 }
 0x2af   : > { %1780 = vrot.lane.b32.xlu1 %v1776_v12, %s2351_s17  ;;  %1766 = vrot.lane.b32.xlu2 %v1762_v14, %s2352_s19  ;;  %v1433_v20 = vadd.f32 %v1429_v63, %v1419_v55 }
 0x2b0   : > { %1752 = vrot.lane.b32.xlu0 %v1748_v15, %s2350_s26  ;;  %s2057_s26 = sld [smem:[#allocation5 + $0x5b]] }
 0x2b1   : > { %v1463_v23 = vpop.permute.xlu1 %1462  ;;  %v1441_v6 = vadd.f32 %v1439_v13, %v1433_v20  ;;  %v1507_v19 = vpop.permute.xlu2 %1506  ;;  %v1623_v13 = vmul.f32 %v1621_v17, %v3166_v5 }
 0x2b2   : > { %v1427_v0 = vpop.permute.xlu0 %1426 }
 0x2b3   : > { %v1432_v24 = vadd.f32 %v1427_v0, %v1418_v62 }
 0x2b5   : > { %v1440_v30 = vadd.f32 %v1438_v48, %v1432_v24 }
 0x2b7   : > { %1796 = vrot.lane.b32.xlu1 %v1791_v22, %s2353_s30  ;;  %1782 = vrot.lane.b32.xlu2 %v1777_v31, %s2351_s17  ;;  %v1454_v29 = vadd.f32 %v3201_v42, %v1440_v30  ;;  %s2072_s17 = sshll.u32 %s2327_s12, 4 }
 0x2b8   : > { %1768 = vrot.lane.b32.xlu0 %v1763_v27, %s2352_s19  ;;  %s1966_s19 = sshll.u32 %s2470_s22, 4  ;;  %s1855_s4 = scalar_lea.hbm %s3299_s2, %s2072_s17 }
 0x2b9   : > { %v1479_v9 = vpop.permute.xlu1 %1478  ;;  %v1468_v16 = vadd.f32 %v1463_v23, %v1454_v29  ;;  %v1541_v37 = vpop.permute.xlu2 %1540  ;;  %s191_s12 = scalar_lea.vmem [#allocation10], %s1966_s19  ;;  %s1858_s6 = sshll.u32 %s1855_s4, 4  ;;  %s1859_s6 = int_to_ptr.hbm [resolvable:$true] %s1858_s6 }
 0x2ba   : > { %v1451_v32 = vpop.permute.xlu0 %1450  ;;  %s1856_s5 = sshll.u32 %s191_s12, 4  ;;  %s2263_s8 = sshra.s32 %s1859_s6, 4  ;;  %s1857_s5 = int_to_ptr.vmem [resolvable:$true] %s1856_s5  ;;  %s2264_s8 = int_to_ptr.hbm [resolvable:$true] %s2263_s8 }
 0x2bb   : > { %v1455_v34 = vadd.f32 %v1451_v32, %v1441_v6  ;;  %s2265_s21 = scalar_lea.hbm %s2264_s8, 16  ;;  %p2270_p8 = scmp.lt.s32.totalorder %s2264_s8, %s3299_s2 }
 0x2bc   : > { %p2266_p1 = scmp.ne.s32.totalorder %s2264_s8, %s2265_s21  ;;  %p2271_p11 = scmp.lt.s32.totalorder %s2269_s27, %s2265_s21 }
 0x2bd   : > { %v1469_v35 = vadd.f32 %v1465_v53, %v1455_v34 }
 0x2be   : > { %p2267_p2 = pnand %p2266_p1, %p2449_p9  ;;  %p2272_p12 = por %p2271_p11, %p2270_p8 }
 0x2bf   : > { %v1483_v50 = vadd.f32 %v1479_v9, %v1469_v35 }
 0x2c0   : > { %1794 = vrot.lane.b32.xlu0 %v1790_v39, %s2353_s30  ;;  %p2268_p4 = pneg %p2267_p2 }
 0x2c1   : > { %v1505_v38 = vpop.permute.xlu1 %1504  ;;  %v1557_v42 = vpop.permute.xlu2 %1556 }
 0x2c2   : > { %v1477_v33 = vpop.permute.xlu0 %1476  ;;  %p2273_p13 = pnand %p2272_p12, %p2268_p4 }
 0x2c3   : > { %v1482_v40 = vadd.f32 %v1477_v33, %v1468_v16 }
 0x2c5   : > { %v1496_v25 = vadd.f32 %v1491_v2, %v1482_v40 }
 0x2c7   : > { %v1510_v3 = vadd.f32 %v1505_v38, %v1496_v25 }
 0x2c9   : > { %v1521_v41 = vpop.permute.xlu1 %1520  ;;  %v1583_v52 = vpop.permute.xlu2 %1582 }
 0x2ca   : > { %v1493_v45 = vpop.permute.xlu0 %1492 }
 0x2cb   : > { %v1497_v28 = vadd.f32 %v1493_v45, %v1483_v50 }
 0x2cd   : > { %v1511_v47 = vadd.f32 %v1507_v19, %v1497_v28  ;;  %v1622_v19 = vmul.f32 %v1621_v17, %v3152_v54 }
 0x2cf   : > { %v1525_v49 = vadd.f32 %v1521_v41, %v1511_v47 }
 0x2d1   : > { %v1555_v36 = vpop.permute.xlu1 %1554  ;;  %v1533_v21 = vadd.f32 %v1531_v51, %v1525_v49  ;;  %v1599_v44 = vpop.permute.xlu2 %1598 }
 0x2d2   : > { %v1519_v53 = vpop.permute.xlu0 %1518 }
 0x2d3   : > { %v1524_v58 = vadd.f32 %v1519_v53, %v1510_v3  ;;  %v1713_v3 = vstv %s2057_s26 }
 0x2d4   : > { %v1715_v41 = vmul.f32 %v1713_v3, %v3217_v7  ;;  %v1714_v49 = vmul.f32 %v1713_v3, %v3203_v43 }
 0x2d5   : > { %v1532_v57 = vadd.f32 %v1530_v56, %v1524_v58 }
 0x2d7   : > { %v1546_v2 = vadd.f32 %v1541_v37, %v1532_v57 }
 0x2d9   : > { %v1571_v59 = vpop.permute.xlu1 %1570  ;;  %v1633_v4 = vpop.permute.xlu2 %1632  ;;  %v1560_v10 = vadd.f32 %v1555_v36, %v1546_v2 }
 0x2da   : > { %v1543_v60 = vpop.permute.xlu0 %1542 }
 0x2db   : > { %v1547_v61 = vadd.f32 %v1543_v60, %v1533_v21 }
 0x2dd   : > { %v1561_v8 = vadd.f32 %v1557_v42, %v1547_v61 }
 0x2df   : > { %v1575_v55 = vadd.f32 %v1571_v59, %v1561_v8 }
 0x2e1   : > { %v1597_v62 = vpop.permute.xlu1 %1596  ;;  %v1649_v23 = vpop.permute.xlu2 %1648 }
 0x2e2   : > { %v1569_v63 = vpop.permute.xlu0 %1568 }
 0x2e3   : > { %v1574_v18 = vadd.f32 %v1569_v63, %v1560_v10 }
 0x2e5   : > { %v1588_v15 = vadd.f32 %v1583_v52, %v1574_v18 }
 0x2e7   : > { %v1602_v0 = vadd.f32 %v1597_v62, %v1588_v15 }
 0x2e9   : > { %v1613_v11 = vpop.permute.xlu1 %1612  ;;  %v1675_v31 = vpop.permute.xlu2 %1674 }
 0x2ea   : > { %v1585_v12 = vpop.permute.xlu0 %1584 }
 0x2eb   : > { %v1589_v14 = vadd.f32 %v1585_v12, %v1575_v55 }
 0x2ed   : > { %v1603_v1 = vadd.f32 %v1599_v44, %v1589_v14 }
 0x2ef   : > { %v1617_v20 = vadd.f32 %v1613_v11, %v1603_v1 }
 0x2f1   : > { %v1647_v6 = vpop.permute.xlu1 %1646  ;;  %v1625_v48 = vadd.f32 %v1623_v13, %v1617_v20  ;;  %v1691_v34 = vpop.permute.xlu2 %1690 }
 0x2f2   : > { %v1611_v24 = vpop.permute.xlu0 %1610 }
 0x2f3   : > { %v1616_v26 = vadd.f32 %v1611_v24, %v1602_v0 }
 0x2f5   : > { %v1624_v30 = vadd.f32 %v1622_v19, %v1616_v26 }
 0x2f7   : > { %v1638_v32 = vadd.f32 %v1633_v4, %v1624_v30 }
 0x2f9   : > { %v1663_v22 = vpop.permute.xlu1 %1662  ;;  %v1652_v5 = vadd.f32 %v1647_v6, %v1638_v32  ;;  %v1725_v25 = vpop.permute.xlu2 %1724 }
 0x2fa   : > { %v1635_v27 = vpop.permute.xlu0 %1634 }
 0x2fb   : > { %v1639_v29 = vadd.f32 %v1635_v27, %v1625_v48 }
 0x2fd   : > { %v1653_v35 = vadd.f32 %v1649_v23, %v1639_v29 }
 0x2ff   : > { %v1667_v50 = vadd.f32 %v1663_v22, %v1653_v35 }
 0x301   : > { %v1689_v9 = vpop.permute.xlu1 %1688  ;;  %v1741_v21 = vpop.permute.xlu2 %1740 }
 0x302   : > { %v1661_v16 = vpop.permute.xlu0 %1660 }
 0x303   : > { %v1666_v37 = vadd.f32 %v1661_v16, %v1652_v5 }
 0x305   : > { %v1680_v40 = vadd.f32 %v1675_v31, %v1666_v37 }
 0x307   : > { %v1694_v28 = vadd.f32 %v1689_v9, %v1680_v40 }
 0x309   : > { %v1705_v39 = vpop.permute.xlu1 %1704  ;;  %v1767_v58 = vpop.permute.xlu2 %1766 }
 0x30a   : > { %v1677_v38 = vpop.permute.xlu0 %1676 }
 0x30b   : > { %v1681_v33 = vadd.f32 %v1677_v38, %v1667_v50 }
 0x30d   : > { %v1695_v54 = vadd.f32 %v1691_v34, %v1681_v33 }
 0x30f   : > { %v1709_v42 = vadd.f32 %v1705_v39, %v1695_v54 }
 0x311   : > { %v1739_v45 = vpop.permute.xlu1 %1738  ;;  %v1717_v47 = vadd.f32 %v1715_v41, %v1709_v42  ;;  %v1783_v8 = vpop.permute.xlu2 %1782 }
 0x312   : > { %v1703_v46 = vpop.permute.xlu0 %1702 }
 0x313   : > { %v1708_v51 = vadd.f32 %v1703_v46, %v1694_v28 }
 0x315   : > { %v1716_v36 = vadd.f32 %v1714_v49, %v1708_v51 }
 0x317   : > { %v1730_v59 = vadd.f32 %v1725_v25, %v1716_v36 }
 0x319   : > { %v1755_v52 = vpop.permute.xlu1 %1754  ;;  %v1744_v61 = vadd.f32 %v1739_v45, %v1730_v59 }
 0x31a   : > { %v1727_v53 = vpop.permute.xlu0 %1726 }
 0x31b   : > { %v1731_v56 = vadd.f32 %v1727_v53, %v1717_v47 }
 0x31d   : > { %v1745_v44 = vadd.f32 %v1741_v21, %v1731_v56 }
 0x31f   : > { %v1759_v7 = vadd.f32 %v1755_v52, %v1745_v44 }
 0x321   : > { %v1781_v60 = vpop.permute.xlu1 %1780 }
 0x322   : > { %v1753_v57 = vpop.permute.xlu0 %1752 }
 0x323   : > { %v1758_v62 = vadd.f32 %v1753_v57, %v1744_v61 }
 0x325   : > { %v1772_v4 = vadd.f32 %v1767_v58, %v1758_v62 }
 0x327   : > { %v1786_v55 = vadd.f32 %v1781_v60, %v1772_v4 }
 0x329   : > { %v1797_v43 = vpop.permute.xlu1 %1796 }
 0x32a   : > { %v1769_v63 = vpop.permute.xlu0 %1768 }
 0x32b   : > { %v1773_v2 = vadd.f32 %v1769_v63, %v1759_v7 }
 0x32d   : > { %v1787_v10 = vadd.f32 %v1783_v8, %v1773_v2 }
 0x32f   : > { %v1801_v18 = vadd.f32 %v1797_v43, %v1787_v10 }
 0x331   : > { %v2065_v11 = vmul.f32 -1.442695, %v1801_v18 }
 0x332   : > { %v1795_v12 = vpop.permute.xlu0 %1794 }
 0x333   : > { %2196 = vpow2.f32 %v2065_v11  ;;  %v1800_v14 = vadd.f32 %v1795_v12, %v1786_v55 }
 0x335   : > { %v2064_v15 = vmul.f32 -1.442695, %v1800_v14 }
 0x337   : > { %2198 = vpow2.f32 %v2064_v15 }
 0x339   : > { %v2197_v1 = vpop.eup %2196 }
 0x33a   : > { %v1809_v17 = vadd.f32 1.0, %v2197_v1 }
 0x33c   : > { %2200 = vrcp.f32 %v1809_v17  ;;  %v1834_v24 = vand.u32 2147483647, %v1809_v17  ;;  %v1836_v19 = vand.u32 2147483648, %v1809_v17  ;;  %vm1830_vm10 = vweird.f32 %v1809_v17 }
 0x33d   : > { %v2199_v20 = vpop.eup %2198 }
 0x33e   : > { %v1808_v13 = vadd.f32 1.0, %v2199_v20  ;;  %vm1835_vm12 = vcmp.eq.f32.partialorder %v1834_v24, 8.507059e+37  ;;  %v1837_v29 = vor.u32 1.1754944e-38, %v1836_v19 }
 0x340   : > { %2202 = vrcp.f32 %v1808_v13  ;;  %v1821_v27 = vand.u32 2147483648, %v1808_v13  ;;  %v1819_v16 = vand.u32 2147483647, %v1808_v13  ;;  %vm1815_vm15 = vweird.f32 %v1808_v13 }
 0x342   : > { %v2201_v23 = vpop.eup %2200  ;;  %v1822_v5 = vor.u32 1.1754944e-38, %v1821_v27  ;;  %vm1820_vm1 = vcmp.eq.f32.partialorder %v1819_v16, 8.507059e+37 }
 0x343   : > { %v1826_v6 = vmul.f32 %v2201_v23, %v1809_v17  ;;  %vm1831_vm9 = vweird.f32 %v2201_v23 }
 0x344   : > { %vm1832_vm11 = vmor %vm1830_vm10, %vm1831_vm9 }
 0x345   : > { %v1827_v0 = vsub.f32 1.0, %v1826_v6 }
 0x346   : > { %v2203_v48 = vpop.eup %2202 }
 0x347   : > { %v1828_v26 = vmul.f32 %v2201_v23, %v1827_v0  ;;  %v1811_v30 = vmul.f32 %v2203_v48, %v1808_v13  ;;  %vm1816_vm14 = vweird.f32 %v2203_v48 }
 0x348   : > { %vm1817_vm0 = vmor %vm1815_vm15, %vm1816_vm14 }
 0x349   : > { %v1812_v22 = vsub.f32 1.0, %v1811_v30  ;;  %v1829_v31 = vadd.f32 %v2201_v23, %v1828_v26 }
 0x34b   : > { %v1813_v9 = vmul.f32 %v2203_v48, %v1812_v22  ;;  %v1833_v32 = vsel %vm1832_vm11, %v2201_v23, %v1829_v31 }
 0x34c   : > { %v1838_v34 = vsel %vm1835_vm12, %v1837_v29, %v1833_v32 }
 0x34d   : > { %v1814_v35 = vadd.f32 %v2203_v48, %v1813_v9  ;;  %1842 = vst.msk [vmem:[%s191_s12 + $0x8] sm:$0xff] %vm1840_vm13, %v1838_v34 }
 0x34f   : > { %v1818_v37 = vsel %vm1817_vm0, %v2203_v48, %v1814_v35 }
 0x350   : > { %v1823_v39 = vsel %vm1820_vm1, %v1822_v5, %v1818_v37 }
 0x351   : > { %1841 = vst.msk [vmem:[%s191_s12] sm:$0xff] %vm1840_vm13, %v1823_v39 }
 0x352   : > { %2276 = shalt.err (!%p2273_p13)
}
 0x353   : > { %s2354_s22 = smov 128   ;;  %s2355_s16 = smov 8  }
 0x354   : > { %2079 = dma.vmem_to_hbm [thread:$0]  (%p2449_p9), %s1857_s5, 256, %s1859_s6, %s1844_s7, %s2354_s22, %s2354_s22, %s2355_s16  }
 0x355 PF: > { %s1873_s26 = sand.u32 1, %s2315_s9   ;;  %p3308_p0 = scmp.ge.s32.totalorder %s2335_s14, 2 }
 0x356   : > { %s1874_s17 = scalar_lea.sflag [#allocation7], %s1873_s26 }
 0x357   : > { %p2090_p3 = pnand %p3308_p0, %p2420_p6 }
 0x359   : > { %p2091_p5 = pneg %p2090_p3 }
 0x35b   : > { %2310 = dma.done.wait (%p2091_p5), %s1874_s17, 256  }
 0x35c   : > { %2312 = vsyncadd (%p2091_p5), %s1874_s17, 4294967040  ;;  %s19_s14 = sadd.s32 1, %s2335_s14   ;;  %s3309_s9 = smov %s2319_s10 }
 0x35d   : > { %p16_p7 = scmp.ge.s32.totalorder %s19_s14, 4   ;;  %s3310_s10 = smov %s2323_s11 }
 0x35e   : > { %s3311_s11 = smov %s2455_s3  ;;  %s3312_s12 = smov %s2331_s13 }
 0x35f   : > { %s3313_s13 = smov %s3315_s25  ;;  %18 = sbr.rel (!%p16_p7) target bundleno = 7 (0x7), region = 87 }
 0x364   :  { %1880 = vsyncpa [#allocation6], 1 }
 0x365   :  { %1882 = vsyncpa [#allocation6 + $0x1], 1 }
 0x366   :  { %1883 = vsyncpa [#allocation7], 1 }
 0x367   :  { %1885 = vsyncpa [#allocation7 + $0x1], 1 }
 0x368   :  { %1886 = vsyncpa [#allocation8], 1 }
 0x369   :  { %1888 = vsyncpa [#allocation8 + $0x1], 1 }

</bundles_post_ra>
